<compile_context>
chip_gen: v7x
topology: tpu7x:2x2x1
jax: 0.10.0
libtpu: 0.0.40
codegen_flags: <defaults>
</compile_context>

<pallas_src>
from functools import partial

import jax
import jax.numpy as jnp
from jax.experimental import pallas as pl
from jax.experimental.pallas import tpu as pltpu


# ----------------------------------------------------------------------------
# Fused adapter kernel: the full feature-extractor trunk for one image runs in
# a single pallas_call; grid=(N,) iterates over the batch.
# ----------------------------------------------------------------------------
def _adapter_kernel(x_ref, w_in_ref, b_in_ref, blk0_w_ref, blk0_b_ref,
                    pool_ref, w_mid_ref, b_mid_ref, blk1_w_ref, blk1_b_ref,
                    f0_ref, f1_ref,
                    pad0_ref, col0_ref, pad1_ref, col1_ref,
                    *, H, W, Cin, C0, C1, NB):
    H2, W2 = H // 2, W // 2

    # Zero the padded activation scratches.  Every conv layer only rewrites
    # the interior, so the borders stay zero -> 'same' zero padding without
    # any jnp.pad / extra HBM traffic.
    pad0_ref[...] = jnp.zeros(pad0_ref.shape, pad0_ref.dtype)
    pad1_ref[...] = jnp.zeros(pad1_ref.shape, pad1_ref.dtype)

    def conv3x3(act, pad_ref, col_ref, w, b, hh, ww, cc,
                relu=False, residual=None):
        """3x3 'same' conv as ONE im2col matmul (K = 9*cc) on the MXU."""
        # Write the activation into the interior of the zero-bordered scratch.
        pad_ref[1:hh + 1, 1:ww + 1, :cc] = act.reshape(hh, ww, cc)
        # Gather the 9 shifted windows once into the im2col scratch (bf16).
        for t in range(9):
            dy, dx = divmod(t, 3)
            patch = pad_ref[dy:dy + hh, dx:dx + ww, :cc]
            col_ref[:, t * cc:(t + 1) * cc] = (
                patch.reshape(hh * ww, cc).astype(col_ref.dtype))
        # Single bf16 matmul with f32 accumulation.
        out = jnp.dot(col_ref[:, :9 * cc], w,
                      preferred_element_type=jnp.float32)
        out = out + b                                   # f32 bias add
        if residual is not None:
            out = out + residual                        # f32 residual add
        if relu:
            out = jnp.maximum(out, 0.0)
        return out                                      # (hh*ww, Cout) f32

    # ---- stage 0: conv_in + residual blocks ---------------------------------
    act = x_ref[0]                                      # (H*W, Cin) f32
    act = conv3x3(act, pad0_ref, col0_ref, w_in_ref[...], b_in_ref[...],
                  H, W, Cin)
    for i in range(NB):                                 # conv->ReLU->conv->+x
        h = conv3x3(act, pad0_ref, col0_ref,
                    blk0_w_ref[i, 0], blk0_b_ref[i, 0], H, W, C0, relu=True)
        act = conv3x3(h, pad0_ref, col0_ref,
                      blk0_w_ref[i, 1], blk0_b_ref[i, 1], H, W, C0,
                      residual=act)
    f0_ref[0] = act.astype(f0_ref.dtype)                # scale-0 feature

    # ---- downsample (2x2 avg-pool as a tiny matmul) + 1x1 conv --------------
    pooled = jnp.dot(pool_ref[...], act,                # (H2*W2, C0) f32
                     preferred_element_type=jnp.float32)
    act = jnp.dot(pooled.astype(w_mid_ref.dtype), w_mid_ref[...],
                  preferred_element_type=jnp.float32) + b_mid_ref[...]

    # ---- stage 1: residual blocks at half resolution ------------------------
    for i in range(NB):
        h = conv3x3(act, pad1_ref, col1_ref,
                    blk1_w_ref[i, 0], blk1_b_ref[i, 0], H2, W2, C1, relu=True)
        act = conv3x3(h, pad1_ref, col1_ref,
                      blk1_w_ref[i, 1], blk1_b_ref[i, 1], H2, W2, C1,
                      residual=act)
    f1_ref[0] = act.astype(f1_ref.dtype)                # scale-1 feature


# ----------------------------------------------------------------------------
# Glue (reshapes / parameter packing) — plain JAX
# ----------------------------------------------------------------------------
def pixel_unshuffle(x_nchw, r):
    N, C, H, W = x_nchw.shape
    x = x_nchw.reshape(N, C, H // r, r, W // r, r)
    return x.transpose(0, 1, 3, 5, 2, 4).reshape(N, C * r * r, H // r, W // r)


def _pool_matrix(H, W):
    """[H/2*W/2, H*W] matrix implementing 2x2 average pooling as P @ x."""
    H2, W2 = H // 2, W // 2
    q = jnp.arange(H * W)
    dst = (q // W // 2) * W2 + (q % W) // 2             # output row of input q
    return 0.25 * (jnp.arange(H2 * W2)[:, None] == dst[None, :]
                   ).astype(jnp.float32)


def init_params(key, c_in, c0, c1, num_res_blocks=2):
    """Random adapter weights packed into matmul-ready im2col layout.

    3x3 conv weights are stored as [9*Cin, Cout] (tap-major, channel-minor)
    bf16 matrices; biases as [1, Cout] f32.  Residual-block weights are
    stacked as [num_blocks, 2, 9*C, C] so each stage is one kernel input.
    """
    def conv_w(k, taps, cin, cout):
        scale = 1.0 / jnp.sqrt(taps * cin)
        return jax.random.normal(k, (taps, cin, cout), jnp.float32) * scale

    keys = jax.random.split(key, 2 + 4 * num_res_blocks)
    params = {
        "conv_in_w": (conv_w(keys[0], 9, c_in, c0)
                      .reshape(9 * c_in, c0).astype(jnp.bfloat16)),
        "conv_in_b": jnp.zeros((1, c0), jnp.float32),
        "mid_w": conv_w(keys[1], 1, c0, c1)[0].astype(jnp.bfloat16),
        "mid_b": jnp.zeros((1, c1), jnp.float32),
    }
    ki = 2
    blk0, blk1 = [], []
    for _ in range(num_res_blocks):
        w1 = conv_w(keys[ki], 9, c0, c0).reshape(9 * c0, c0)
        w2 = conv_w(keys[ki + 1], 9, c0, c0).reshape(9 * c0, c0)
        blk0.append(jnp.stack([w1, w2]))
        ki += 2
    for _ in range(num_res_blocks):
        w1 = conv_w(keys[ki], 9, c1, c1).reshape(9 * c1, c1)
        w2 = conv_w(keys[ki + 1], 9, c1, c1).reshape(9 * c1, c1)
        blk1.append(jnp.stack([w1, w2]))
        ki += 2
    params["blk0_w"] = jnp.stack(blk0).astype(jnp.bfloat16)
    params["blk0_b"] = jnp.zeros((num_res_blocks, 2, 1, c0), jnp.float32)
    params["blk1_w"] = jnp.stack(blk1).astype(jnp.bfloat16)
    params["blk1_b"] = jnp.zeros((num_res_blocks, 2, 1, c1), jnp.float32)
    return params


def t2i_adapter_forward(params, image_nchw, unshuffle_factor=2):
    """Scaled-down T2I-Adapter feature extractor (single fused Pallas call).

    image_nchw: [N, 3, H, W] float32 (the canny conditioning image).
    Returns a list of NCHW multi-scale conditioning features.
    """
    # TODO(synk): CannyDetector, SDXL UNet / VAE / Euler-A sampling loop have
    # no Pallas equivalent; only the adapter feature extractor is implemented.
    x = pixel_unshuffle(image_nchw, unshuffle_factor)    # [N, Cin, H/r, W/r]
    N, Cin, H, W = x.shape
    x = x.transpose(0, 2, 3, 1).reshape(N, H * W, Cin)   # NHWC, flat spatial

    C0 = params["conv_in_b"].shape[-1]
    C1 = params["mid_b"].shape[-1]
    NB = params["blk0_w"].shape[0]
    H2, W2 = H // 2, W // 2
    Cp0 = max(Cin, C0)                                   # shared stage-0 pad
    pool = _pool_matrix(H, W)

    kernel = partial(_adapter_kernel, H=H, W=W, Cin=Cin, C0=C0, C1=C1, NB=NB)

    # TODO(synk): at production adapter resolutions/widths, tile spatially
    # (grid=(N, H//TH) with a 1-row halo) so the working set fits v7x's 64 MiB
    # VMEM and both TensorCores are used at batch 1; whole-image blocks are
    # appropriate for these small demo shapes.
    f0, f1 = pl.pallas_call(
        kernel,
        out_shape=(
            jax.ShapeDtypeStruct((N, H * W, C0), image_nchw.dtype),
            jax.ShapeDtypeStruct((N, H2 * W2, C1), image_nchw.dtype),
        ),
        grid=(N,),
        in_specs=[
            pl.BlockSpec((1, H * W, Cin), lambda n: (n, 0, 0)),
            pl.BlockSpec(params["conv_in_w"].shape, lambda n: (0, 0)),
            pl.BlockSpec(params["conv_in_b"].shape, lambda n: (0, 0)),
            pl.BlockSpec(params["blk0_w"].shape, lambda n: (0, 0, 0, 0)),
            pl.BlockSpec(params["blk0_b"].shape, lambda n: (0, 0, 0, 0)),
            pl.BlockSpec(pool.shape, lambda n: (0, 0)),
            pl.BlockSpec(params["mid_w"].shape, lambda n: (0, 0)),
            pl.BlockSpec(params["mid_b"].shape, lambda n: (0, 0)),
            pl.BlockSpec(params["blk1_w"].shape, lambda n: (0, 0, 0, 0)),
            pl.BlockSpec(params["blk1_b"].shape, lambda n: (0, 0, 0, 0)),
        ],
        out_specs=(
            pl.BlockSpec((1, H * W, C0), lambda n: (n, 0, 0)),
            pl.BlockSpec((1, H2 * W2, C1), lambda n: (n, 0, 0)),
        ),
        scratch_shapes=[
            pltpu.VMEM((H + 2, W + 2, Cp0), jnp.float32),    # padded act, s0
            pltpu.VMEM((H * W, 9 * Cp0), jnp.bfloat16),      # im2col, s0
            pltpu.VMEM((H2 + 2, W2 + 2, C1), jnp.float32),   # padded act, s1
            pltpu.VMEM((H2 * W2, 9 * C1), jnp.bfloat16),     # im2col, s1
        ],
        compiler_params=pltpu.CompilerParams(
            dimension_semantics=("parallel",),
            vmem_limit_bytes=32 * 1024 * 1024,
        ),
    )(x, params["conv_in_w"], params["conv_in_b"],
      params["blk0_w"], params["blk0_b"],
      pool, params["mid_w"], params["mid_b"],
      params["blk1_w"], params["blk1_b"])

    f0 = f0.reshape(N, H, W, C0).transpose(0, 3, 1, 2)   # back to NCHW
    f1 = f1.reshape(N, H2, W2, C1).transpose(0, 3, 1, 2)
    return [f0, f1]


# ----------------------------------------------------------------------------
if __name__ == "__main__":
    key = jax.random.PRNGKey(0)
    k_img, k_par = jax.random.split(key)

    # small canny-conditioning image: batch=2, 3 channels, 16x16 spatial
    image = jax.random.normal(k_img, (2, 3, 16, 16), jnp.float32)

    C_IN = 3 * 2 * 2        # after pixel_unshuffle(factor=2)
    C0, C1 = 32, 64         # scaled-down adapter channel widths
    params = init_params(k_par, C_IN, C0, C1, num_res_blocks=2)

    feats = t2i_adapter_forward(params, image)
    feats = jax.block_until_ready(feats)

    assert feats[0].shape == (2, C0, 8, 8)
    assert feats[1].shape == (2, C1, 4, 4)
    assert all(bool(jnp.isfinite(f).all()) for f in feats)
    print("KERNEL_OK")
</pallas_src>

<mosaic_0001>
module attributes {stable_mosaic.version = 11 : i64} {
  func.func @_adapter_kernel(%arg0: i32, %arg1: memref<1x64x12xf32, #tpu.memory_space<vmem>>, %arg2: memref<108x32xbf16, #tpu.memory_space<vmem>>, %arg3: memref<1x32xf32, #tpu.memory_space<vmem>>, %arg4: memref<2x2x288x32xbf16, #tpu.memory_space<vmem>>, %arg5: memref<2x2x1x32xf32, #tpu.memory_space<vmem>>, %arg6: memref<16x64xf32, #tpu.memory_space<vmem>>, %arg7: memref<32x64xbf16, #tpu.memory_space<vmem>>, %arg8: memref<1x64xf32, #tpu.memory_space<vmem>>, %arg9: memref<2x2x576x64xbf16, #tpu.memory_space<vmem>>, %arg10: memref<2x2x1x64xf32, #tpu.memory_space<vmem>>, %arg11: memref<1x64x32xf32, #tpu.memory_space<vmem>>, %arg12: memref<1x16x64xf32, #tpu.memory_space<vmem>>, %arg13: memref<10x10x32xf32, #tpu.memory_space<vmem>>, %arg14: memref<64x288xbf16, #tpu.memory_space<vmem>>, %arg15: memref<6x6x64xf32, #tpu.memory_space<vmem>>, %arg16: memref<16x576xbf16, #tpu.memory_space<vmem>>) attributes {dimension_semantics = [#tpu.dimension_semantics<parallel>], iteration_bounds = array<i64: 2>, scalar_prefetch = 0 : i64, scratch_operands = 4 : i64, tpu.core_type = #tpu.core_type<tc>, window_params = [{transform_indices = @transform_0, window_bounds = array<i64: 1, 64, 12>}, {pipeline_mode = #tpu.pipeline_mode<synchronous>, transform_indices = @transform_1, window_bounds = array<i64: 108, 32>}, {pipeline_mode = #tpu.pipeline_mode<synchronous>, transform_indices = @transform_2, window_bounds = array<i64: 1, 32>}, {pipeline_mode = #tpu.pipeline_mode<synchronous>, transform_indices = @transform_3, window_bounds = array<i64: 2, 2, 288, 32>}, {pipeline_mode = #tpu.pipeline_mode<synchronous>, transform_indices = @transform_4, window_bounds = array<i64: 2, 2, 1, 32>}, {pipeline_mode = #tpu.pipeline_mode<synchronous>, transform_indices = @transform_5, window_bounds = array<i64: 16, 64>}, {pipeline_mode = #tpu.pipeline_mode<synchronous>, transform_indices = @transform_6, window_bounds = array<i64: 32, 64>}, {pipeline_mode = #tpu.pipeline_mode<synchronous>, transform_indices = @transform_7, window_bounds = array<i64: 1, 64>}, {pipeline_mode = #tpu.pipeline_mode<synchronous>, transform_indices = @transform_8, window_bounds = array<i64: 2, 2, 576, 64>}, {pipeline_mode = #tpu.pipeline_mode<synchronous>, transform_indices = @transform_9, window_bounds = array<i64: 2, 2, 1, 64>}, {transform_indices = @transform_10, window_bounds = array<i64: 1, 64, 32>}, {transform_indices = @transform_11, window_bounds = array<i64: 1, 16, 64>}]} {
    %cst = arith.constant 0.000000e+00 : f32
    %0 = vector.broadcast %cst : f32 to vector<10x10x32xf32>
    %c0 = arith.constant 0 : index
    %c0_0 = arith.constant 0 : index
    %c0_1 = arith.constant 0 : index
    %1 = vector.load %arg13[%c0, %c0_0, %c0_1] : memref<10x10x32xf32, #tpu.memory_space<vmem>>, vector<10x10x32xf32>
    tpu.vector_store %arg13[%c0, %c0_0, %c0_1], %0 {strides = array<i32>} : memref<10x10x32xf32, #tpu.memory_space<vmem>>, vector<10x10x32xf32>,
    %cst_2 = arith.constant 0.000000e+00 : f32
    %2 = vector.broadcast %cst_2 : f32 to vector<6x6x64xf32>
    %c0_3 = arith.constant 0 : index
    %c0_4 = arith.constant 0 : index
    %c0_5 = arith.constant 0 : index
    %3 = vector.load %arg15[%c0_3, %c0_4, %c0_5] : memref<6x6x64xf32, #tpu.memory_space<vmem>>, vector<6x6x64xf32>
    tpu.vector_store %arg15[%c0_3, %c0_4, %c0_5], %2 {strides = array<i32>} : memref<6x6x64xf32, #tpu.memory_space<vmem>>, vector<6x6x64xf32>,
    %c0_6 = arith.constant 0 : index
    %c0_7 = arith.constant 0 : index
    %c0_8 = arith.constant 0 : index
    %4 = vector.load %arg1[%c0_6, %c0_7, %c0_8] : memref<1x64x12xf32, #tpu.memory_space<vmem>>, vector<1x64x12xf32>
    %5 = vector.shape_cast %4 : vector<1x64x12xf32> to vector<64x12xf32>
    %c0_9 = arith.constant 0 : index
    %c0_10 = arith.constant 0 : index
    %6 = vector.load %arg2[%c0_9, %c0_10] : memref<108x32xbf16, #tpu.memory_space<vmem>>, vector<108x32xbf16>
    %c0_11 = arith.constant 0 : index
    %c0_12 = arith.constant 0 : index
    %7 = vector.load %arg3[%c0_11, %c0_12] : memref<1x32xf32, #tpu.memory_space<vmem>>, vector<1x32xf32>
    %8 = vector.shape_cast %5 : vector<64x12xf32> to vector<8x8x12xf32>
    %c1 = arith.constant 1 : index
    %c1_13 = arith.constant 1 : index
    %c0_14 = arith.constant 0 : index
    %9 = vector.load %arg13[%c1, %c1_13, %c0_14] : memref<10x10x32xf32, #tpu.memory_space<vmem>>, vector<8x8x12xf32>
    tpu.vector_store %arg13[%c1, %c1_13, %c0_14], %8 {strides = array<i32>} : memref<10x10x32xf32, #tpu.memory_space<vmem>>, vector<8x8x12xf32>,
    %c0_15 = arith.constant 0 : index
    %c0_16 = arith.constant 0 : index
    %c0_17 = arith.constant 0 : index
    %10 = vector.load %arg13[%c0_15, %c0_16, %c0_17] : memref<10x10x32xf32, #tpu.memory_space<vmem>>, vector<8x8x12xf32>
    %11 = vector.shape_cast %10 : vector<8x8x12xf32> to vector<64x12xf32>
    %12 = arith.truncf %11 : vector<64x12xf32> to vector<64x12xbf16>
    %c0_18 = arith.constant 0 : index
    %c0_19 = arith.constant 0 : index
    %13 = vector.load %arg14[%c0_18, %c0_19] : memref<64x288xbf16, #tpu.memory_space<vmem>>, vector<64x12xbf16>
    tpu.vector_store %arg14[%c0_18, %c0_19], %12 {strides = array<i32>} : memref<64x288xbf16, #tpu.memory_space<vmem>>, vector<64x12xbf16>,
    %c0_20 = arith.constant 0 : index
    %c1_21 = arith.constant 1 : index
    %c0_22 = arith.constant 0 : index
    %14 = vector.load %arg13[%c0_20, %c1_21, %c0_22] : memref<10x10x32xf32, #tpu.memory_space<vmem>>, vector<8x8x12xf32>
    %15 = vector.shape_cast %14 : vector<8x8x12xf32> to vector<64x12xf32>
    %16 = arith.truncf %15 : vector<64x12xf32> to vector<64x12xbf16>
    %c0_23 = arith.constant 0 : index
    %c12 = arith.constant 12 : index
    %17 = vector.load %arg14[%c0_23, %c12] : memref<64x288xbf16, #tpu.memory_space<vmem>>, vector<64x12xbf16>
    tpu.vector_store %arg14[%c0_23, %c12], %16 {strides = array<i32>} : memref<64x288xbf16, #tpu.memory_space<vmem>>, vector<64x12xbf16>,
    %c0_24 = arith.constant 0 : index
    %c2 = arith.constant 2 : index
    %c0_25 = arith.constant 0 : index
    %18 = vector.load %arg13[%c0_24, %c2, %c0_25] : memref<10x10x32xf32, #tpu.memory_space<vmem>>, vector<8x8x12xf32>
    %19 = vector.shape_cast %18 : vector<8x8x12xf32> to vector<64x12xf32>
    %20 = arith.truncf %19 : vector<64x12xf32> to vector<64x12xbf16>
    %c0_26 = arith.constant 0 : index
    %c24 = arith.constant 24 : index
    %21 = vector.load %arg14[%c0_26, %c24] : memref<64x288xbf16, #tpu.memory_space<vmem>>, vector<64x12xbf16>
    tpu.vector_store %arg14[%c0_26, %c24], %20 {strides = array<i32>} : memref<64x288xbf16, #tpu.memory_space<vmem>>, vector<64x12xbf16>,
    %c1_27 = arith.constant 1 : index
    %c0_28 = arith.constant 0 : index
    %c0_29 = arith.constant 0 : index
    %22 = vector.load %arg13[%c1_27, %c0_28, %c0_29] : memref<10x10x32xf32, #tpu.memory_space<vmem>>, vector<8x8x12xf32>
    %23 = vector.shape_cast %22 : vector<8x8x12xf32> to vector<64x12xf32>
    %24 = arith.truncf %23 : vector<64x12xf32> to vector<64x12xbf16>
    %c0_30 = arith.constant 0 : index
    %c36 = arith.constant 36 : index
    %25 = vector.load %arg14[%c0_30, %c36] : memref<64x288xbf16, #tpu.memory_space<vmem>>, vector<64x12xbf16>
    tpu.vector_store %arg14[%c0_30, %c36], %24 {strides = array<i32>} : memref<64x288xbf16, #tpu.memory_space<vmem>>, vector<64x12xbf16>,
    %c1_31 = arith.constant 1 : index
    %c1_32 = arith.constant 1 : index
    %c0_33 = arith.constant 0 : index
    %26 = vector.load %arg13[%c1_31, %c1_32, %c0_33] : memref<10x10x32xf32, #tpu.memory_space<vmem>>, vector<8x8x12xf32>
    %27 = vector.shape_cast %26 : vector<8x8x12xf32> to vector<64x12xf32>
    %28 = arith.truncf %27 : vector<64x12xf32> to vector<64x12xbf16>
    %c0_34 = arith.constant 0 : index
    %c48 = arith.constant 48 : index
    %29 = vector.load %arg14[%c0_34, %c48] : memref<64x288xbf16, #tpu.memory_space<vmem>>, vector<64x12xbf16>
    tpu.vector_store %arg14[%c0_34, %c48], %28 {strides = array<i32>} : memref<64x288xbf16, #tpu.memory_space<vmem>>, vector<64x12xbf16>,
    %c1_35 = arith.constant 1 : index
    %c2_36 = arith.constant 2 : index
    %c0_37 = arith.constant 0 : index
    %30 = vector.load %arg13[%c1_35, %c2_36, %c0_37] : memref<10x10x32xf32, #tpu.memory_space<vmem>>, vector<8x8x12xf32>
    %31 = vector.shape_cast %30 : vector<8x8x12xf32> to vector<64x12xf32>
    %32 = arith.truncf %31 : vector<64x12xf32> to vector<64x12xbf16>
    %c0_38 = arith.constant 0 : index
    %c60 = arith.constant 60 : index
    %33 = vector.load %arg14[%c0_38, %c60] : memref<64x288xbf16, #tpu.memory_space<vmem>>, vector<64x12xbf16>
    tpu.vector_store %arg14[%c0_38, %c60], %32 {strides = array<i32>} : memref<64x288xbf16, #tpu.memory_space<vmem>>, vector<64x12xbf16>,
    %c2_39 = arith.constant 2 : index
    %c0_40 = arith.constant 0 : index
    %c0_41 = arith.constant 0 : index
    %34 = vector.load %arg13[%c2_39, %c0_40, %c0_41] : memref<10x10x32xf32, #tpu.memory_space<vmem>>, vector<8x8x12xf32>
    %35 = vector.shape_cast %34 : vector<8x8x12xf32> to vector<64x12xf32>
    %36 = arith.truncf %35 : vector<64x12xf32> to vector<64x12xbf16>
    %c0_42 = arith.constant 0 : index
    %c72 = arith.constant 72 : index
    %37 = vector.load %arg14[%c0_42, %c72] : memref<64x288xbf16, #tpu.memory_space<vmem>>, vector<64x12xbf16>
    tpu.vector_store %arg14[%c0_42, %c72], %36 {strides = array<i32>} : memref<64x288xbf16, #tpu.memory_space<vmem>>, vector<64x12xbf16>,
    %c2_43 = arith.constant 2 : index
    %c1_44 = arith.constant 1 : index
    %c0_45 = arith.constant 0 : index
    %38 = vector.load %arg13[%c2_43, %c1_44, %c0_45] : memref<10x10x32xf32, #tpu.memory_space<vmem>>, vector<8x8x12xf32>
    %39 = vector.shape_cast %38 : vector<8x8x12xf32> to vector<64x12xf32>
    %40 = arith.truncf %39 : vector<64x12xf32> to vector<64x12xbf16>
    %c0_46 = arith.constant 0 : index
    %c84 = arith.constant 84 : index
    %41 = vector.load %arg14[%c0_46, %c84] : memref<64x288xbf16, #tpu.memory_space<vmem>>, vector<64x12xbf16>
    tpu.vector_store %arg14[%c0_46, %c84], %40 {strides = array<i32>} : memref<64x288xbf16, #tpu.memory_space<vmem>>, vector<64x12xbf16>,
    %c2_47 = arith.constant 2 : index
    %c2_48 = arith.constant 2 : index
    %c0_49 = arith.constant 0 : index
    %42 = vector.load %arg13[%c2_47, %c2_48, %c0_49] : memref<10x10x32xf32, #tpu.memory_space<vmem>>, vector<8x8x12xf32>
    %43 = vector.shape_cast %42 : vector<8x8x12xf32> to vector<64x12xf32>
    %44 = arith.truncf %43 : vector<64x12xf32> to vector<64x12xbf16>
    %c0_50 = arith.constant 0 : index
    %c96 = arith.constant 96 : index
    %45 = vector.load %arg14[%c0_50, %c96] : memref<64x288xbf16, #tpu.memory_space<vmem>>, vector<64x12xbf16>
    tpu.vector_store %arg14[%c0_50, %c96], %44 {strides = array<i32>} : memref<64x288xbf16, #tpu.memory_space<vmem>>, vector<64x12xbf16>,
    %c0_51 = arith.constant 0 : index
    %c0_52 = arith.constant 0 : index
    %46 = vector.load %arg14[%c0_51, %c0_52] : memref<64x288xbf16, #tpu.memory_space<vmem>>, vector<64x108xbf16>
    %cst_53 = arith.constant dense<0.000000e+00> : vector<64x32xf32>
    %47 = tpu.matmul %46, %6, %cst_53 {dimension_numbers = #tpu.dot_dimension_numbers<[1], [0], [0], [1], [0, 0, 1, 1], [], []>} : vector<64x108xbf16>, vector<108x32xbf16>, vector<64x32xf32> -> vector<64x32xf32>
    %48 = vector.broadcast %7 : vector<1x32xf32> to vector<64x32xf32>
    %49 = arith.addf %47, %48 : vector<64x32xf32>
    %c0_54 = arith.constant 0 : index
    %c0_55 = arith.constant 0 : index
    %c0_56 = arith.constant 0 : index
    %c0_57 = arith.constant 0 : index
    %50 = vector.load %arg4[%c0_54, %c0_55, %c0_56, %c0_57] : memref<2x2x288x32xbf16, #tpu.memory_space<vmem>>, vector<1x1x288x32xbf16>
    %51 = vector.shape_cast %50 : vector<1x1x288x32xbf16> to vector<288x32xbf16>
    %c0_58 = arith.constant 0 : index
    %c0_59 = arith.constant 0 : index
    %c0_60 = arith.constant 0 : index
    %c0_61 = arith.constant 0 : index
    %52 = vector.load %arg5[%c0_58, %c0_59, %c0_60, %c0_61] : memref<2x2x1x32xf32, #tpu.memory_space<vmem>>, vector<1x1x1x32xf32>
    %53 = vector.shape_cast %52 : vector<1x1x1x32xf32> to vector<1x32xf32>
    %54 = vector.shape_cast %49 : vector<64x32xf32> to vector<8x8x32xf32>
    %c1_62 = arith.constant 1 : index
    %c1_63 = arith.constant 1 : index
    %c0_64 = arith.constant 0 : index
    %55 = vector.load %arg13[%c1_62, %c1_63, %c0_64] : memref<10x10x32xf32, #tpu.memory_space<vmem>>, vector<8x8x32xf32>
    tpu.vector_store %arg13[%c1_62, %c1_63, %c0_64], %54 {strides = array<i32>} : memref<10x10x32xf32, #tpu.memory_space<vmem>>, vector<8x8x32xf32>,
    %c0_65 = arith.constant 0 : index
    %c0_66 = arith.constant 0 : index
    %c0_67 = arith.constant 0 : index
    %56 = vector.load %arg13[%c0_65, %c0_66, %c0_67] : memref<10x10x32xf32, #tpu.memory_space<vmem>>, vector<8x8x32xf32>
    %57 = vector.shape_cast %56 : vector<8x8x32xf32> to vector<64x32xf32>
    %58 = arith.truncf %57 : vector<64x32xf32> to vector<64x32xbf16>
    %c0_68 = arith.constant 0 : index
    %c0_69 = arith.constant 0 : index
    %59 = vector.load %arg14[%c0_68, %c0_69] : memref<64x288xbf16, #tpu.memory_space<vmem>>, vector<64x32xbf16>
    tpu.vector_store %arg14[%c0_68, %c0_69], %58 {strides = array<i32>} : memref<64x288xbf16, #tpu.memory_space<vmem>>, vector<64x32xbf16>,
    %c0_70 = arith.constant 0 : index
    %c1_71 = arith.constant 1 : index
    %c0_72 = arith.constant 0 : index
    %60 = vector.load %arg13[%c0_70, %c1_71, %c0_72] : memref<10x10x32xf32, #tpu.memory_space<vmem>>, vector<8x8x32xf32>
    %61 = vector.shape_cast %60 : vector<8x8x32xf32> to vector<64x32xf32>
    %62 = arith.truncf %61 : vector<64x32xf32> to vector<64x32xbf16>
    %c0_73 = arith.constant 0 : index
    %c32 = arith.constant 32 : index
    %63 = vector.load %arg14[%c0_73, %c32] : memref<64x288xbf16, #tpu.memory_space<vmem>>, vector<64x32xbf16>
    tpu.vector_store %arg14[%c0_73, %c32], %62 {strides = array<i32>} : memref<64x288xbf16, #tpu.memory_space<vmem>>, vector<64x32xbf16>,
    %c0_74 = arith.constant 0 : index
    %c2_75 = arith.constant 2 : index
    %c0_76 = arith.constant 0 : index
    %64 = vector.load %arg13[%c0_74, %c2_75, %c0_76] : memref<10x10x32xf32, #tpu.memory_space<vmem>>, vector<8x8x32xf32>
    %65 = vector.shape_cast %64 : vector<8x8x32xf32> to vector<64x32xf32>
    %66 = arith.truncf %65 : vector<64x32xf32> to vector<64x32xbf16>
    %c0_77 = arith.constant 0 : index
    %c64 = arith.constant 64 : index
    %67 = vector.load %arg14[%c0_77, %c64] : memref<64x288xbf16, #tpu.memory_space<vmem>>, vector<64x32xbf16>
    tpu.vector_store %arg14[%c0_77, %c64], %66 {strides = array<i32>} : memref<64x288xbf16, #tpu.memory_space<vmem>>, vector<64x32xbf16>,
    %c1_78 = arith.constant 1 : index
    %c0_79 = arith.constant 0 : index
    %c0_80 = arith.constant 0 : index
    %68 = vector.load %arg13[%c1_78, %c0_79, %c0_80] : memref<10x10x32xf32, #tpu.memory_space<vmem>>, vector<8x8x32xf32>
    %69 = vector.shape_cast %68 : vector<8x8x32xf32> to vector<64x32xf32>
    %70 = arith.truncf %69 : vector<64x32xf32> to vector<64x32xbf16>
    %c0_81 = arith.constant 0 : index
    %c96_82 = arith.constant 96 : index
    %71 = vector.load %arg14[%c0_81, %c96_82] : memref<64x288xbf16, #tpu.memory_space<vmem>>, vector<64x32xbf16>
    tpu.vector_store %arg14[%c0_81, %c96_82], %70 {strides = array<i32>} : memref<64x288xbf16, #tpu.memory_space<vmem>>, vector<64x32xbf16>,
    %c1_83 = arith.constant 1 : index
    %c1_84 = arith.constant 1 : index
    %c0_85 = arith.constant 0 : index
    %72 = vector.load %arg13[%c1_83, %c1_84, %c0_85] : memref<10x10x32xf32, #tpu.memory_space<vmem>>, vector<8x8x32xf32>
    %73 = vector.shape_cast %72 : vector<8x8x32xf32> to vector<64x32xf32>
    %74 = arith.truncf %73 : vector<64x32xf32> to vector<64x32xbf16>
    %c0_86 = arith.constant 0 : index
    %c128 = arith.constant 128 : index
    %75 = vector.load %arg14[%c0_86, %c128] : memref<64x288xbf16, #tpu.memory_space<vmem>>, vector<64x32xbf16>
    tpu.vector_store %arg14[%c0_86, %c128], %74 {strides = array<i32>} : memref<64x288xbf16, #tpu.memory_space<vmem>>, vector<64x32xbf16>,
    %c1_87 = arith.constant 1 : index
    %c2_88 = arith.constant 2 : index
    %c0_89 = arith.constant 0 : index
    %76 = vector.load %arg13[%c1_87, %c2_88, %c0_89] : memref<10x10x32xf32, #tpu.memory_space<vmem>>, vector<8x8x32xf32>
    %77 = vector.shape_cast %76 : vector<8x8x32xf32> to vector<64x32xf32>
    %78 = arith.truncf %77 : vector<64x32xf32> to vector<64x32xbf16>
    %c0_90 = arith.constant 0 : index
    %c160 = arith.constant 160 : index
    %79 = vector.load %arg14[%c0_90, %c160] : memref<64x288xbf16, #tpu.memory_space<vmem>>, vector<64x32xbf16>
    tpu.vector_store %arg14[%c0_90, %c160], %78 {strides = array<i32>} : memref<64x288xbf16, #tpu.memory_space<vmem>>, vector<64x32xbf16>,
    %c2_91 = arith.constant 2 : index
    %c0_92 = arith.constant 0 : index
    %c0_93 = arith.constant 0 : index
    %80 = vector.load %arg13[%c2_91, %c0_92, %c0_93] : memref<10x10x32xf32, #tpu.memory_space<vmem>>, vector<8x8x32xf32>
    %81 = vector.shape_cast %80 : vector<8x8x32xf32> to vector<64x32xf32>
    %82 = arith.truncf %81 : vector<64x32xf32> to vector<64x32xbf16>
    %c0_94 = arith.constant 0 : index
    %c192 = arith.constant 192 : index
    %83 = vector.load %arg14[%c0_94, %c192] : memref<64x288xbf16, #tpu.memory_space<vmem>>, vector<64x32xbf16>
    tpu.vector_store %arg14[%c0_94, %c192], %82 {strides = array<i32>} : memref<64x288xbf16, #tpu.memory_space<vmem>>, vector<64x32xbf16>,
    %c2_95 = arith.constant 2 : index
    %c1_96 = arith.constant 1 : index
    %c0_97 = arith.constant 0 : index
    %84 = vector.load %arg13[%c2_95, %c1_96, %c0_97] : memref<10x10x32xf32, #tpu.memory_space<vmem>>, vector<8x8x32xf32>
    %85 = vector.shape_cast %84 : vector<8x8x32xf32> to vector<64x32xf32>
    %86 = arith.truncf %85 : vector<64x32xf32> to vector<64x32xbf16>
    %c0_98 = arith.constant 0 : index
    %c224 = arith.constant 224 : index
    %87 = vector.load %arg14[%c0_98, %c224] : memref<64x288xbf16, #tpu.memory_space<vmem>>, vector<64x32xbf16>
    tpu.vector_store %arg14[%c0_98, %c224], %86 {strides = array<i32>} : memref<64x288xbf16, #tpu.memory_space<vmem>>, vector<64x32xbf16>,
    %c2_99 = arith.constant 2 : index
    %c2_100 = arith.constant 2 : index
    %c0_101 = arith.constant 0 : index
    %88 = vector.load %arg13[%c2_99, %c2_100, %c0_101] : memref<10x10x32xf32, #tpu.memory_space<vmem>>, vector<8x8x32xf32>
    %89 = vector.shape_cast %88 : vector<8x8x32xf32> to vector<64x32xf32>
    %90 = arith.truncf %89 : vector<64x32xf32> to vector<64x32xbf16>
    %c0_102 = arith.constant 0 : index
    %c256 = arith.constant 256 : index
    %91 = vector.load %arg14[%c0_102, %c256] : memref<64x288xbf16, #tpu.memory_space<vmem>>, vector<64x32xbf16>
    tpu.vector_store %arg14[%c0_102, %c256], %90 {strides = array<i32>} : memref<64x288xbf16, #tpu.memory_space<vmem>>, vector<64x32xbf16>,
    %c0_103 = arith.constant 0 : index
    %c0_104 = arith.constant 0 : index
    %92 = vector.load %arg14[%c0_103, %c0_104] : memref<64x288xbf16, #tpu.memory_space<vmem>>, vector<64x288xbf16>
    %cst_105 = arith.constant dense<0.000000e+00> : vector<64x32xf32>
    %93 = tpu.matmul %92, %51, %cst_105 {dimension_numbers = #tpu.dot_dimension_numbers<[1], [0], [0], [1], [0, 0, 1, 1], [], []>} : vector<64x288xbf16>, vector<288x32xbf16>, vector<64x32xf32> -> vector<64x32xf32>
    %94 = vector.broadcast %53 : vector<1x32xf32> to vector<64x32xf32>
    %95 = arith.addf %93, %94 : vector<64x32xf32>
    %cst_106 = arith.constant 0.000000e+00 : f32
    %96 = vector.broadcast %cst_106 : f32 to vector<64x32xf32>
    %97 = arith.maximumf %95, %96 : vector<64x32xf32>
    %c0_107 = arith.constant 0 : index
    %c1_108 = arith.constant 1 : index
    %c0_109 = arith.constant 0 : index
    %c0_110 = arith.constant 0 : index
    %98 = vector.load %arg4[%c0_107, %c1_108, %c0_109, %c0_110] : memref<2x2x288x32xbf16, #tpu.memory_space<vmem>>, vector<1x1x288x32xbf16>
    %99 = vector.shape_cast %98 : vector<1x1x288x32xbf16> to vector<288x32xbf16>
    %c0_111 = arith.constant 0 : index
    %c1_112 = arith.constant 1 : index
    %c0_113 = arith.constant 0 : index
    %c0_114 = arith.constant 0 : index
    %100 = vector.load %arg5[%c0_111, %c1_112, %c0_113, %c0_114] : memref<2x2x1x32xf32, #tpu.memory_space<vmem>>, vector<1x1x1x32xf32>
    %101 = vector.shape_cast %100 : vector<1x1x1x32xf32> to vector<1x32xf32>
    %102 = vector.shape_cast %97 : vector<64x32xf32> to vector<8x8x32xf32>
    %c1_115 = arith.constant 1 : index
    %c1_116 = arith.constant 1 : index
    %c0_117 = arith.constant 0 : index
    %103 = vector.load %arg13[%c1_115, %c1_116, %c0_117] : memref<10x10x32xf32, #tpu.memory_space<vmem>>, vector<8x8x32xf32>
    tpu.vector_store %arg13[%c1_115, %c1_116, %c0_117], %102 {strides = array<i32>} : memref<10x10x32xf32, #tpu.memory_space<vmem>>, vector<8x8x32xf32>,
    %c0_118 = arith.constant 0 : index
    %c0_119 = arith.constant 0 : index
    %c0_120 = arith.constant 0 : index
    %104 = vector.load %arg13[%c0_118, %c0_119, %c0_120] : memref<10x10x32xf32, #tpu.memory_space<vmem>>, vector<8x8x32xf32>
    %105 = vector.shape_cast %104 : vector<8x8x32xf32> to vector<64x32xf32>
    %106 = arith.truncf %105 : vector<64x32xf32> to vector<64x32xbf16>
    %c0_121 = arith.constant 0 : index
    %c0_122 = arith.constant 0 : index
    %107 = vector.load %arg14[%c0_121, %c0_122] : memref<64x288xbf16, #tpu.memory_space<vmem>>, vector<64x32xbf16>
    tpu.vector_store %arg14[%c0_121, %c0_122], %106 {strides = array<i32>} : memref<64x288xbf16, #tpu.memory_space<vmem>>, vector<64x32xbf16>,
    %c0_123 = arith.constant 0 : index
    %c1_124 = arith.constant 1 : index
    %c0_125 = arith.constant 0 : index
    %108 = vector.load %arg13[%c0_123, %c1_124, %c0_125] : memref<10x10x32xf32, #tpu.memory_space<vmem>>, vector<8x8x32xf32>
    %109 = vector.shape_cast %108 : vector<8x8x32xf32> to vector<64x32xf32>
    %110 = arith.truncf %109 : vector<64x32xf32> to vector<64x32xbf16>
    %c0_126 = arith.constant 0 : index
    %c32_127 = arith.constant 32 : index
    %111 = vector.load %arg14[%c0_126, %c32_127] : memref<64x288xbf16, #tpu.memory_space<vmem>>, vector<64x32xbf16>
    tpu.vector_store %arg14[%c0_126, %c32_127], %110 {strides = array<i32>} : memref<64x288xbf16, #tpu.memory_space<vmem>>, vector<64x32xbf16>,
    %c0_128 = arith.constant 0 : index
    %c2_129 = arith.constant 2 : index
    %c0_130 = arith.constant 0 : index
    %112 = vector.load %arg13[%c0_128, %c2_129, %c0_130] : memref<10x10x32xf32, #tpu.memory_space<vmem>>, vector<8x8x32xf32>
    %113 = vector.shape_cast %112 : vector<8x8x32xf32> to vector<64x32xf32>
    %114 = arith.truncf %113 : vector<64x32xf32> to vector<64x32xbf16>
    %c0_131 = arith.constant 0 : index
    %c64_132 = arith.constant 64 : index
    %115 = vector.load %arg14[%c0_131, %c64_132] : memref<64x288xbf16, #tpu.memory_space<vmem>>, vector<64x32xbf16>
    tpu.vector_store %arg14[%c0_131, %c64_132], %114 {strides = array<i32>} : memref<64x288xbf16, #tpu.memory_space<vmem>>, vector<64x32xbf16>,
    %c1_133 = arith.constant 1 : index
    %c0_134 = arith.constant 0 : index
    %c0_135 = arith.constant 0 : index
    %116 = vector.load %arg13[%c1_133, %c0_134, %c0_135] : memref<10x10x32xf32, #tpu.memory_space<vmem>>, vector<8x8x32xf32>
    %117 = vector.shape_cast %116 : vector<8x8x32xf32> to vector<64x32xf32>
    %118 = arith.truncf %117 : vector<64x32xf32> to vector<64x32xbf16>
    %c0_136 = arith.constant 0 : index
    %c96_137 = arith.constant 96 : index
    %119 = vector.load %arg14[%c0_136, %c96_137] : memref<64x288xbf16, #tpu.memory_space<vmem>>, vector<64x32xbf16>
    tpu.vector_store %arg14[%c0_136, %c96_137], %118 {strides = array<i32>} : memref<64x288xbf16, #tpu.memory_space<vmem>>, vector<64x32xbf16>,
    %c1_138 = arith.constant 1 : index
    %c1_139 = arith.constant 1 : index
    %c0_140 = arith.constant 0 : index
    %120 = vector.load %arg13[%c1_138, %c1_139, %c0_140] : memref<10x10x32xf32, #tpu.memory_space<vmem>>, vector<8x8x32xf32>
    %121 = vector.shape_cast %120 : vector<8x8x32xf32> to vector<64x32xf32>
    %122 = arith.truncf %121 : vector<64x32xf32> to vector<64x32xbf16>
    %c0_141 = arith.constant 0 : index
    %c128_142 = arith.constant 128 : index
    %123 = vector.load %arg14[%c0_141, %c128_142] : memref<64x288xbf16, #tpu.memory_space<vmem>>, vector<64x32xbf16>
    tpu.vector_store %arg14[%c0_141, %c128_142], %122 {strides = array<i32>} : memref<64x288xbf16, #tpu.memory_space<vmem>>, vector<64x32xbf16>,
    %c1_143 = arith.constant 1 : index
    %c2_144 = arith.constant 2 : index
    %c0_145 = arith.constant 0 : index
    %124 = vector.load %arg13[%c1_143, %c2_144, %c0_145] : memref<10x10x32xf32, #tpu.memory_space<vmem>>, vector<8x8x32xf32>
    %125 = vector.shape_cast %124 : vector<8x8x32xf32> to vector<64x32xf32>
    %126 = arith.truncf %125 : vector<64x32xf32> to vector<64x32xbf16>
    %c0_146 = arith.constant 0 : index
    %c160_147 = arith.constant 160 : index
    %127 = vector.load %arg14[%c0_146, %c160_147] : memref<64x288xbf16, #tpu.memory_space<vmem>>, vector<64x32xbf16>
    tpu.vector_store %arg14[%c0_146, %c160_147], %126 {strides = array<i32>} : memref<64x288xbf16, #tpu.memory_space<vmem>>, vector<64x32xbf16>,
    %c2_148 = arith.constant 2 : index
    %c0_149 = arith.constant 0 : index
    %c0_150 = arith.constant 0 : index
    %128 = vector.load %arg13[%c2_148, %c0_149, %c0_150] : memref<10x10x32xf32, #tpu.memory_space<vmem>>, vector<8x8x32xf32>
    %129 = vector.shape_cast %128 : vector<8x8x32xf32> to vector<64x32xf32>
    %130 = arith.truncf %129 : vector<64x32xf32> to vector<64x32xbf16>
    %c0_151 = arith.constant 0 : index
    %c192_152 = arith.constant 192 : index
    %131 = vector.load %arg14[%c0_151, %c192_152] : memref<64x288xbf16, #tpu.memory_space<vmem>>, vector<64x32xbf16>
    tpu.vector_store %arg14[%c0_151, %c192_152], %130 {strides = array<i32>} : memref<64x288xbf16, #tpu.memory_space<vmem>>, vector<64x32xbf16>,
    %c2_153 = arith.constant 2 : index
    %c1_154 = arith.constant 1 : index
    %c0_155 = arith.constant 0 : index
    %132 = vector.load %arg13[%c2_153, %c1_154, %c0_155] : memref<10x10x32xf32, #tpu.memory_space<vmem>>, vector<8x8x32xf32>
    %133 = vector.shape_cast %132 : vector<8x8x32xf32> to vector<64x32xf32>
    %134 = arith.truncf %133 : vector<64x32xf32> to vector<64x32xbf16>
    %c0_156 = arith.constant 0 : index
    %c224_157 = arith.constant 224 : index
    %135 = vector.load %arg14[%c0_156, %c224_157] : memref<64x288xbf16, #tpu.memory_space<vmem>>, vector<64x32xbf16>
    tpu.vector_store %arg14[%c0_156, %c224_157], %134 {strides = array<i32>} : memref<64x288xbf16, #tpu.memory_space<vmem>>, vector<64x32xbf16>,
    %c2_158 = arith.constant 2 : index
    %c2_159 = arith.constant 2 : index
    %c0_160 = arith.constant 0 : index
    %136 = vector.load %arg13[%c2_158, %c2_159, %c0_160] : memref<10x10x32xf32, #tpu.memory_space<vmem>>, vector<8x8x32xf32>
    %137 = vector.shape_cast %136 : vector<8x8x32xf32> to vector<64x32xf32>
    %138 = arith.truncf %137 : vector<64x32xf32> to vector<64x32xbf16>
    %c0_161 = arith.constant 0 : index
    %c256_162 = arith.constant 256 : index
    %139 = vector.load %arg14[%c0_161, %c256_162] : memref<64x288xbf16, #tpu.memory_space<vmem>>, vector<64x32xbf16>
    tpu.vector_store %arg14[%c0_161, %c256_162], %138 {strides = array<i32>} : memref<64x288xbf16, #tpu.memory_space<vmem>>, vector<64x32xbf16>,
    %c0_163 = arith.constant 0 : index
    %c0_164 = arith.constant 0 : index
    %140 = vector.load %arg14[%c0_163, %c0_164] : memref<64x288xbf16, #tpu.memory_space<vmem>>, vector<64x288xbf16>
    %cst_165 = arith.constant dense<0.000000e+00> : vector<64x32xf32>
    %141 = tpu.matmul %140, %99, %cst_165 {dimension_numbers = #tpu.dot_dimension_numbers<[1], [0], [0], [1], [0, 0, 1, 1], [], []>} : vector<64x288xbf16>, vector<288x32xbf16>, vector<64x32xf32> -> vector<64x32xf32>
    %142 = vector.broadcast %101 : vector<1x32xf32> to vector<64x32xf32>
    %143 = arith.addf %141, %142 : vector<64x32xf32>
    %144 = arith.addf %143, %49 : vector<64x32xf32>
    %c1_166 = arith.constant 1 : index
    %c0_167 = arith.constant 0 : index
    %c0_168 = arith.constant 0 : index
    %c0_169 = arith.constant 0 : index
    %145 = vector.load %arg4[%c1_166, %c0_167, %c0_168, %c0_169] : memref<2x2x288x32xbf16, #tpu.memory_space<vmem>>, vector<1x1x288x32xbf16>
    %146 = vector.shape_cast %145 : vector<1x1x288x32xbf16> to vector<288x32xbf16>
    %c1_170 = arith.constant 1 : index
    %c0_171 = arith.constant 0 : index
    %c0_172 = arith.constant 0 : index
    %c0_173 = arith.constant 0 : index
    %147 = vector.load %arg5[%c1_170, %c0_171, %c0_172, %c0_173] : memref<2x2x1x32xf32, #tpu.memory_space<vmem>>, vector<1x1x1x32xf32>
    %148 = vector.shape_cast %147 : vector<1x1x1x32xf32> to vector<1x32xf32>
    %149 = vector.shape_cast %144 : vector<64x32xf32> to vector<8x8x32xf32>
    %c1_174 = arith.constant 1 : index
    %c1_175 = arith.constant 1 : index
    %c0_176 = arith.constant 0 : index
    %150 = vector.load %arg13[%c1_174, %c1_175, %c0_176] : memref<10x10x32xf32, #tpu.memory_space<vmem>>, vector<8x8x32xf32>
    tpu.vector_store %arg13[%c1_174, %c1_175, %c0_176], %149 {strides = array<i32>} : memref<10x10x32xf32, #tpu.memory_space<vmem>>, vector<8x8x32xf32>,
    %c0_177 = arith.constant 0 : index
    %c0_178 = arith.constant 0 : index
    %c0_179 = arith.constant 0 : index
    %151 = vector.load %arg13[%c0_177, %c0_178, %c0_179] : memref<10x10x32xf32, #tpu.memory_space<vmem>>, vector<8x8x32xf32>
    %152 = vector.shape_cast %151 : vector<8x8x32xf32> to vector<64x32xf32>
    %153 = arith.truncf %152 : vector<64x32xf32> to vector<64x32xbf16>
    %c0_180 = arith.constant 0 : index
    %c0_181 = arith.constant 0 : index
    %154 = vector.load %arg14[%c0_180, %c0_181] : memref<64x288xbf16, #tpu.memory_space<vmem>>, vector<64x32xbf16>
    tpu.vector_store %arg14[%c0_180, %c0_181], %153 {strides = array<i32>} : memref<64x288xbf16, #tpu.memory_space<vmem>>, vector<64x32xbf16>,
    %c0_182 = arith.constant 0 : index
    %c1_183 = arith.constant 1 : index
    %c0_184 = arith.constant 0 : index
    %155 = vector.load %arg13[%c0_182, %c1_183, %c0_184] : memref<10x10x32xf32, #tpu.memory_space<vmem>>, vector<8x8x32xf32>
    %156 = vector.shape_cast %155 : vector<8x8x32xf32> to vector<64x32xf32>
    %157 = arith.truncf %156 : vector<64x32xf32> to vector<64x32xbf16>
    %c0_185 = arith.constant 0 : index
    %c32_186 = arith.constant 32 : index
    %158 = vector.load %arg14[%c0_185, %c32_186] : memref<64x288xbf16, #tpu.memory_space<vmem>>, vector<64x32xbf16>
    tpu.vector_store %arg14[%c0_185, %c32_186], %157 {strides = array<i32>} : memref<64x288xbf16, #tpu.memory_space<vmem>>, vector<64x32xbf16>,
    %c0_187 = arith.constant 0 : index
    %c2_188 = arith.constant 2 : index
    %c0_189 = arith.constant 0 : index
    %159 = vector.load %arg13[%c0_187, %c2_188, %c0_189] : memref<10x10x32xf32, #tpu.memory_space<vmem>>, vector<8x8x32xf32>
    %160 = vector.shape_cast %159 : vector<8x8x32xf32> to vector<64x32xf32>
    %161 = arith.truncf %160 : vector<64x32xf32> to vector<64x32xbf16>
    %c0_190 = arith.constant 0 : index
    %c64_191 = arith.constant 64 : index
    %162 = vector.load %arg14[%c0_190, %c64_191] : memref<64x288xbf16, #tpu.memory_space<vmem>>, vector<64x32xbf16>
    tpu.vector_store %arg14[%c0_190, %c64_191], %161 {strides = array<i32>} : memref<64x288xbf16, #tpu.memory_space<vmem>>, vector<64x32xbf16>,
    %c1_192 = arith.constant 1 : index
    %c0_193 = arith.constant 0 : index
    %c0_194 = arith.constant 0 : index
    %163 = vector.load %arg13[%c1_192, %c0_193, %c0_194] : memref<10x10x32xf32, #tpu.memory_space<vmem>>, vector<8x8x32xf32>
    %164 = vector.shape_cast %163 : vector<8x8x32xf32> to vector<64x32xf32>
    %165 = arith.truncf %164 : vector<64x32xf32> to vector<64x32xbf16>
    %c0_195 = arith.constant 0 : index
    %c96_196 = arith.constant 96 : index
    %166 = vector.load %arg14[%c0_195, %c96_196] : memref<64x288xbf16, #tpu.memory_space<vmem>>, vector<64x32xbf16>
    tpu.vector_store %arg14[%c0_195, %c96_196], %165 {strides = array<i32>} : memref<64x288xbf16, #tpu.memory_space<vmem>>, vector<64x32xbf16>,
    %c1_197 = arith.constant 1 : index
    %c1_198 = arith.constant 1 : index
    %c0_199 = arith.constant 0 : index
    %167 = vector.load %arg13[%c1_197, %c1_198, %c0_199] : memref<10x10x32xf32, #tpu.memory_space<vmem>>, vector<8x8x32xf32>
    %168 = vector.shape_cast %167 : vector<8x8x32xf32> to vector<64x32xf32>
    %169 = arith.truncf %168 : vector<64x32xf32> to vector<64x32xbf16>
    %c0_200 = arith.constant 0 : index
    %c128_201 = arith.constant 128 : index
    %170 = vector.load %arg14[%c0_200, %c128_201] : memref<64x288xbf16, #tpu.memory_space<vmem>>, vector<64x32xbf16>
    tpu.vector_store %arg14[%c0_200, %c128_201], %169 {strides = array<i32>} : memref<64x288xbf16, #tpu.memory_space<vmem>>, vector<64x32xbf16>,
    %c1_202 = arith.constant 1 : index
    %c2_203 = arith.constant 2 : index
    %c0_204 = arith.constant 0 : index
    %171 = vector.load %arg13[%c1_202, %c2_203, %c0_204] : memref<10x10x32xf32, #tpu.memory_space<vmem>>, vector<8x8x32xf32>
    %172 = vector.shape_cast %171 : vector<8x8x32xf32> to vector<64x32xf32>
    %173 = arith.truncf %172 : vector<64x32xf32> to vector<64x32xbf16>
    %c0_205 = arith.constant 0 : index
    %c160_206 = arith.constant 160 : index
    %174 = vector.load %arg14[%c0_205, %c160_206] : memref<64x288xbf16, #tpu.memory_space<vmem>>, vector<64x32xbf16>
    tpu.vector_store %arg14[%c0_205, %c160_206], %173 {strides = array<i32>} : memref<64x288xbf16, #tpu.memory_space<vmem>>, vector<64x32xbf16>,
    %c2_207 = arith.constant 2 : index
    %c0_208 = arith.constant 0 : index
    %c0_209 = arith.constant 0 : index
    %175 = vector.load %arg13[%c2_207, %c0_208, %c0_209] : memref<10x10x32xf32, #tpu.memory_space<vmem>>, vector<8x8x32xf32>
    %176 = vector.shape_cast %175 : vector<8x8x32xf32> to vector<64x32xf32>
    %177 = arith.truncf %176 : vector<64x32xf32> to vector<64x32xbf16>
    %c0_210 = arith.constant 0 : index
    %c192_211 = arith.constant 192 : index
    %178 = vector.load %arg14[%c0_210, %c192_211] : memref<64x288xbf16, #tpu.memory_space<vmem>>, vector<64x32xbf16>
    tpu.vector_store %arg14[%c0_210, %c192_211], %177 {strides = array<i32>} : memref<64x288xbf16, #tpu.memory_space<vmem>>, vector<64x32xbf16>,
    %c2_212 = arith.constant 2 : index
    %c1_213 = arith.constant 1 : index
    %c0_214 = arith.constant 0 : index
    %179 = vector.load %arg13[%c2_212, %c1_213, %c0_214] : memref<10x10x32xf32, #tpu.memory_space<vmem>>, vector<8x8x32xf32>
    %180 = vector.shape_cast %179 : vector<8x8x32xf32> to vector<64x32xf32>
    %181 = arith.truncf %180 : vector<64x32xf32> to vector<64x32xbf16>
    %c0_215 = arith.constant 0 : index
    %c224_216 = arith.constant 224 : index
    %182 = vector.load %arg14[%c0_215, %c224_216] : memref<64x288xbf16, #tpu.memory_space<vmem>>, vector<64x32xbf16>
    tpu.vector_store %arg14[%c0_215, %c224_216], %181 {strides = array<i32>} : memref<64x288xbf16, #tpu.memory_space<vmem>>, vector<64x32xbf16>,
    %c2_217 = arith.constant 2 : index
    %c2_218 = arith.constant 2 : index
    %c0_219 = arith.constant 0 : index
    %183 = vector.load %arg13[%c2_217, %c2_218, %c0_219] : memref<10x10x32xf32, #tpu.memory_space<vmem>>, vector<8x8x32xf32>
    %184 = vector.shape_cast %183 : vector<8x8x32xf32> to vector<64x32xf32>
    %185 = arith.truncf %184 : vector<64x32xf32> to vector<64x32xbf16>
    %c0_220 = arith.constant 0 : index
    %c256_221 = arith.constant 256 : index
    %186 = vector.load %arg14[%c0_220, %c256_221] : memref<64x288xbf16, #tpu.memory_space<vmem>>, vector<64x32xbf16>
    tpu.vector_store %arg14[%c0_220, %c256_221], %185 {strides = array<i32>} : memref<64x288xbf16, #tpu.memory_space<vmem>>, vector<64x32xbf16>,
    %c0_222 = arith.constant 0 : index
    %c0_223 = arith.constant 0 : index
    %187 = vector.load %arg14[%c0_222, %c0_223] : memref<64x288xbf16, #tpu.memory_space<vmem>>, vector<64x288xbf16>
    %cst_224 = arith.constant dense<0.000000e+00> : vector<64x32xf32>
    %188 = tpu.matmul %187, %146, %cst_224 {dimension_numbers = #tpu.dot_dimension_numbers<[1], [0], [0], [1], [0, 0, 1, 1], [], []>} : vector<64x288xbf16>, vector<288x32xbf16>, vector<64x32xf32> -> vector<64x32xf32>
    %189 = vector.broadcast %148 : vector<1x32xf32> to vector<64x32xf32>
    %190 = arith.addf %188, %189 : vector<64x32xf32>
    %cst_225 = arith.constant 0.000000e+00 : f32
    %191 = vector.broadcast %cst_225 : f32 to vector<64x32xf32>
    %192 = arith.maximumf %190, %191 : vector<64x32xf32>
    %c1_226 = arith.constant 1 : index
    %c1_227 = arith.constant 1 : index
    %c0_228 = arith.constant 0 : index
    %c0_229 = arith.constant 0 : index
    %193 = vector.load %arg4[%c1_226, %c1_227, %c0_228, %c0_229] : memref<2x2x288x32xbf16, #tpu.memory_space<vmem>>, vector<1x1x288x32xbf16>
    %194 = vector.shape_cast %193 : vector<1x1x288x32xbf16> to vector<288x32xbf16>
    %c1_230 = arith.constant 1 : index
    %c1_231 = arith.constant 1 : index
    %c0_232 = arith.constant 0 : index
    %c0_233 = arith.constant 0 : index
    %195 = vector.load %arg5[%c1_230, %c1_231, %c0_232, %c0_233] : memref<2x2x1x32xf32, #tpu.memory_space<vmem>>, vector<1x1x1x32xf32>
    %196 = vector.shape_cast %195 : vector<1x1x1x32xf32> to vector<1x32xf32>
    %197 = vector.shape_cast %192 : vector<64x32xf32> to vector<8x8x32xf32>
    %c1_234 = arith.constant 1 : index
    %c1_235 = arith.constant 1 : index
    %c0_236 = arith.constant 0 : index
    %198 = vector.load %arg13[%c1_234, %c1_235, %c0_236] : memref<10x10x32xf32, #tpu.memory_space<vmem>>, vector<8x8x32xf32>
    tpu.vector_store %arg13[%c1_234, %c1_235, %c0_236], %197 {strides = array<i32>} : memref<10x10x32xf32, #tpu.memory_space<vmem>>, vector<8x8x32xf32>,
    %c0_237 = arith.constant 0 : index
    %c0_238 = arith.constant 0 : index
    %c0_239 = arith.constant 0 : index
    %199 = vector.load %arg13[%c0_237, %c0_238, %c0_239] : memref<10x10x32xf32, #tpu.memory_space<vmem>>, vector<8x8x32xf32>
    %200 = vector.shape_cast %199 : vector<8x8x32xf32> to vector<64x32xf32>
    %201 = arith.truncf %200 : vector<64x32xf32> to vector<64x32xbf16>
    %c0_240 = arith.constant 0 : index
    %c0_241 = arith.constant 0 : index
    %202 = vector.load %arg14[%c0_240, %c0_241] : memref<64x288xbf16, #tpu.memory_space<vmem>>, vector<64x32xbf16>
    tpu.vector_store %arg14[%c0_240, %c0_241], %201 {strides = array<i32>} : memref<64x288xbf16, #tpu.memory_space<vmem>>, vector<64x32xbf16>,
    %c0_242 = arith.constant 0 : index
    %c1_243 = arith.constant 1 : index
    %c0_244 = arith.constant 0 : index
    %203 = vector.load %arg13[%c0_242, %c1_243, %c0_244] : memref<10x10x32xf32, #tpu.memory_space<vmem>>, vector<8x8x32xf32>
    %204 = vector.shape_cast %203 : vector<8x8x32xf32> to vector<64x32xf32>
    %205 = arith.truncf %204 : vector<64x32xf32> to vector<64x32xbf16>
    %c0_245 = arith.constant 0 : index
    %c32_246 = arith.constant 32 : index
    %206 = vector.load %arg14[%c0_245, %c32_246] : memref<64x288xbf16, #tpu.memory_space<vmem>>, vector<64x32xbf16>
    tpu.vector_store %arg14[%c0_245, %c32_246], %205 {strides = array<i32>} : memref<64x288xbf16, #tpu.memory_space<vmem>>, vector<64x32xbf16>,
    %c0_247 = arith.constant 0 : index
    %c2_248 = arith.constant 2 : index
    %c0_249 = arith.constant 0 : index
    %207 = vector.load %arg13[%c0_247, %c2_248, %c0_249] : memref<10x10x32xf32, #tpu.memory_space<vmem>>, vector<8x8x32xf32>
    %208 = vector.shape_cast %207 : vector<8x8x32xf32> to vector<64x32xf32>
    %209 = arith.truncf %208 : vector<64x32xf32> to vector<64x32xbf16>
    %c0_250 = arith.constant 0 : index
    %c64_251 = arith.constant 64 : index
    %210 = vector.load %arg14[%c0_250, %c64_251] : memref<64x288xbf16, #tpu.memory_space<vmem>>, vector<64x32xbf16>
    tpu.vector_store %arg14[%c0_250, %c64_251], %209 {strides = array<i32>} : memref<64x288xbf16, #tpu.memory_space<vmem>>, vector<64x32xbf16>,
    %c1_252 = arith.constant 1 : index
    %c0_253 = arith.constant 0 : index
    %c0_254 = arith.constant 0 : index
    %211 = vector.load %arg13[%c1_252, %c0_253, %c0_254] : memref<10x10x32xf32, #tpu.memory_space<vmem>>, vector<8x8x32xf32>
    %212 = vector.shape_cast %211 : vector<8x8x32xf32> to vector<64x32xf32>
    %213 = arith.truncf %212 : vector<64x32xf32> to vector<64x32xbf16>
    %c0_255 = arith.constant 0 : index
    %c96_256 = arith.constant 96 : index
    %214 = vector.load %arg14[%c0_255, %c96_256] : memref<64x288xbf16, #tpu.memory_space<vmem>>, vector<64x32xbf16>
    tpu.vector_store %arg14[%c0_255, %c96_256], %213 {strides = array<i32>} : memref<64x288xbf16, #tpu.memory_space<vmem>>, vector<64x32xbf16>,
    %c1_257 = arith.constant 1 : index
    %c1_258 = arith.constant 1 : index
    %c0_259 = arith.constant 0 : index
    %215 = vector.load %arg13[%c1_257, %c1_258, %c0_259] : memref<10x10x32xf32, #tpu.memory_space<vmem>>, vector<8x8x32xf32>
    %216 = vector.shape_cast %215 : vector<8x8x32xf32> to vector<64x32xf32>
    %217 = arith.truncf %216 : vector<64x32xf32> to vector<64x32xbf16>
    %c0_260 = arith.constant 0 : index
    %c128_261 = arith.constant 128 : index
    %218 = vector.load %arg14[%c0_260, %c128_261] : memref<64x288xbf16, #tpu.memory_space<vmem>>, vector<64x32xbf16>
    tpu.vector_store %arg14[%c0_260, %c128_261], %217 {strides = array<i32>} : memref<64x288xbf16, #tpu.memory_space<vmem>>, vector<64x32xbf16>,
    %c1_262 = arith.constant 1 : index
    %c2_263 = arith.constant 2 : index
    %c0_264 = arith.constant 0 : index
    %219 = vector.load %arg13[%c1_262, %c2_263, %c0_264] : memref<10x10x32xf32, #tpu.memory_space<vmem>>, vector<8x8x32xf32>
    %220 = vector.shape_cast %219 : vector<8x8x32xf32> to vector<64x32xf32>
    %221 = arith.truncf %220 : vector<64x32xf32> to vector<64x32xbf16>
    %c0_265 = arith.constant 0 : index
    %c160_266 = arith.constant 160 : index
    %222 = vector.load %arg14[%c0_265, %c160_266] : memref<64x288xbf16, #tpu.memory_space<vmem>>, vector<64x32xbf16>
    tpu.vector_store %arg14[%c0_265, %c160_266], %221 {strides = array<i32>} : memref<64x288xbf16, #tpu.memory_space<vmem>>, vector<64x32xbf16>,
    %c2_267 = arith.constant 2 : index
    %c0_268 = arith.constant 0 : index
    %c0_269 = arith.constant 0 : index
    %223 = vector.load %arg13[%c2_267, %c0_268, %c0_269] : memref<10x10x32xf32, #tpu.memory_space<vmem>>, vector<8x8x32xf32>
    %224 = vector.shape_cast %223 : vector<8x8x32xf32> to vector<64x32xf32>
    %225 = arith.truncf %224 : vector<64x32xf32> to vector<64x32xbf16>
    %c0_270 = arith.constant 0 : index
    %c192_271 = arith.constant 192 : index
    %226 = vector.load %arg14[%c0_270, %c192_271] : memref<64x288xbf16, #tpu.memory_space<vmem>>, vector<64x32xbf16>
    tpu.vector_store %arg14[%c0_270, %c192_271], %225 {strides = array<i32>} : memref<64x288xbf16, #tpu.memory_space<vmem>>, vector<64x32xbf16>,
    %c2_272 = arith.constant 2 : index
    %c1_273 = arith.constant 1 : index
    %c0_274 = arith.constant 0 : index
    %227 = vector.load %arg13[%c2_272, %c1_273, %c0_274] : memref<10x10x32xf32, #tpu.memory_space<vmem>>, vector<8x8x32xf32>
    %228 = vector.shape_cast %227 : vector<8x8x32xf32> to vector<64x32xf32>
    %229 = arith.truncf %228 : vector<64x32xf32> to vector<64x32xbf16>
    %c0_275 = arith.constant 0 : index
    %c224_276 = arith.constant 224 : index
    %230 = vector.load %arg14[%c0_275, %c224_276] : memref<64x288xbf16, #tpu.memory_space<vmem>>, vector<64x32xbf16>
    tpu.vector_store %arg14[%c0_275, %c224_276], %229 {strides = array<i32>} : memref<64x288xbf16, #tpu.memory_space<vmem>>, vector<64x32xbf16>,
    %c2_277 = arith.constant 2 : index
    %c2_278 = arith.constant 2 : index
    %c0_279 = arith.constant 0 : index
    %231 = vector.load %arg13[%c2_277, %c2_278, %c0_279] : memref<10x10x32xf32, #tpu.memory_space<vmem>>, vector<8x8x32xf32>
    %232 = vector.shape_cast %231 : vector<8x8x32xf32> to vector<64x32xf32>
    %233 = arith.truncf %232 : vector<64x32xf32> to vector<64x32xbf16>
    %c0_280 = arith.constant 0 : index
    %c256_281 = arith.constant 256 : index
    %234 = vector.load %arg14[%c0_280, %c256_281] : memref<64x288xbf16, #tpu.memory_space<vmem>>, vector<64x32xbf16>
    tpu.vector_store %arg14[%c0_280, %c256_281], %233 {strides = array<i32>} : memref<64x288xbf16, #tpu.memory_space<vmem>>, vector<64x32xbf16>,
    %c0_282 = arith.constant 0 : index
    %c0_283 = arith.constant 0 : index
    %235 = vector.load %arg14[%c0_282, %c0_283] : memref<64x288xbf16, #tpu.memory_space<vmem>>, vector<64x288xbf16>
    %cst_284 = arith.constant dense<0.000000e+00> : vector<64x32xf32>
    %236 = tpu.matmul %235, %194, %cst_284 {dimension_numbers = #tpu.dot_dimension_numbers<[1], [0], [0], [1], [0, 0, 1, 1], [], []>} : vector<64x288xbf16>, vector<288x32xbf16>, vector<64x32xf32> -> vector<64x32xf32>
    %237 = vector.broadcast %196 : vector<1x32xf32> to vector<64x32xf32>
    %238 = arith.addf %236, %237 : vector<64x32xf32>
    %239 = arith.addf %238, %144 : vector<64x32xf32>
    %c0_285 = arith.constant 0 : index
    %c0_286 = arith.constant 0 : index
    %c0_287 = arith.constant 0 : index
    %240 = vector.load %arg11[%c0_285, %c0_286, %c0_287] : memref<1x64x32xf32, #tpu.memory_space<vmem>>, vector<1x64x32xf32>
    %241 = vector.shape_cast %240 : vector<1x64x32xf32> to vector<64x32xf32>
    %242 = vector.shape_cast %239 : vector<64x32xf32> to vector<1x64x32xf32>
    tpu.vector_store %arg11[%c0_285, %c0_286, %c0_287], %242 {strides = array<i32>} : memref<1x64x32xf32, #tpu.memory_space<vmem>>, vector<1x64x32xf32>,
    %c0_288 = arith.constant 0 : index
    %c0_289 = arith.constant 0 : index
    %243 = vector.load %arg6[%c0_288, %c0_289] : memref<16x64xf32, #tpu.memory_space<vmem>>, vector<16x64xf32>
    %cst_290 = arith.constant dense<0.000000e+00> : vector<16x32xf32>
    %244 = tpu.matmul %243, %239, %cst_290 {dimension_numbers = #tpu.dot_dimension_numbers<[1], [0], [0], [1], [0, 0, 1, 1], [], []>} : vector<16x64xf32>, vector<64x32xf32>, vector<16x32xf32> -> vector<16x32xf32>
    %245 = arith.truncf %244 : vector<16x32xf32> to vector<16x32xbf16>
    %c0_291 = arith.constant 0 : index
    %c0_292 = arith.constant 0 : index
    %246 = vector.load %arg7[%c0_291, %c0_292] : memref<32x64xbf16, #tpu.memory_space<vmem>>, vector<32x64xbf16>
    %cst_293 = arith.constant dense<0.000000e+00> : vector<16x64xf32>
    %247 = tpu.matmul %245, %246, %cst_293 {dimension_numbers = #tpu.dot_dimension_numbers<[1], [0], [0], [1], [0, 0, 1, 1], [], []>} : vector<16x32xbf16>, vector<32x64xbf16>, vector<16x64xf32> -> vector<16x64xf32>
    %c0_294 = arith.constant 0 : index
    %c0_295 = arith.constant 0 : index
    %248 = vector.load %arg8[%c0_294, %c0_295] : memref<1x64xf32, #tpu.memory_space<vmem>>, vector<1x64xf32>
    %249 = vector.broadcast %248 : vector<1x64xf32> to vector<16x64xf32>
    %250 = arith.addf %247, %249 : vector<16x64xf32>
    %c0_296 = arith.constant 0 : index
    %c0_297 = arith.constant 0 : index
    %c0_298 = arith.constant 0 : index
    %c0_299 = arith.constant 0 : index
    %251 = vector.load %arg9[%c0_296, %c0_297, %c0_298, %c0_299] : memref<2x2x576x64xbf16, #tpu.memory_space<vmem>>, vector<1x1x576x64xbf16>
    %252 = vector.shape_cast %251 : vector<1x1x576x64xbf16> to vector<576x64xbf16>
    %c0_300 = arith.constant 0 : index
    %c0_301 = arith.constant 0 : index
    %c0_302 = arith.constant 0 : index
    %c0_303 = arith.constant 0 : index
    %253 = vector.load %arg10[%c0_300, %c0_301, %c0_302, %c0_303] : memref<2x2x1x64xf32, #tpu.memory_space<vmem>>, vector<1x1x1x64xf32>
    %254 = vector.shape_cast %253 : vector<1x1x1x64xf32> to vector<1x64xf32>
    %255 = vector.shape_cast %250 : vector<16x64xf32> to vector<4x4x64xf32>
    %c1_304 = arith.constant 1 : index
    %c1_305 = arith.constant 1 : index
    %c0_306 = arith.constant 0 : index
    %256 = vector.load %arg15[%c1_304, %c1_305, %c0_306] : memref<6x6x64xf32, #tpu.memory_space<vmem>>, vector<4x4x64xf32>
    tpu.vector_store %arg15[%c1_304, %c1_305, %c0_306], %255 {strides = array<i32>} : memref<6x6x64xf32, #tpu.memory_space<vmem>>, vector<4x4x64xf32>,
    %c0_307 = arith.constant 0 : index
    %c0_308 = arith.constant 0 : index
    %c0_309 = arith.constant 0 : index
    %257 = vector.load %arg15[%c0_307, %c0_308, %c0_309] : memref<6x6x64xf32, #tpu.memory_space<vmem>>, vector<4x4x64xf32>
    %258 = vector.shape_cast %257 : vector<4x4x64xf32> to vector<16x64xf32>
    %259 = arith.truncf %258 : vector<16x64xf32> to vector<16x64xbf16>
    %c0_310 = arith.constant 0 : index
    %c0_311 = arith.constant 0 : index
    %260 = vector.load %arg16[%c0_310, %c0_311] : memref<16x576xbf16, #tpu.memory_space<vmem>>, vector<16x64xbf16>
    tpu.vector_store %arg16[%c0_310, %c0_311], %259 {strides = array<i32>} : memref<16x576xbf16, #tpu.memory_space<vmem>>, vector<16x64xbf16>,
    %c0_312 = arith.constant 0 : index
    %c1_313 = arith.constant 1 : index
    %c0_314 = arith.constant 0 : index
    %261 = vector.load %arg15[%c0_312, %c1_313, %c0_314] : memref<6x6x64xf32, #tpu.memory_space<vmem>>, vector<4x4x64xf32>
    %262 = vector.shape_cast %261 : vector<4x4x64xf32> to vector<16x64xf32>
    %263 = arith.truncf %262 : vector<16x64xf32> to vector<16x64xbf16>
    %c0_315 = arith.constant 0 : index
    %c64_316 = arith.constant 64 : index
    %264 = vector.load %arg16[%c0_315, %c64_316] : memref<16x576xbf16, #tpu.memory_space<vmem>>, vector<16x64xbf16>
    tpu.vector_store %arg16[%c0_315, %c64_316], %263 {strides = array<i32>} : memref<16x576xbf16, #tpu.memory_space<vmem>>, vector<16x64xbf16>,
    %c0_317 = arith.constant 0 : index
    %c2_318 = arith.constant 2 : index
    %c0_319 = arith.constant 0 : index
    %265 = vector.load %arg15[%c0_317, %c2_318, %c0_319] : memref<6x6x64xf32, #tpu.memory_space<vmem>>, vector<4x4x64xf32>
    %266 = vector.shape_cast %265 : vector<4x4x64xf32> to vector<16x64xf32>
    %267 = arith.truncf %266 : vector<16x64xf32> to vector<16x64xbf16>
    %c0_320 = arith.constant 0 : index
    %c128_321 = arith.constant 128 : index
    %268 = vector.load %arg16[%c0_320, %c128_321] : memref<16x576xbf16, #tpu.memory_space<vmem>>, vector<16x64xbf16>
    tpu.vector_store %arg16[%c0_320, %c128_321], %267 {strides = array<i32>} : memref<16x576xbf16, #tpu.memory_space<vmem>>, vector<16x64xbf16>,
    %c1_322 = arith.constant 1 : index
    %c0_323 = arith.constant 0 : index
    %c0_324 = arith.constant 0 : index
    %269 = vector.load %arg15[%c1_322, %c0_323, %c0_324] : memref<6x6x64xf32, #tpu.memory_space<vmem>>, vector<4x4x64xf32>
    %270 = vector.shape_cast %269 : vector<4x4x64xf32> to vector<16x64xf32>
    %271 = arith.truncf %270 : vector<16x64xf32> to vector<16x64xbf16>
    %c0_325 = arith.constant 0 : index
    %c192_326 = arith.constant 192 : index
    %272 = vector.load %arg16[%c0_325, %c192_326] : memref<16x576xbf16, #tpu.memory_space<vmem>>, vector<16x64xbf16>
    tpu.vector_store %arg16[%c0_325, %c192_326], %271 {strides = array<i32>} : memref<16x576xbf16, #tpu.memory_space<vmem>>, vector<16x64xbf16>,
    %c1_327 = arith.constant 1 : index
    %c1_328 = arith.constant 1 : index
    %c0_329 = arith.constant 0 : index
    %273 = vector.load %arg15[%c1_327, %c1_328, %c0_329] : memref<6x6x64xf32, #tpu.memory_space<vmem>>, vector<4x4x64xf32>
    %274 = vector.shape_cast %273 : vector<4x4x64xf32> to vector<16x64xf32>
    %275 = arith.truncf %274 : vector<16x64xf32> to vector<16x64xbf16>
    %c0_330 = arith.constant 0 : index
    %c256_331 = arith.constant 256 : index
    %276 = vector.load %arg16[%c0_330, %c256_331] : memref<16x576xbf16, #tpu.memory_space<vmem>>, vector<16x64xbf16>
    tpu.vector_store %arg16[%c0_330, %c256_331], %275 {strides = array<i32>} : memref<16x576xbf16, #tpu.memory_space<vmem>>, vector<16x64xbf16>,
    %c1_332 = arith.constant 1 : index
    %c2_333 = arith.constant 2 : index
    %c0_334 = arith.constant 0 : index
    %277 = vector.load %arg15[%c1_332, %c2_333, %c0_334] : memref<6x6x64xf32, #tpu.memory_space<vmem>>, vector<4x4x64xf32>
    %278 = vector.shape_cast %277 : vector<4x4x64xf32> to vector<16x64xf32>
    %279 = arith.truncf %278 : vector<16x64xf32> to vector<16x64xbf16>
    %c0_335 = arith.constant 0 : index
    %c320 = arith.constant 320 : index
    %280 = vector.load %arg16[%c0_335, %c320] : memref<16x576xbf16, #tpu.memory_space<vmem>>, vector<16x64xbf16>
    tpu.vector_store %arg16[%c0_335, %c320], %279 {strides = array<i32>} : memref<16x576xbf16, #tpu.memory_space<vmem>>, vector<16x64xbf16>,
    %c2_336 = arith.constant 2 : index
    %c0_337 = arith.constant 0 : index
    %c0_338 = arith.constant 0 : index
    %281 = vector.load %arg15[%c2_336, %c0_337, %c0_338] : memref<6x6x64xf32, #tpu.memory_space<vmem>>, vector<4x4x64xf32>
    %282 = vector.shape_cast %281 : vector<4x4x64xf32> to vector<16x64xf32>
    %283 = arith.truncf %282 : vector<16x64xf32> to vector<16x64xbf16>
    %c0_339 = arith.constant 0 : index
    %c384 = arith.constant 384 : index
    %284 = vector.load %arg16[%c0_339, %c384] : memref<16x576xbf16, #tpu.memory_space<vmem>>, vector<16x64xbf16>
    tpu.vector_store %arg16[%c0_339, %c384], %283 {strides = array<i32>} : memref<16x576xbf16, #tpu.memory_space<vmem>>, vector<16x64xbf16>,
    %c2_340 = arith.constant 2 : index
    %c1_341 = arith.constant 1 : index
    %c0_342 = arith.constant 0 : index
    %285 = vector.load %arg15[%c2_340, %c1_341, %c0_342] : memref<6x6x64xf32, #tpu.memory_space<vmem>>, vector<4x4x64xf32>
    %286 = vector.shape_cast %285 : vector<4x4x64xf32> to vector<16x64xf32>
    %287 = arith.truncf %286 : vector<16x64xf32> to vector<16x64xbf16>
    %c0_343 = arith.constant 0 : index
    %c448 = arith.constant 448 : index
    %288 = vector.load %arg16[%c0_343, %c448] : memref<16x576xbf16, #tpu.memory_space<vmem>>, vector<16x64xbf16>
    tpu.vector_store %arg16[%c0_343, %c448], %287 {strides = array<i32>} : memref<16x576xbf16, #tpu.memory_space<vmem>>, vector<16x64xbf16>,
    %c2_344 = arith.constant 2 : index
    %c2_345 = arith.constant 2 : index
    %c0_346 = arith.constant 0 : index
    %289 = vector.load %arg15[%c2_344, %c2_345, %c0_346] : memref<6x6x64xf32, #tpu.memory_space<vmem>>, vector<4x4x64xf32>
    %290 = vector.shape_cast %289 : vector<4x4x64xf32> to vector<16x64xf32>
    %291 = arith.truncf %290 : vector<16x64xf32> to vector<16x64xbf16>
    %c0_347 = arith.constant 0 : index
    %c512 = arith.constant 512 : index
    %292 = vector.load %arg16[%c0_347, %c512] : memref<16x576xbf16, #tpu.memory_space<vmem>>, vector<16x64xbf16>
    tpu.vector_store %arg16[%c0_347, %c512], %291 {strides = array<i32>} : memref<16x576xbf16, #tpu.memory_space<vmem>>, vector<16x64xbf16>,
    %c0_348 = arith.constant 0 : index
    %c0_349 = arith.constant 0 : index
    %293 = vector.load %arg16[%c0_348, %c0_349] : memref<16x576xbf16, #tpu.memory_space<vmem>>, vector<16x576xbf16>
    %cst_350 = arith.constant dense<0.000000e+00> : vector<16x64xf32>
    %294 = tpu.matmul %293, %252, %cst_350 {dimension_numbers = #tpu.dot_dimension_numbers<[1], [0], [0], [1], [0, 0, 1, 1], [], []>} : vector<16x576xbf16>, vector<576x64xbf16>, vector<16x64xf32> -> vector<16x64xf32>
    %295 = vector.broadcast %254 : vector<1x64xf32> to vector<16x64xf32>
    %296 = arith.addf %294, %295 : vector<16x64xf32>
    %cst_351 = arith.constant 0.000000e+00 : f32
    %297 = vector.broadcast %cst_351 : f32 to vector<16x64xf32>
    %298 = arith.maximumf %296, %297 : vector<16x64xf32>
    %c0_352 = arith.constant 0 : index
    %c1_353 = arith.constant 1 : index
    %c0_354 = arith.constant 0 : index
    %c0_355 = arith.constant 0 : index
    %299 = vector.load %arg9[%c0_352, %c1_353, %c0_354, %c0_355] : memref<2x2x576x64xbf16, #tpu.memory_space<vmem>>, vector<1x1x576x64xbf16>
    %300 = vector.shape_cast %299 : vector<1x1x576x64xbf16> to vector<576x64xbf16>
    %c0_356 = arith.constant 0 : index
    %c1_357 = arith.constant 1 : index
    %c0_358 = arith.constant 0 : index
    %c0_359 = arith.constant 0 : index
    %301 = vector.load %arg10[%c0_356, %c1_357, %c0_358, %c0_359] : memref<2x2x1x64xf32, #tpu.memory_space<vmem>>, vector<1x1x1x64xf32>
    %302 = vector.shape_cast %301 : vector<1x1x1x64xf32> to vector<1x64xf32>
    %303 = vector.shape_cast %298 : vector<16x64xf32> to vector<4x4x64xf32>
    %c1_360 = arith.constant 1 : index
    %c1_361 = arith.constant 1 : index
    %c0_362 = arith.constant 0 : index
    %304 = vector.load %arg15[%c1_360, %c1_361, %c0_362] : memref<6x6x64xf32, #tpu.memory_space<vmem>>, vector<4x4x64xf32>
    tpu.vector_store %arg15[%c1_360, %c1_361, %c0_362], %303 {strides = array<i32>} : memref<6x6x64xf32, #tpu.memory_space<vmem>>, vector<4x4x64xf32>,
    %c0_363 = arith.constant 0 : index
    %c0_364 = arith.constant 0 : index
    %c0_365 = arith.constant 0 : index
    %305 = vector.load %arg15[%c0_363, %c0_364, %c0_365] : memref<6x6x64xf32, #tpu.memory_space<vmem>>, vector<4x4x64xf32>
    %306 = vector.shape_cast %305 : vector<4x4x64xf32> to vector<16x64xf32>
    %307 = arith.truncf %306 : vector<16x64xf32> to vector<16x64xbf16>
    %c0_366 = arith.constant 0 : index
    %c0_367 = arith.constant 0 : index
    %308 = vector.load %arg16[%c0_366, %c0_367] : memref<16x576xbf16, #tpu.memory_space<vmem>>, vector<16x64xbf16>
    tpu.vector_store %arg16[%c0_366, %c0_367], %307 {strides = array<i32>} : memref<16x576xbf16, #tpu.memory_space<vmem>>, vector<16x64xbf16>,
    %c0_368 = arith.constant 0 : index
    %c1_369 = arith.constant 1 : index
    %c0_370 = arith.constant 0 : index
    %309 = vector.load %arg15[%c0_368, %c1_369, %c0_370] : memref<6x6x64xf32, #tpu.memory_space<vmem>>, vector<4x4x64xf32>
    %310 = vector.shape_cast %309 : vector<4x4x64xf32> to vector<16x64xf32>
    %311 = arith.truncf %310 : vector<16x64xf32> to vector<16x64xbf16>
    %c0_371 = arith.constant 0 : index
    %c64_372 = arith.constant 64 : index
    %312 = vector.load %arg16[%c0_371, %c64_372] : memref<16x576xbf16, #tpu.memory_space<vmem>>, vector<16x64xbf16>
    tpu.vector_store %arg16[%c0_371, %c64_372], %311 {strides = array<i32>} : memref<16x576xbf16, #tpu.memory_space<vmem>>, vector<16x64xbf16>,
    %c0_373 = arith.constant 0 : index
    %c2_374 = arith.constant 2 : index
    %c0_375 = arith.constant 0 : index
    %313 = vector.load %arg15[%c0_373, %c2_374, %c0_375] : memref<6x6x64xf32, #tpu.memory_space<vmem>>, vector<4x4x64xf32>
    %314 = vector.shape_cast %313 : vector<4x4x64xf32> to vector<16x64xf32>
    %315 = arith.truncf %314 : vector<16x64xf32> to vector<16x64xbf16>
    %c0_376 = arith.constant 0 : index
    %c128_377 = arith.constant 128 : index
    %316 = vector.load %arg16[%c0_376, %c128_377] : memref<16x576xbf16, #tpu.memory_space<vmem>>, vector<16x64xbf16>
    tpu.vector_store %arg16[%c0_376, %c128_377], %315 {strides = array<i32>} : memref<16x576xbf16, #tpu.memory_space<vmem>>, vector<16x64xbf16>,
    %c1_378 = arith.constant 1 : index
    %c0_379 = arith.constant 0 : index
    %c0_380 = arith.constant 0 : index
    %317 = vector.load %arg15[%c1_378, %c0_379, %c0_380] : memref<6x6x64xf32, #tpu.memory_space<vmem>>, vector<4x4x64xf32>
    %318 = vector.shape_cast %317 : vector<4x4x64xf32> to vector<16x64xf32>
    %319 = arith.truncf %318 : vector<16x64xf32> to vector<16x64xbf16>
    %c0_381 = arith.constant 0 : index
    %c192_382 = arith.constant 192 : index
    %320 = vector.load %arg16[%c0_381, %c192_382] : memref<16x576xbf16, #tpu.memory_space<vmem>>, vector<16x64xbf16>
    tpu.vector_store %arg16[%c0_381, %c192_382], %319 {strides = array<i32>} : memref<16x576xbf16, #tpu.memory_space<vmem>>, vector<16x64xbf16>,
    %c1_383 = arith.constant 1 : index
    %c1_384 = arith.constant 1 : index
    %c0_385 = arith.constant 0 : index
    %321 = vector.load %arg15[%c1_383, %c1_384, %c0_385] : memref<6x6x64xf32, #tpu.memory_space<vmem>>, vector<4x4x64xf32>
    %322 = vector.shape_cast %321 : vector<4x4x64xf32> to vector<16x64xf32>
    %323 = arith.truncf %322 : vector<16x64xf32> to vector<16x64xbf16>
    %c0_386 = arith.constant 0 : index
    %c256_387 = arith.constant 256 : index
    %324 = vector.load %arg16[%c0_386, %c256_387] : memref<16x576xbf16, #tpu.memory_space<vmem>>, vector<16x64xbf16>
    tpu.vector_store %arg16[%c0_386, %c256_387], %323 {strides = array<i32>} : memref<16x576xbf16, #tpu.memory_space<vmem>>, vector<16x64xbf16>,
    %c1_388 = arith.constant 1 : index
    %c2_389 = arith.constant 2 : index
    %c0_390 = arith.constant 0 : index
    %325 = vector.load %arg15[%c1_388, %c2_389, %c0_390] : memref<6x6x64xf32, #tpu.memory_space<vmem>>, vector<4x4x64xf32>
    %326 = vector.shape_cast %325 : vector<4x4x64xf32> to vector<16x64xf32>
    %327 = arith.truncf %326 : vector<16x64xf32> to vector<16x64xbf16>
    %c0_391 = arith.constant 0 : index
    %c320_392 = arith.constant 320 : index
    %328 = vector.load %arg16[%c0_391, %c320_392] : memref<16x576xbf16, #tpu.memory_space<vmem>>, vector<16x64xbf16>
    tpu.vector_store %arg16[%c0_391, %c320_392], %327 {strides = array<i32>} : memref<16x576xbf16, #tpu.memory_space<vmem>>, vector<16x64xbf16>,
    %c2_393 = arith.constant 2 : index
    %c0_394 = arith.constant 0 : index
    %c0_395 = arith.constant 0 : index
    %329 = vector.load %arg15[%c2_393, %c0_394, %c0_395] : memref<6x6x64xf32, #tpu.memory_space<vmem>>, vector<4x4x64xf32>
    %330 = vector.shape_cast %329 : vector<4x4x64xf32> to vector<16x64xf32>
    %331 = arith.truncf %330 : vector<16x64xf32> to vector<16x64xbf16>
    %c0_396 = arith.constant 0 : index
    %c384_397 = arith.constant 384 : index
    %332 = vector.load %arg16[%c0_396, %c384_397] : memref<16x576xbf16, #tpu.memory_space<vmem>>, vector<16x64xbf16>
    tpu.vector_store %arg16[%c0_396, %c384_397], %331 {strides = array<i32>} : memref<16x576xbf16, #tpu.memory_space<vmem>>, vector<16x64xbf16>,
    %c2_398 = arith.constant 2 : index
    %c1_399 = arith.constant 1 : index
    %c0_400 = arith.constant 0 : index
    %333 = vector.load %arg15[%c2_398, %c1_399, %c0_400] : memref<6x6x64xf32, #tpu.memory_space<vmem>>, vector<4x4x64xf32>
    %334 = vector.shape_cast %333 : vector<4x4x64xf32> to vector<16x64xf32>
    %335 = arith.truncf %334 : vector<16x64xf32> to vector<16x64xbf16>
    %c0_401 = arith.constant 0 : index
    %c448_402 = arith.constant 448 : index
    %336 = vector.load %arg16[%c0_401, %c448_402] : memref<16x576xbf16, #tpu.memory_space<vmem>>, vector<16x64xbf16>
    tpu.vector_store %arg16[%c0_401, %c448_402], %335 {strides = array<i32>} : memref<16x576xbf16, #tpu.memory_space<vmem>>, vector<16x64xbf16>,
    %c2_403 = arith.constant 2 : index
    %c2_404 = arith.constant 2 : index
    %c0_405 = arith.constant 0 : index
    %337 = vector.load %arg15[%c2_403, %c2_404, %c0_405] : memref<6x6x64xf32, #tpu.memory_space<vmem>>, vector<4x4x64xf32>
    %338 = vector.shape_cast %337 : vector<4x4x64xf32> to vector<16x64xf32>
    %339 = arith.truncf %338 : vector<16x64xf32> to vector<16x64xbf16>
    %c0_406 = arith.constant 0 : index
    %c512_407 = arith.constant 512 : index
    %340 = vector.load %arg16[%c0_406, %c512_407] : memref<16x576xbf16, #tpu.memory_space<vmem>>, vector<16x64xbf16>
    tpu.vector_store %arg16[%c0_406, %c512_407], %339 {strides = array<i32>} : memref<16x576xbf16, #tpu.memory_space<vmem>>, vector<16x64xbf16>,
    %c0_408 = arith.constant 0 : index
    %c0_409 = arith.constant 0 : index
    %341 = vector.load %arg16[%c0_408, %c0_409] : memref<16x576xbf16, #tpu.memory_space<vmem>>, vector<16x576xbf16>
    %cst_410 = arith.constant dense<0.000000e+00> : vector<16x64xf32>
    %342 = tpu.matmul %341, %300, %cst_410 {dimension_numbers = #tpu.dot_dimension_numbers<[1], [0], [0], [1], [0, 0, 1, 1], [], []>} : vector<16x576xbf16>, vector<576x64xbf16>, vector<16x64xf32> -> vector<16x64xf32>
    %343 = vector.broadcast %302 : vector<1x64xf32> to vector<16x64xf32>
    %344 = arith.addf %342, %343 : vector<16x64xf32>
    %345 = arith.addf %344, %250 : vector<16x64xf32>
    %c1_411 = arith.constant 1 : index
    %c0_412 = arith.constant 0 : index
    %c0_413 = arith.constant 0 : index
    %c0_414 = arith.constant 0 : index
    %346 = vector.load %arg9[%c1_411, %c0_412, %c0_413, %c0_414] : memref<2x2x576x64xbf16, #tpu.memory_space<vmem>>, vector<1x1x576x64xbf16>
    %347 = vector.shape_cast %346 : vector<1x1x576x64xbf16> to vector<576x64xbf16>
    %c1_415 = arith.constant 1 : index
    %c0_416 = arith.constant 0 : index
    %c0_417 = arith.constant 0 : index
    %c0_418 = arith.constant 0 : index
    %348 = vector.load %arg10[%c1_415, %c0_416, %c0_417, %c0_418] : memref<2x2x1x64xf32, #tpu.memory_space<vmem>>, vector<1x1x1x64xf32>
    %349 = vector.shape_cast %348 : vector<1x1x1x64xf32> to vector<1x64xf32>
    %350 = vector.shape_cast %345 : vector<16x64xf32> to vector<4x4x64xf32>
    %c1_419 = arith.constant 1 : index
    %c1_420 = arith.constant 1 : index
    %c0_421 = arith.constant 0 : index
    %351 = vector.load %arg15[%c1_419, %c1_420, %c0_421] : memref<6x6x64xf32, #tpu.memory_space<vmem>>, vector<4x4x64xf32>
    tpu.vector_store %arg15[%c1_419, %c1_420, %c0_421], %350 {strides = array<i32>} : memref<6x6x64xf32, #tpu.memory_space<vmem>>, vector<4x4x64xf32>,
    %c0_422 = arith.constant 0 : index
    %c0_423 = arith.constant 0 : index
    %c0_424 = arith.constant 0 : index
    %352 = vector.load %arg15[%c0_422, %c0_423, %c0_424] : memref<6x6x64xf32, #tpu.memory_space<vmem>>, vector<4x4x64xf32>
    %353 = vector.shape_cast %352 : vector<4x4x64xf32> to vector<16x64xf32>
    %354 = arith.truncf %353 : vector<16x64xf32> to vector<16x64xbf16>
    %c0_425 = arith.constant 0 : index
    %c0_426 = arith.constant 0 : index
    %355 = vector.load %arg16[%c0_425, %c0_426] : memref<16x576xbf16, #tpu.memory_space<vmem>>, vector<16x64xbf16>
    tpu.vector_store %arg16[%c0_425, %c0_426], %354 {strides = array<i32>} : memref<16x576xbf16, #tpu.memory_space<vmem>>, vector<16x64xbf16>,
    %c0_427 = arith.constant 0 : index
    %c1_428 = arith.constant 1 : index
    %c0_429 = arith.constant 0 : index
    %356 = vector.load %arg15[%c0_427, %c1_428, %c0_429] : memref<6x6x64xf32, #tpu.memory_space<vmem>>, vector<4x4x64xf32>
    %357 = vector.shape_cast %356 : vector<4x4x64xf32> to vector<16x64xf32>
    %358 = arith.truncf %357 : vector<16x64xf32> to vector<16x64xbf16>
    %c0_430 = arith.constant 0 : index
    %c64_431 = arith.constant 64 : index
    %359 = vector.load %arg16[%c0_430, %c64_431] : memref<16x576xbf16, #tpu.memory_space<vmem>>, vector<16x64xbf16>
    tpu.vector_store %arg16[%c0_430, %c64_431], %358 {strides = array<i32>} : memref<16x576xbf16, #tpu.memory_space<vmem>>, vector<16x64xbf16>,
    %c0_432 = arith.constant 0 : index
    %c2_433 = arith.constant 2 : index
    %c0_434 = arith.constant 0 : index
    %360 = vector.load %arg15[%c0_432, %c2_433, %c0_434] : memref<6x6x64xf32, #tpu.memory_space<vmem>>, vector<4x4x64xf32>
    %361 = vector.shape_cast %360 : vector<4x4x64xf32> to vector<16x64xf32>
    %362 = arith.truncf %361 : vector<16x64xf32> to vector<16x64xbf16>
    %c0_435 = arith.constant 0 : index
    %c128_436 = arith.constant 128 : index
    %363 = vector.load %arg16[%c0_435, %c128_436] : memref<16x576xbf16, #tpu.memory_space<vmem>>, vector<16x64xbf16>
    tpu.vector_store %arg16[%c0_435, %c128_436], %362 {strides = array<i32>} : memref<16x576xbf16, #tpu.memory_space<vmem>>, vector<16x64xbf16>,
    %c1_437 = arith.constant 1 : index
    %c0_438 = arith.constant 0 : index
    %c0_439 = arith.constant 0 : index
    %364 = vector.load %arg15[%c1_437, %c0_438, %c0_439] : memref<6x6x64xf32, #tpu.memory_space<vmem>>, vector<4x4x64xf32>
    %365 = vector.shape_cast %364 : vector<4x4x64xf32> to vector<16x64xf32>
    %366 = arith.truncf %365 : vector<16x64xf32> to vector<16x64xbf16>
    %c0_440 = arith.constant 0 : index
    %c192_441 = arith.constant 192 : index
    %367 = vector.load %arg16[%c0_440, %c192_441] : memref<16x576xbf16, #tpu.memory_space<vmem>>, vector<16x64xbf16>
    tpu.vector_store %arg16[%c0_440, %c192_441], %366 {strides = array<i32>} : memref<16x576xbf16, #tpu.memory_space<vmem>>, vector<16x64xbf16>,
    %c1_442 = arith.constant 1 : index
    %c1_443 = arith.constant 1 : index
    %c0_444 = arith.constant 0 : index
    %368 = vector.load %arg15[%c1_442, %c1_443, %c0_444] : memref<6x6x64xf32, #tpu.memory_space<vmem>>, vector<4x4x64xf32>
    %369 = vector.shape_cast %368 : vector<4x4x64xf32> to vector<16x64xf32>
    %370 = arith.truncf %369 : vector<16x64xf32> to vector<16x64xbf16>
    %c0_445 = arith.constant 0 : index
    %c256_446 = arith.constant 256 : index
    %371 = vector.load %arg16[%c0_445, %c256_446] : memref<16x576xbf16, #tpu.memory_space<vmem>>, vector<16x64xbf16>
    tpu.vector_store %arg16[%c0_445, %c256_446], %370 {strides = array<i32>} : memref<16x576xbf16, #tpu.memory_space<vmem>>, vector<16x64xbf16>,
    %c1_447 = arith.constant 1 : index
    %c2_448 = arith.constant 2 : index
    %c0_449 = arith.constant 0 : index
    %372 = vector.load %arg15[%c1_447, %c2_448, %c0_449] : memref<6x6x64xf32, #tpu.memory_space<vmem>>, vector<4x4x64xf32>
    %373 = vector.shape_cast %372 : vector<4x4x64xf32> to vector<16x64xf32>
    %374 = arith.truncf %373 : vector<16x64xf32> to vector<16x64xbf16>
    %c0_450 = arith.constant 0 : index
    %c320_451 = arith.constant 320 : index
    %375 = vector.load %arg16[%c0_450, %c320_451] : memref<16x576xbf16, #tpu.memory_space<vmem>>, vector<16x64xbf16>
    tpu.vector_store %arg16[%c0_450, %c320_451], %374 {strides = array<i32>} : memref<16x576xbf16, #tpu.memory_space<vmem>>, vector<16x64xbf16>,
    %c2_452 = arith.constant 2 : index
    %c0_453 = arith.constant 0 : index
    %c0_454 = arith.constant 0 : index
    %376 = vector.load %arg15[%c2_452, %c0_453, %c0_454] : memref<6x6x64xf32, #tpu.memory_space<vmem>>, vector<4x4x64xf32>
    %377 = vector.shape_cast %376 : vector<4x4x64xf32> to vector<16x64xf32>
    %378 = arith.truncf %377 : vector<16x64xf32> to vector<16x64xbf16>
    %c0_455 = arith.constant 0 : index
    %c384_456 = arith.constant 384 : index
    %379 = vector.load %arg16[%c0_455, %c384_456] : memref<16x576xbf16, #tpu.memory_space<vmem>>, vector<16x64xbf16>
    tpu.vector_store %arg16[%c0_455, %c384_456], %378 {strides = array<i32>} : memref<16x576xbf16, #tpu.memory_space<vmem>>, vector<16x64xbf16>,
    %c2_457 = arith.constant 2 : index
    %c1_458 = arith.constant 1 : index
    %c0_459 = arith.constant 0 : index
    %380 = vector.load %arg15[%c2_457, %c1_458, %c0_459] : memref<6x6x64xf32, #tpu.memory_space<vmem>>, vector<4x4x64xf32>
    %381 = vector.shape_cast %380 : vector<4x4x64xf32> to vector<16x64xf32>
    %382 = arith.truncf %381 : vector<16x64xf32> to vector<16x64xbf16>
    %c0_460 = arith.constant 0 : index
    %c448_461 = arith.constant 448 : index
    %383 = vector.load %arg16[%c0_460, %c448_461] : memref<16x576xbf16, #tpu.memory_space<vmem>>, vector<16x64xbf16>
    tpu.vector_store %arg16[%c0_460, %c448_461], %382 {strides = array<i32>} : memref<16x576xbf16, #tpu.memory_space<vmem>>, vector<16x64xbf16>,
    %c2_462 = arith.constant 2 : index
    %c2_463 = arith.constant 2 : index
    %c0_464 = arith.constant 0 : index
    %384 = vector.load %arg15[%c2_462, %c2_463, %c0_464] : memref<6x6x64xf32, #tpu.memory_space<vmem>>, vector<4x4x64xf32>
    %385 = vector.shape_cast %384 : vector<4x4x64xf32> to vector<16x64xf32>
    %386 = arith.truncf %385 : vector<16x64xf32> to vector<16x64xbf16>
    %c0_465 = arith.constant 0 : index
    %c512_466 = arith.constant 512 : index
    %387 = vector.load %arg16[%c0_465, %c512_466] : memref<16x576xbf16, #tpu.memory_space<vmem>>, vector<16x64xbf16>
    tpu.vector_store %arg16[%c0_465, %c512_466], %386 {strides = array<i32>} : memref<16x576xbf16, #tpu.memory_space<vmem>>, vector<16x64xbf16>,
    %c0_467 = arith.constant 0 : index
    %c0_468 = arith.constant 0 : index
    %388 = vector.load %arg16[%c0_467, %c0_468] : memref<16x576xbf16, #tpu.memory_space<vmem>>, vector<16x576xbf16>
    %cst_469 = arith.constant dense<0.000000e+00> : vector<16x64xf32>
    %389 = tpu.matmul %388, %347, %cst_469 {dimension_numbers = #tpu.dot_dimension_numbers<[1], [0], [0], [1], [0, 0, 1, 1], [], []>} : vector<16x576xbf16>, vector<576x64xbf16>, vector<16x64xf32> -> vector<16x64xf32>
    %390 = vector.broadcast %349 : vector<1x64xf32> to vector<16x64xf32>
    %391 = arith.addf %389, %390 : vector<16x64xf32>
    %cst_470 = arith.constant 0.000000e+00 : f32
    %392 = vector.broadcast %cst_470 : f32 to vector<16x64xf32>
    %393 = arith.maximumf %391, %392 : vector<16x64xf32>
    %c1_471 = arith.constant 1 : index
    %c1_472 = arith.constant 1 : index
    %c0_473 = arith.constant 0 : index
    %c0_474 = arith.constant 0 : index
    %394 = vector.load %arg9[%c1_471, %c1_472, %c0_473, %c0_474] : memref<2x2x576x64xbf16, #tpu.memory_space<vmem>>, vector<1x1x576x64xbf16>
    %395 = vector.shape_cast %394 : vector<1x1x576x64xbf16> to vector<576x64xbf16>
    %c1_475 = arith.constant 1 : index
    %c1_476 = arith.constant 1 : index
    %c0_477 = arith.constant 0 : index
    %c0_478 = arith.constant 0 : index
    %396 = vector.load %arg10[%c1_475, %c1_476, %c0_477, %c0_478] : memref<2x2x1x64xf32, #tpu.memory_space<vmem>>, vector<1x1x1x64xf32>
    %397 = vector.shape_cast %396 : vector<1x1x1x64xf32> to vector<1x64xf32>
    %398 = vector.shape_cast %393 : vector<16x64xf32> to vector<4x4x64xf32>
    %c1_479 = arith.constant 1 : index
    %c1_480 = arith.constant 1 : index
    %c0_481 = arith.constant 0 : index
    %399 = vector.load %arg15[%c1_479, %c1_480, %c0_481] : memref<6x6x64xf32, #tpu.memory_space<vmem>>, vector<4x4x64xf32>
    tpu.vector_store %arg15[%c1_479, %c1_480, %c0_481], %398 {strides = array<i32>} : memref<6x6x64xf32, #tpu.memory_space<vmem>>, vector<4x4x64xf32>,
    %c0_482 = arith.constant 0 : index
    %c0_483 = arith.constant 0 : index
    %c0_484 = arith.constant 0 : index
    %400 = vector.load %arg15[%c0_482, %c0_483, %c0_484] : memref<6x6x64xf32, #tpu.memory_space<vmem>>, vector<4x4x64xf32>
    %401 = vector.shape_cast %400 : vector<4x4x64xf32> to vector<16x64xf32>
    %402 = arith.truncf %401 : vector<16x64xf32> to vector<16x64xbf16>
    %c0_485 = arith.constant 0 : index
    %c0_486 = arith.constant 0 : index
    %403 = vector.load %arg16[%c0_485, %c0_486] : memref<16x576xbf16, #tpu.memory_space<vmem>>, vector<16x64xbf16>
    tpu.vector_store %arg16[%c0_485, %c0_486], %402 {strides = array<i32>} : memref<16x576xbf16, #tpu.memory_space<vmem>>, vector<16x64xbf16>,
    %c0_487 = arith.constant 0 : index
    %c1_488 = arith.constant 1 : index
    %c0_489 = arith.constant 0 : index
    %404 = vector.load %arg15[%c0_487, %c1_488, %c0_489] : memref<6x6x64xf32, #tpu.memory_space<vmem>>, vector<4x4x64xf32>
    %405 = vector.shape_cast %404 : vector<4x4x64xf32> to vector<16x64xf32>
    %406 = arith.truncf %405 : vector<16x64xf32> to vector<16x64xbf16>
    %c0_490 = arith.constant 0 : index
    %c64_491 = arith.constant 64 : index
    %407 = vector.load %arg16[%c0_490, %c64_491] : memref<16x576xbf16, #tpu.memory_space<vmem>>, vector<16x64xbf16>
    tpu.vector_store %arg16[%c0_490, %c64_491], %406 {strides = array<i32>} : memref<16x576xbf16, #tpu.memory_space<vmem>>, vector<16x64xbf16>,
    %c0_492 = arith.constant 0 : index
    %c2_493 = arith.constant 2 : index
    %c0_494 = arith.constant 0 : index
    %408 = vector.load %arg15[%c0_492, %c2_493, %c0_494] : memref<6x6x64xf32, #tpu.memory_space<vmem>>, vector<4x4x64xf32>
    %409 = vector.shape_cast %408 : vector<4x4x64xf32> to vector<16x64xf32>
    %410 = arith.truncf %409 : vector<16x64xf32> to vector<16x64xbf16>
    %c0_495 = arith.constant 0 : index
    %c128_496 = arith.constant 128 : index
    %411 = vector.load %arg16[%c0_495, %c128_496] : memref<16x576xbf16, #tpu.memory_space<vmem>>, vector<16x64xbf16>
    tpu.vector_store %arg16[%c0_495, %c128_496], %410 {strides = array<i32>} : memref<16x576xbf16, #tpu.memory_space<vmem>>, vector<16x64xbf16>,
    %c1_497 = arith.constant 1 : index
    %c0_498 = arith.constant 0 : index
    %c0_499 = arith.constant 0 : index
    %412 = vector.load %arg15[%c1_497, %c0_498, %c0_499] : memref<6x6x64xf32, #tpu.memory_space<vmem>>, vector<4x4x64xf32>
    %413 = vector.shape_cast %412 : vector<4x4x64xf32> to vector<16x64xf32>
    %414 = arith.truncf %413 : vector<16x64xf32> to vector<16x64xbf16>
    %c0_500 = arith.constant 0 : index
    %c192_501 = arith.constant 192 : index
    %415 = vector.load %arg16[%c0_500, %c192_501] : memref<16x576xbf16, #tpu.memory_space<vmem>>, vector<16x64xbf16>
    tpu.vector_store %arg16[%c0_500, %c192_501], %414 {strides = array<i32>} : memref<16x576xbf16, #tpu.memory_space<vmem>>, vector<16x64xbf16>,
    %c1_502 = arith.constant 1 : index
    %c1_503 = arith.constant 1 : index
    %c0_504 = arith.constant 0 : index
    %416 = vector.load %arg15[%c1_502, %c1_503, %c0_504] : memref<6x6x64xf32, #tpu.memory_space<vmem>>, vector<4x4x64xf32>
    %417 = vector.shape_cast %416 : vector<4x4x64xf32> to vector<16x64xf32>
    %418 = arith.truncf %417 : vector<16x64xf32> to vector<16x64xbf16>
    %c0_505 = arith.constant 0 : index
    %c256_506 = arith.constant 256 : index
    %419 = vector.load %arg16[%c0_505, %c256_506] : memref<16x576xbf16, #tpu.memory_space<vmem>>, vector<16x64xbf16>
    tpu.vector_store %arg16[%c0_505, %c256_506], %418 {strides = array<i32>} : memref<16x576xbf16, #tpu.memory_space<vmem>>, vector<16x64xbf16>,
    %c1_507 = arith.constant 1 : index
    %c2_508 = arith.constant 2 : index
    %c0_509 = arith.constant 0 : index
    %420 = vector.load %arg15[%c1_507, %c2_508, %c0_509] : memref<6x6x64xf32, #tpu.memory_space<vmem>>, vector<4x4x64xf32>
    %421 = vector.shape_cast %420 : vector<4x4x64xf32> to vector<16x64xf32>
    %422 = arith.truncf %421 : vector<16x64xf32> to vector<16x64xbf16>
    %c0_510 = arith.constant 0 : index
    %c320_511 = arith.constant 320 : index
    %423 = vector.load %arg16[%c0_510, %c320_511] : memref<16x576xbf16, #tpu.memory_space<vmem>>, vector<16x64xbf16>
    tpu.vector_store %arg16[%c0_510, %c320_511], %422 {strides = array<i32>} : memref<16x576xbf16, #tpu.memory_space<vmem>>, vector<16x64xbf16>,
    %c2_512 = arith.constant 2 : index
    %c0_513 = arith.constant 0 : index
    %c0_514 = arith.constant 0 : index
    %424 = vector.load %arg15[%c2_512, %c0_513, %c0_514] : memref<6x6x64xf32, #tpu.memory_space<vmem>>, vector<4x4x64xf32>
    %425 = vector.shape_cast %424 : vector<4x4x64xf32> to vector<16x64xf32>
    %426 = arith.truncf %425 : vector<16x64xf32> to vector<16x64xbf16>
    %c0_515 = arith.constant 0 : index
    %c384_516 = arith.constant 384 : index
    %427 = vector.load %arg16[%c0_515, %c384_516] : memref<16x576xbf16, #tpu.memory_space<vmem>>, vector<16x64xbf16>
    tpu.vector_store %arg16[%c0_515, %c384_516], %426 {strides = array<i32>} : memref<16x576xbf16, #tpu.memory_space<vmem>>, vector<16x64xbf16>,
    %c2_517 = arith.constant 2 : index
    %c1_518 = arith.constant 1 : index
    %c0_519 = arith.constant 0 : index
    %428 = vector.load %arg15[%c2_517, %c1_518, %c0_519] : memref<6x6x64xf32, #tpu.memory_space<vmem>>, vector<4x4x64xf32>
    %429 = vector.shape_cast %428 : vector<4x4x64xf32> to vector<16x64xf32>
    %430 = arith.truncf %429 : vector<16x64xf32> to vector<16x64xbf16>
    %c0_520 = arith.constant 0 : index
    %c448_521 = arith.constant 448 : index
    %431 = vector.load %arg16[%c0_520, %c448_521] : memref<16x576xbf16, #tpu.memory_space<vmem>>, vector<16x64xbf16>
    tpu.vector_store %arg16[%c0_520, %c448_521], %430 {strides = array<i32>} : memref<16x576xbf16, #tpu.memory_space<vmem>>, vector<16x64xbf16>,
    %c2_522 = arith.constant 2 : index
    %c2_523 = arith.constant 2 : index
    %c0_524 = arith.constant 0 : index
    %432 = vector.load %arg15[%c2_522, %c2_523, %c0_524] : memref<6x6x64xf32, #tpu.memory_space<vmem>>, vector<4x4x64xf32>
    %433 = vector.shape_cast %432 : vector<4x4x64xf32> to vector<16x64xf32>
    %434 = arith.truncf %433 : vector<16x64xf32> to vector<16x64xbf16>
    %c0_525 = arith.constant 0 : index
    %c512_526 = arith.constant 512 : index
    %435 = vector.load %arg16[%c0_525, %c512_526] : memref<16x576xbf16, #tpu.memory_space<vmem>>, vector<16x64xbf16>
    tpu.vector_store %arg16[%c0_525, %c512_526], %434 {strides = array<i32>} : memref<16x576xbf16, #tpu.memory_space<vmem>>, vector<16x64xbf16>,
    %c0_527 = arith.constant 0 : index
    %c0_528 = arith.constant 0 : index
    %436 = vector.load %arg16[%c0_527, %c0_528] : memref<16x576xbf16, #tpu.memory_space<vmem>>, vector<16x576xbf16>
    %cst_529 = arith.constant dense<0.000000e+00> : vector<16x64xf32>
    %437 = tpu.matmul %436, %395, %cst_529 {dimension_numbers = #tpu.dot_dimension_numbers<[1], [0], [0], [1], [0, 0, 1, 1], [], []>} : vector<16x576xbf16>, vector<576x64xbf16>, vector<16x64xf32> -> vector<16x64xf32>
    %438 = vector.broadcast %397 : vector<1x64xf32> to vector<16x64xf32>
    %439 = arith.addf %437, %438 : vector<16x64xf32>
    %440 = arith.addf %439, %345 : vector<16x64xf32>
    %c0_530 = arith.constant 0 : index
    %c0_531 = arith.constant 0 : index
    %c0_532 = arith.constant 0 : index
    %441 = vector.load %arg12[%c0_530, %c0_531, %c0_532] : memref<1x16x64xf32, #tpu.memory_space<vmem>>, vector<1x16x64xf32>
    %442 = vector.shape_cast %441 : vector<1x16x64xf32> to vector<16x64xf32>
    %443 = vector.shape_cast %440 : vector<16x64xf32> to vector<1x16x64xf32>
    tpu.vector_store %arg12[%c0_530, %c0_531, %c0_532], %443 {strides = array<i32>} : memref<1x16x64xf32, #tpu.memory_space<vmem>>, vector<1x16x64xf32>,
    return
  }
  func.func @transform_0(%arg0: i32) -> (i32, i32, i32) {
    %c0_i32 = arith.constant 0 : i32
    %c0_i32_0 = arith.constant 0 : i32
    %c0_i32_1 = arith.constant 0 : i32
    return %arg0, %c0_i32, %c0_i32_0 : i32, i32, i32
  }
  func.func @transform_1(%arg0: i32) -> (i32, i32) {
    %c0_i32 = arith.constant 0 : i32
    %c0_i32_0 = arith.constant 0 : i32
    %c0_i32_1 = arith.constant 0 : i32
    return %c0_i32, %c0_i32_0 : i32, i32
  }
  func.func @transform_2(%arg0: i32) -> (i32, i32) {
    %c0_i32 = arith.constant 0 : i32
    %c0_i32_0 = arith.constant 0 : i32
    %c0_i32_1 = arith.constant 0 : i32
    return %c0_i32, %c0_i32_0 : i32, i32
  }
  func.func @transform_3(%arg0: i32) -> (i32, i32, i32, i32) {
    %c0_i32 = arith.constant 0 : i32
    %c0_i32_0 = arith.constant 0 : i32
    %c0_i32_1 = arith.constant 0 : i32
    %c0_i32_2 = arith.constant 0 : i32
    %c0_i32_3 = arith.constant 0 : i32
    return %c0_i32, %c0_i32_0, %c0_i32_1, %c0_i32_2 : i32, i32, i32, i32
  }
  func.func @transform_4(%arg0: i32) -> (i32, i32, i32, i32) {
    %c0_i32 = arith.constant 0 : i32
    %c0_i32_0 = arith.constant 0 : i32
    %c0_i32_1 = arith.constant 0 : i32
    %c0_i32_2 = arith.constant 0 : i32
    %c0_i32_3 = arith.constant 0 : i32
    return %c0_i32, %c0_i32_0, %c0_i32_1, %c0_i32_2 : i32, i32, i32, i32
  }
  func.func @transform_5(%arg0: i32) -> (i32, i32) {
    %c0_i32 = arith.constant 0 : i32
    %c0_i32_0 = arith.constant 0 : i32
    %c0_i32_1 = arith.constant 0 : i32
    return %c0_i32, %c0_i32_0 : i32, i32
  }
  func.func @transform_6(%arg0: i32) -> (i32, i32) {
    %c0_i32 = arith.constant 0 : i32
    %c0_i32_0 = arith.constant 0 : i32
    %c0_i32_1 = arith.constant 0 : i32
    return %c0_i32, %c0_i32_0 : i32, i32
  }
  func.func @transform_7(%arg0: i32) -> (i32, i32) {
    %c0_i32 = arith.constant 0 : i32
    %c0_i32_0 = arith.constant 0 : i32
    %c0_i32_1 = arith.constant 0 : i32
    return %c0_i32, %c0_i32_0 : i32, i32
  }
  func.func @transform_8(%arg0: i32) -> (i32, i32, i32, i32) {
    %c0_i32 = arith.constant 0 : i32
    %c0_i32_0 = arith.constant 0 : i32
    %c0_i32_1 = arith.constant 0 : i32
    %c0_i32_2 = arith.constant 0 : i32
    %c0_i32_3 = arith.constant 0 : i32
    return %c0_i32, %c0_i32_0, %c0_i32_1, %c0_i32_2 : i32, i32, i32, i32
  }
  func.func @transform_9(%arg0: i32) -> (i32, i32, i32, i32) {
    %c0_i32 = arith.constant 0 : i32
    %c0_i32_0 = arith.constant 0 : i32
    %c0_i32_1 = arith.constant 0 : i32
    %c0_i32_2 = arith.constant 0 : i32
    %c0_i32_3 = arith.constant 0 : i32
    return %c0_i32, %c0_i32_0, %c0_i32_1, %c0_i32_2 : i32, i32, i32, i32
  }
  func.func @transform_10(%arg0: i32) -> (i32, i32, i32) {
    %c0_i32 = arith.constant 0 : i32
    %c0_i32_0 = arith.constant 0 : i32
    %c0_i32_1 = arith.constant 0 : i32
    return %arg0, %c0_i32, %c0_i32_0 : i32, i32, i32
  }
  func.func @transform_11(%arg0: i32) -> (i32, i32, i32) {
    %c0_i32 = arith.constant 0 : i32
    %c0_i32_0 = arith.constant 0 : i32
    %c0_i32_1 = arith.constant 0 : i32
    return %arg0, %c0_i32, %c0_i32_0 : i32, i32, i32
  }
}

</mosaic_0001>

<bundles_post_ra>
// kernel: tpu_custom_call.1
= control target key start
LH: loop header
LB: loop body
LE: loop exit
PB: predicated region body
PF: predicated region fallthrough
CT: control target
= control target key end

     0   :  { %s9001_s0 = inlined_call_operand.vmem [shape: f32[2,64,12], index: 0, kind: input, shape index: {}]   ;;  %s9002_s1 = inlined_call_operand.vmem [shape: bf16[108,32], index: 1, kind: input, shape index: {}]   ;;  %s9003_s2 = inlined_call_operand.vmem [shape: f32[1,32], index: 2, kind: input, shape index: {}]   ;;  %s9004_s3 = inlined_call_operand.vmem [shape: bf16[2,2,288,32], index: 3, kind: input, shape index: {}]   ;;  %s9005_s4 = inlined_call_operand.vmem [shape: f32[2,2,1,32], index: 4, kind: input, shape index: {}]   ;;  %s9006_s5 = inlined_call_operand.vmem [shape: f32[16,64], index: 5, kind: input, shape index: {}]   ;;  %s9007_s6 = inlined_call_operand.vmem [shape: bf16[32,64], index: 6, kind: input, shape index: {}]   ;;  %s9008_s7 = inlined_call_operand.vmem [shape: f32[1,64], index: 7, kind: input, shape index: {}]   ;;  %s9009_s8 = inlined_call_operand.vmem [shape: bf16[2,2,576,64], index: 8, kind: input, shape index: {}]   ;;  %s9010_s9 = inlined_call_operand.vmem [shape: f32[2,2,1,64], index: 9, kind: input, shape index: {}]   ;;  %s9011_s10 = inlined_call_operand.vmem [shape: f32[2,64,32], index: 10, kind: output, shape index: {0}]   ;;  %s9012_s11 = inlined_call_operand.hbm [shape: f32[2,16,64], index: 11, kind: output, shape index: {1}]  }
   0x1   :  { %9026 = sst [smem:[#allocation10_spill]] %s9001_s0 }
   0x2   :  { %9027 = sst [smem:[#allocation11_spill]] %s9002_s1 }
   0x3   :  { %9028 = sst [smem:[#allocation12_spill]] %s9003_s2 }
   0x4   :  { %17 = vsyncpa [#allocation7], 0 }
   0x5   :  { %19 = vsyncpa [#allocation7 + $0x1], 0  ;;  %s7397_s17 = smov 0   ;;  %s7399_s18 = smov 0  }
   0x6   :  { %s7401_s19 = smov 0   ;;  %s7403_s20 = smov 0  }
   0x7 LB: > { %s7418_s21 = sadd.s32 4294967295, %s7320_s20   ;;  %s5729_s22 = sadd.s32 4294967294, %s7320_s20   ;;  %s7320_s20 = sphi %s7403_s20, %s9046_s20   ;;  %s7316_s19 = sphi %s7401_s19, %s9045_s19   ;;  %s7312_s18 = sphi %s7399_s18, %s9044_s18   ;;  %s7308_s17 = sphi %s7397_s17, %s9043_s17  }
   0x8   : > { %s7422_s23 = sadd.s32 1, %s7320_s20   ;;  %s273_s24 = sadd.s32 1, %s7316_s19 }
   0x9   : > { %s270_s25 = ssub.s32 %s7320_s20, %s7422_s23  ;;  %p283_p0 = scmp.ne.s32.totalorder %s7316_s19, %s7312_s18 }
   0xa   : > { %p271_p1 = scmp.eq.s32.totalorder %s270_s25, 0  ;;  %p284_p2 = scmp.eq.s32.totalorder %s7418_s21, 1 }
   0xb   : > { %p289_p3 = scmp.ne.s32.totalorder %s7312_s18, %s7308_s17  ;;  %p290_p4 = scmp.eq.s32.totalorder %s5729_s22, 1 }
   0xc   : > { %s7433_s26 = scalar_select %p271_p1, %s7316_s19, %s273_s24  }
   0xd   : > { %p7435_p5 = por %p284_p2, %p283_p0  ;;  %p7439_p6 = por %p290_p4, %p289_p3 }
   0xe   : > { %9029 = sst [smem:[#allocation9_spill]] %s7433_s26  ;;  %p5732_p7 = scmp.ge.s32.totalorder %s7320_s20, 1 }
   0xf   : > { %p343_p8 = scmp.lt.s32.totalorder %s7320_s20, 3 }
  0x11   : > { %p344_p9 = pnand %p5732_p7, %p343_p8 }
  0x12   : > { %p388_p10 = scmp.lt.s32.totalorder (!%p344_p9), %s7418_s21, 1  ;;  %vm399_vm0 = vcmask (!%p344_p9), 261120   ;;  %vm401_vm1 = vcmask (!%p344_p9), 254976   ;;  %v7322_v0 = vmov (!%p344_p9), 0.0   ;;  %vm452_vm2 = vcmask (!%p344_p9), 97280   ;;  %s9032_s0 = sld [smem:[#allocation10_spill]] (!%p344_p9) }
  0x13   : > { %347 = sbr.rel (%p344_p9) target bundleno = 3877 (0xf25), region = 60  ;;  %400 = vst.msk [vmem:[#allocation2] sm:$0xff] (!%p344_p9), %vm399_vm0, %v7322_v0  ;;  %403 = vst.msk [vmem:[#allocation2 + $0x10] sm:$0xff] (!%p344_p9), %vm399_vm0, %v7322_v0  ;;  %s9033_s1 = sld [smem:[#allocation11_spill]] (!%p344_p9)  ;;  %vm806_vm3 = vcmask (!%p344_p9), 1045504   ;;  %vm505_vm4 = vcmask (!%p344_p9), 195680  }
  0x14   : > { %402 = vst.msk [vmem:[#allocation2 + $0x8] sm:$0x3] (!%p344_p9), %vm401_vm1, %v7322_v0  ;;  %404 = vst.msk [vmem:[#allocation2 + $0x18] sm:$0x3] (!%p344_p9), %vm401_vm1, %v7322_v0  ;;  %s7323_s22 = smov (!%p344_p9), 12   ;;  %s9018_s24 = smov (!%p344_p9), 24  }
  0x15   : > { %406 = vst.msk [vmem:[#allocation2 + $0x28] sm:$0x3] (!%p344_p9), %vm401_vm1, %v7322_v0  ;;  %408 = vst.msk [vmem:[#allocation2 + $0x38] sm:$0x3] (!%p344_p9), %vm401_vm1, %v7322_v0  ;;  %s9016_s15 = smov (!%p344_p9), 36   ;;  %s9014_s12 = smov (!%p344_p9), 48  }
  0x16   : > { %410 = vst.msk [vmem:[#allocation2 + $0x48] sm:$0x3] (!%p344_p9), %vm401_vm1, %v7322_v0  ;;  %412 = vst.msk [vmem:[#allocation2 + $0x58] sm:$0x3] (!%p344_p9), %vm401_vm1, %v7322_v0  ;;  %s7329_s13 = smov (!%p344_p9), 84   ;;  %vm538_vm5 = vcmask (!%p344_p9), 294080  }
  0x17   : > { %414 = vst.msk [vmem:[#allocation2 + $0x68] sm:$0x3] (!%p344_p9), %vm401_vm1, %v7322_v0  ;;  %416 = vst.msk [vmem:[#allocation2 + $0x78] sm:$0x3] (!%p344_p9), %vm401_vm1, %v7322_v0  ;;  %vm571_vm6 = vcmask (!%p344_p9), 392480   ;;  %vm604_vm7 = vcmask (!%p344_p9), 490880  }
  0x18   : > { %405 = vst.msk [vmem:[#allocation2 + $0x20] sm:$0xff] (!%p344_p9), %vm399_vm0, %v7322_v0  ;;  %407 = vst.msk [vmem:[#allocation2 + $0x30] sm:$0xff] (!%p344_p9), %vm399_vm0, %v7322_v0  ;;  %vm637_vm8 = vcmask (!%p344_p9), 589280   ;;  %vm671_vm9 = vcmask (!%p344_p9), 687680   ;;  %vm704_vm10 = vcmask (!%p344_p9), 786080   ;;  %vm737_vm11 = vcmask (!%p344_p9), 884480  }
  0x19   : > { %409 = vst.msk [vmem:[#allocation2 + $0x40] sm:$0xff] (!%p344_p9), %vm399_vm0, %v7322_v0  ;;  %411 = vst.msk [vmem:[#allocation2 + $0x50] sm:$0xff] (!%p344_p9), %vm399_vm0, %v7322_v0  ;;  %v6957_v11 = vld [vmem:[%s9033_s1] sm:$0xff] (!%p344_p9)   ;;  %v6958_v37 = vld [vmem:[%s9033_s1 + $0x8] sm:$0xff] (!%p344_p9)   ;;  %vm793_vm12 = vcmask (!%p344_p9), 883712   ;;  %s9037_s2 = sld [smem:[#allocation12_spill]] (!%p344_p9) }
  0x1a   : > { %413 = vst.msk [vmem:[#allocation2 + $0x60] sm:$0xff] %vm399_vm0, %v7322_v0  ;;  %415 = vst.msk [vmem:[#allocation2 + $0x70] sm:$0xff] %vm399_vm0, %v7322_v0  ;;  %s7489_s29 = scalar_select %p388_p10, %s7418_s21, 1  ;;  %v461_v12 = vld [vmem:[#allocation2] sm:$0xff]  ;;  %6742 = vmatprep.subr.bf16.mxu0 %v6957_v11  ;;  %v6959_v38 = vld [vmem:[%s9033_s1 + $0x10] sm:$0xff]   ;;  %vm964_vm13 = vcmask 523520  }
  0x1b   : > { %417 = vst.msk [vmem:[#allocation2 + $0x80] sm:$0xff] %vm399_vm0, %v7322_v0  ;;  %419 = vst.msk [vmem:[#allocation2 + $0x90] sm:$0xff] %vm399_vm0, %v7322_v0  ;;  %v477_v9 = vld [vmem:[#allocation2 + $0x1] sm:$0xff]  ;;  %6743 = vmatpush3.bf16.msra.mxu0 %v6957_v11  ;;  %v6960_v42 = vld [vmem:[%s9033_s1 + $0x18] sm:$0xff]   ;;  %vm997_vm14 = vcmask 785920   ;;  %vm1030_vm15 = vcmask 1048320  }
  0x1c   : > { %418 = vst.msk [vmem:[#allocation2 + $0x88] sm:$0x3] %vm401_vm1, %v7322_v0  ;;  %420 = vst.msk [vmem:[#allocation2 + $0x98] sm:$0x3] %vm401_vm1, %v7322_v0  ;;  %s9013_s30 = sshll.u32 %s7489_s29, 6  ;;  %v510_v10 = vld [vmem:[#allocation2 + $0x2] sm:$0xff]  ;;  %6744 = vmatprep.subr.bf16.mxu0 %v6958_v37 }
  0x1d   : > { %s392_s14 = scalar_lea.vmem %s9032_s0, %s9013_s30  ;;  %v6961_v45 = vld [vmem:[%s9033_s1 + $0x20] sm:$0xff]   ;;  %s7327_s30 = smov 60   ;;  %v6962_v47 = vld [vmem:[%s9033_s1 + $0x28] sm:$0xff]   ;;  %v6963_v48 = vld [vmem:[%s9033_s1 + $0x30] sm:$0x3f]   ;;  %vm3138_vm1 = vcmask 523264  }
  0x1e   : > { %v428_v1 = vld [vmem:[%s392_s14] sm:$0xff]  ;;  %v429_v2 = vld [vmem:[%s392_s14 + $0x8] sm:$0xff]  ;;  %v430_v3 = vld [vmem:[%s392_s14 + $0x10] sm:$0xff]  ;;  %v808_v54 = vsel %vm806_vm3, %v6963_v48, 0  ;;  %s9024_s0 = smov 32   ;;  %s9039_s25 = smov 64  }
  0x1f   : > { %453 = vst.msk [vmem:[#allocation2 + $0x11] sm:$0xff] %vm452_vm2, %v428_v1  ;;  %454 = vst.msk [vmem:[#allocation2 + $0x21] sm:$0xff] %vm452_vm2, %v429_v2  ;;  %v431_v4 = vld [vmem:[%s392_s14 + $0x18] sm:$0xff]  ;;  %v432_v5 = vld [vmem:[%s392_s14 + $0x20] sm:$0xff]  ;;  %6745 = vmatpush3.bf16.msra.mxu0 %v6958_v37 }
  0x20   : > { %455 = vst.msk [vmem:[#allocation2 + $0x31] sm:$0xff] %vm452_vm2, %v430_v3  ;;  %v433_v6 = vld [vmem:[%s392_s14 + $0x28] sm:$0xff]  ;;  %456 = vst.msk [vmem:[#allocation2 + $0x41] sm:$0xff] %vm452_vm2, %v431_v4  ;;  %v434_v7 = vld [vmem:[%s392_s14 + $0x30] sm:$0xff]  ;;  %6746 = vmatprep.subr.bf16.mxu0 %v6959_v38 }
  0x21   : > { %457 = vst.msk [vmem:[#allocation2 + $0x51] sm:$0xff] %vm452_vm2, %v432_v5  ;;  %458 = vst.msk [vmem:[#allocation2 + $0x61] sm:$0xff] %vm452_vm2, %v433_v6  ;;  %v435_v8 = vld [vmem:[%s392_s14 + $0x38] sm:$0xff]  ;;  %s9035_s14 = smov 36  }
  0x22   : > { %459 = vst.msk [vmem:[#allocation2 + $0x71] sm:$0xff] %vm452_vm2, %v434_v7  ;;  %460 = vst.msk [vmem:[#allocation2 + $0x81] sm:$0xff] %vm452_vm2, %v435_v8  ;;  %v650_v5 = vld [vmem:[#allocation2 + $0x90] sm:$0xff] }
  0x23   : > { %6747 = vmatpush3.bf16.msra.mxu0 %v6959_v38  ;;  %v683_v7 = vld [vmem:[#allocation2 + $0x91] sm:$0xff] }
  0x24   : > { %6748 = vmatprep.subr.bf16.mxu0 %v6960_v42 }
  0x26   : > { %v478_v13 = vld [vmem:[#allocation2 + $0x11] sm:$0xff]  ;;  %v479_v15 = vld [vmem:[#allocation2 + $0x21] sm:$0xff] }
  0x27   : > { %v511_v14 = vld [vmem:[#allocation2 + $0x12] sm:$0xff]  ;;  %v485_v16 = vpack.c.bf16 %v478_v13, %v477_v9  ;;  %v512_v19 = vld [vmem:[#allocation2 + $0x22] sm:$0xff]  ;;  %v584_v39 = vpack.c.bf16 %v479_v15, %v478_v13  ;;  %6749 = vmatpush3.bf16.msra.mxu0 %v6960_v42 }
  0x28   : > { %v518_v17 = vpack.c.bf16 %v511_v14, %v510_v10  ;;  %v480_v18 = vld [vmem:[#allocation2 + $0x31] sm:$0xff]  ;;  %v544_v23 = vld [vmem:[#allocation2 + $0x20] sm:$0xff]  ;;  %v617_v43 = vpack.c.bf16 %v512_v19, %v511_v14  ;;  %6750 = vmatprep.subr.bf16.mxu0 %v6961_v45 }
  0x29   : > { %v513_v20 = vld [vmem:[#allocation2 + $0x32] sm:$0xff]  ;;  %v7508_v21 = vpack.c.bf16 %v480_v18, %v479_v15  ;;  %493 = vrot.lane.b32.xlu0 %v485_v16, %s7323_s22  ;;  %v546_v28 = vld [vmem:[#allocation2 + $0x40] sm:$0xff] }
  0x2a   : > { %v543_v22 = vld [vmem:[#allocation2 + $0x10] sm:$0xff]  ;;  %526 = vrot.lane.b32.xlu1 %v518_v17, %s9018_s24  ;;  %v7512_v25 = vpack.c.bf16 %v513_v20, %v512_v19  ;;  %v7519_v31 = vld [vmem:[#allocation2 + $0x60] sm:$0xff] }
  0x2b   : > { %v545_v24 = vld [vmem:[#allocation2 + $0x30] sm:$0xff]  ;;  %v469_v27 = vpack.c.bf16 %v543_v22, %v461_v12  ;;  %v551_v33 = vpack.c.bf16 %v544_v23, %v543_v22  ;;  %v579_v36 = vld [vmem:[#allocation2 + $0x41] sm:$0xff]  ;;  %6751 = vmatpush3.bf16.msra.mxu0 %v6961_v45 }
  0x2c   : > { %v651_v26 = vpack.c.bf16 %v545_v24, %v544_v23  ;;  %v7514_v29 = vld [vmem:[#allocation2 + $0x50] sm:$0xff]  ;;  %v552_v34 = vpack.c.bf16 %v546_v28, %v545_v24  ;;  %v585_v40 = vpack.c.bf16 %v579_v36, %v480_v18  ;;  %v612_v41 = vld [vmem:[#allocation2 + $0x42] sm:$0xff]  ;;  %6752 = vmatprep.subr.bf16.mxu0 %v6962_v47 }
  0x2d   : > { %v652_v30 = vpack.c.bf16 %v7514_v29, %v546_v28  ;;  %473 = vst.msk [vmem:[#allocation3] sm:$0xff] %vm452_vm2, %v469_v27  ;;  %v7521_v32 = vld [vmem:[#allocation2 + $0x70] sm:$0xff]  ;;  %495 = vrot.lane.b32.xlu0 %v7508_v21, %s7323_s22  ;;  %v618_v44 = vpack.c.bf16 %v612_v41, %v513_v20  ;;  %v483_v51 = vld [vmem:[#allocation2 + $0x61] sm:$0xff]  ;;  %v553_v60 = vpack.c.bf16 %v7519_v31, %v7514_v29 }
  0x2e   : > { %474 = vst.msk [vmem:[#allocation3 + $0x18] sm:$0xff] %vm452_vm2, %v651_v26  ;;  %528 = vrot.lane.b32.xlu1 %v7512_v25, %s9018_s24  ;;  %v7529_v35 = vpack.c.bf16 %v7521_v32, %v7519_v31  ;;  %v679_v46 = vld [vmem:[#allocation2 + $0x51] sm:$0xff]  ;;  %s7328_s24 = smov 72   ;;  %v516_v55 = vld [vmem:[#allocation2 + $0x62] sm:$0xff] }
  0x2f   : > { %475 = vst.msk [vmem:[#allocation3 + $0x30] sm:$0xff] %vm452_vm2, %v652_v30  ;;  %v685_v49 = vpack.c.bf16 %v679_v46, %v579_v36  ;;  %v712_v50 = vld [vmem:[#allocation2 + $0x52] sm:$0xff]  ;;  %6753 = vmatpush3.bf16.msra.mxu0 %v6962_v47  ;;  %v550_v59 = vld [vmem:[#allocation2 + $0x80] sm:$0xff]  ;;  %v586_v63 = vpack.c.bf16 %v483_v51, %v679_v46 }
  0x30   : > { %476 = vst.msk [vmem:[#allocation3 + $0x48] sm:$0xff] %vm452_vm2, %v7529_v35  ;;  %v718_v52 = vpack.c.bf16 %v712_v50, %v612_v41  ;;  %v484_v53 = vld [vmem:[#allocation2 + $0x71] sm:$0xff]  ;;  %6903 = vmatprep.subr.msk.bf16.mxu0 %vm806_vm3, %v6963_v48  ;;  %v554_v61 = vpack.c.bf16 %v550_v59, %v7521_v32  ;;  %v583_v62 = vld [vmem:[#allocation2 + $0x81] sm:$0xff]  ;;  %v619_v3 = vpack.c.bf16 %v516_v55, %v712_v50  ;;  %vm7333_vm2 = vmmov 0  }
  0x31   : > { %559 = vrot.lane.b32.xlu0 %v551_v33, %s9016_s15  ;;  %v488_v56 = vpack.c.bf16 %v484_v53, %v483_v51  ;;  %v517_v57 = vld [vmem:[#allocation2 + $0x72] sm:$0xff]  ;;  %v587_v1 = vpack.c.bf16 %v583_v62, %v484_v53  ;;  %v616_v2 = vld [vmem:[#allocation2 + $0x82] sm:$0xff]  ;;  %v654_v6 = vpack.c.bf16 %v650_v5, %v550_v59  ;;  %v687_v8 = vpack.c.bf16 %v683_v7, %v583_v62 }
  0x32   : > { %561 = vrot.lane.b32.xlu1 %v552_v34, %s9016_s15  ;;  %s9020_s15 = smov 96   ;;  %v521_v58 = vpack.c.bf16 %v517_v57, %v516_v55  ;;  %v620_v4 = vpack.c.bf16 %v616_v2, %v517_v57  ;;  %v716_v9 = vld [vmem:[#allocation2 + $0x92] sm:$0xff]  ;;  %v6964_v47 = vld [vmem:[%s9004_s3 + $0x80] sm:$0xff]   ;;  %v6965_v48 = vld [vmem:[%s9004_s3 + $0x88] sm:$0xff]   ;;  %vm421_vm3 = vcmask 521216  }
  0x33   : > { %6755 = vmatpush3.bf16.msra.mxu0 %v808_v54  ;;  %v720_v10 = vpack.c.bf16 %v716_v9, %v616_v2  ;;  %v6967_v50 = vld [vmem:[%s9004_s3] sm:$0xff]   ;;  %v6968_v51 = vld [vmem:[%s9004_s3 + $0x48] sm:$0xff]   ;;  %v6970_v53 = vld [vmem:[%s9004_s3 + $0x50] sm:$0xff]   ;;  %423 = vst.msk [vmem:[#allocation4 + $0x8] sm:$0x3f] %vm421_vm3, %v7322_v0 }
  0x34   : > { %6764 = vmatprep.subr.bf16.mxu0 %v6964_v47  ;;  %v6971_v54 = vld [vmem:[%s9004_s3 + $0x10] sm:$0xff]   ;;  %v7649_v55 = vld [vmem:[%s9037_s2] ss:$0 sm:$0xff]  ;;  %v6973_v62 = vld [vmem:[%s9004_s3 + $0x18] sm:$0xff]   ;;  %424 = vst.msk [vmem:[#allocation4 + $0x10] sm:$0x3f] %vm421_vm3, %v7322_v0 }
  0x35   : > { %592 = vrot.lane.b32.xlu0 %v584_v39, %s9014_s12  ;;  %422 = vst.msk [vmem:[#allocation4] sm:$0x3f] %vm421_vm3, %v7322_v0  ;;  %425 = vst.msk [vmem:[#allocation4 + $0x18] sm:$0x3f] %vm421_vm3, %v7322_v0 }
  0x36   : > { %594 = vrot.lane.b32.xlu1 %v585_v40, %s9014_s12  ;;  %s9034_s12 = smov 24   ;;  %426 = vst.msk [vmem:[#allocation4 + $0x20] sm:$0x3f] %vm421_vm3, %v7322_v0  ;;  %427 = vst.msk [vmem:[#allocation4 + $0x28] sm:$0x3f] %vm421_vm3, %v7322_v0 }
  0x39   : > { %625 = vrot.lane.b32.xlu0 %v617_v43, %s7327_s30 }
  0x3a   : > { %627 = vrot.lane.b32.xlu1 %v618_v44, %s7327_s30 }
  0x3d   : > { %659 = vrot.lane.b32.xlu0 %v651_v26, %s7328_s24 }
  0x3e   : > { %661 = vrot.lane.b32.xlu1 %v652_v30, %s7328_s24 }
  0x41   : > { %692 = vrot.lane.b32.xlu0 %v7508_v21, %s7329_s13 }
  0x42   : > { %694 = vrot.lane.b32.xlu1 %v685_v49, %s7329_s13 }
  0x45   : > { %725 = vrot.lane.b32.xlu0 %v7512_v25, %s9020_s15 }
  0x46   : > { %727 = vrot.lane.b32.xlu1 %v718_v52, %s9020_s15 }
  0x49   : > { %497 = vrot.lane.b32.xlu0 %v685_v49, %s7323_s22  ;;  %v6966_v49 = vld [vmem:[%s9004_s3 + $0x40] sm:$0xff]  }
  0x4a   : > { %499 = vrot.lane.b32.xlu1 %v488_v56, %s7323_s22  ;;  %s9036_s22 = smov 48   ;;  %6349 = vmatprep.subr.bf16.mxu1 %v6966_v49 }
  0x4b   : > { %6350 = vmatpush3.bf16.msra.mxu1 %v6967_v50 }
  0x4c   : > { %6351 = vmatprep.subr.bf16.mxu1 %v6968_v51 }
  0x4d   : > { %530 = vrot.lane.b32.xlu0 %v718_v52, %s9034_s12  ;;  %v6969_v52 = vld [vmem:[%s9004_s3 + $0x8] sm:$0xff]  }
  0x4e   : > { %532 = vrot.lane.b32.xlu1 %v521_v58, %s9034_s12  ;;  %s9022_s12 = smov 64  }
  0x4f   : > { %6352 = vmatpush3.bf16.msra.mxu1 %v6969_v52 }
  0x50   : > { %6353 = vmatprep.subr.bf16.mxu1 %v6970_v53 }
  0x51   : > { %563 = vrot.lane.b32.xlu0 %v553_v60, %s9035_s14 }
  0x52   : > { %565 = vrot.lane.b32.xlu1 %v554_v61, %s9035_s14  ;;  %v6972_v61 = vld [vmem:[%s9004_s3 + $0x58] sm:$0xff]  }
  0x53   : > { %6354 = vmatpush3.bf16.msra.mxu1 %v6971_v54 }
  0x54   : > { %6355 = vmatprep.subr.bf16.mxu1 %v6972_v61  ;;  %v7255_v61 = vld [vmem:[#allocation2 + $0x92] sm:$0xff] }
  0x55   : > { %596 = vrot.lane.b32.xlu0 %v586_v63, %s9036_s22 }
  0x56   : > { %598 = vrot.lane.b32.xlu1 %v587_v1, %s9036_s22  ;;  %s9041_s22 = sshll.u32 %s7489_s29, 6 }
  0x57   : > { %6356 = vmatpush3.bf16.msra.mxu1 %v6973_v62 }
  0x59   : > { %629 = vrot.lane.b32.xlu0 %v619_v3, %s7327_s30  ;;  %v6974_v3 = vld [vmem:[%s9004_s3 + $0x60] sm:$0xff]  }
  0x5a   : > { %631 = vrot.lane.b32.xlu1 %v620_v4, %s7327_s30  ;;  %v6975_v4 = vld [vmem:[%s9004_s3 + $0x20] sm:$0xff]   ;;  %6357 = vmatprep.subr.bf16.mxu1 %v6974_v3 }
  0x5b   : > { %6358 = vmatpush3.bf16.msra.mxu1 %v6975_v4 }
  0x5d   : > { %663 = vrot.lane.b32.xlu0 %v7529_v35, %s7328_s24 }
  0x5e   : > { %665 = vrot.lane.b32.xlu1 %v654_v6, %s7328_s24  ;;  %s9038_s24 = smov 96  }
  0x61   : > { %696 = vrot.lane.b32.xlu0 %v488_v56, %s7329_s13 }
  0x62   : > { %698 = vrot.lane.b32.xlu1 %v687_v8, %s7329_s13  ;;  %s8333_s13 = scalar_lea.vmem %s9011_s10, %s9041_s22 }
  0x65   : > { %729 = vrot.lane.b32.xlu0 %v521_v58, %s9020_s15 }
  0x66   : > { %731 = vrot.lane.b32.xlu1 %v720_v10, %s9020_s15  ;;  %v7252_v10 = vld [vmem:[#allocation2 + $0x1] sm:$0xff]  ;;  %s6337_s15 = sshll.u32 %s7418_s21, 8 }
  0x67   : > { %s8953_s30 = scalar_lea.hbm %s9012_s11, %s6337_s15 }
  0x9b   : > { %v494_v11 = vpop.permute.xlu0 %493 }
  0x9c   : > { %v527_v12 = vpop.permute.xlu1 %526  ;;  %506 = vst.msk [vmem:[#allocation3] sm:$0xff] %vm505_vm4, %v494_v11 }
  0x9d   : > { %539 = vst.msk [vmem:[#allocation3] sm:$0xff] %vm538_vm5, %v527_v12 }
  0x9f   : > { %v496_v13 = vpop.permute.xlu0 %495 }
  0xa0   : > { %v529_v14 = vpop.permute.xlu1 %528  ;;  %507 = vst.msk [vmem:[#allocation3 + $0x18] sm:$0xff] %vm505_vm4, %v496_v13 }
  0xa1   : > { %540 = vst.msk [vmem:[#allocation3 + $0x18] sm:$0xff] %vm538_vm5, %v529_v14 }
  0xa3   : > { %v560_v15 = vpop.permute.xlu0 %559 }
  0xa4   : > { %v562_v16 = vpop.permute.xlu1 %561  ;;  %572 = vst.msk [vmem:[#allocation3] sm:$0xff] %vm571_vm6, %v560_v15  ;;  %v7253_v15 = vld [vmem:[#allocation2] sm:$0xff] }
  0xa5   : > { %573 = vst.msk [vmem:[#allocation3 + $0x18] sm:$0xff] %vm571_vm6, %v562_v16 }
  0xa7   : > { %v593_v17 = vpop.permute.xlu0 %592 }
  0xa8   : > { %v595_v18 = vpop.permute.xlu1 %594  ;;  %605 = vst.msk [vmem:[#allocation3] sm:$0xff] %vm604_vm7, %v593_v17 }
  0xa9   : > { %606 = vst.msk [vmem:[#allocation3 + $0x18] sm:$0xff] %vm604_vm7, %v595_v18 }
  0xab   : > { %v626_v19 = vpop.permute.xlu0 %625 }
  0xac   : > { %v628_v20 = vpop.permute.xlu1 %627  ;;  %638 = vst.msk [vmem:[#allocation3] sm:$0xff] %vm637_vm8, %v626_v19 }
  0xad   : > { %639 = vst.msk [vmem:[#allocation3 + $0x18] sm:$0xff] %vm637_vm8, %v628_v20 }
  0xaf   : > { %v660_v21 = vpop.permute.xlu0 %659 }
  0xb0   : > { %v662_v22 = vpop.permute.xlu1 %661  ;;  %672 = vst.msk [vmem:[#allocation3] sm:$0xff] %vm671_vm9, %v660_v21 }
  0xb1   : > { %673 = vst.msk [vmem:[#allocation3 + $0x18] sm:$0xff] %vm671_vm9, %v662_v22 }
  0xb3   : > { %v693_v23 = vpop.permute.xlu0 %692 }
  0xb4   : > { %v695_v24 = vpop.permute.xlu1 %694  ;;  %705 = vst.msk [vmem:[#allocation3] sm:$0xff] %vm704_vm10, %v693_v23 }
  0xb5   : > { %706 = vst.msk [vmem:[#allocation3 + $0x18] sm:$0xff] %vm704_vm10, %v695_v24  ;;  %v6976_v24 = vld [vmem:[%s9004_s3 + $0x68] sm:$0xff]  }
  0xb6   : > { %6359 = vmatprep.subr.bf16.mxu1 %v6976_v24 }
  0xb7   : > { %v726_v25 = vpop.permute.xlu0 %725 }
  0xb8   : > { %v728_v26 = vpop.permute.xlu1 %727  ;;  %738 = vst.msk [vmem:[#allocation3] sm:$0xff] %vm737_vm11, %v726_v25  ;;  %v6977_v25 = vld [vmem:[%s9004_s3 + $0x28] sm:$0xff]  }
  0xb9   : > { %739 = vst.msk [vmem:[#allocation3 + $0x18] sm:$0xff] %vm737_vm11, %v728_v26  ;;  %v6978_v26 = vld [vmem:[%s9004_s3 + $0x70] sm:$0xff]   ;;  %6360 = vmatpush3.bf16.msra.mxu1 %v6977_v25 }
  0xba   : > { %6361 = vmatprep.subr.bf16.mxu1 %v6978_v26 }
  0xbb   : > { %v498_v27 = vpop.permute.xlu0 %497 }
  0xbc   : > { %v500_v28 = vpop.permute.xlu1 %499  ;;  %508 = vst.msk [vmem:[#allocation3 + $0x30] sm:$0xff] %vm505_vm4, %v498_v27 }
  0xbd   : > { %509 = vst.msk [vmem:[#allocation3 + $0x48] sm:$0xff] %vm505_vm4, %v500_v28  ;;  %v7254_v28 = vld [vmem:[#allocation2 + $0x2] sm:$0xff]  ;;  %vm3404_vm4 = vcmask 1048064  }
  0xbf   : > { %v531_v29 = vpop.permute.xlu0 %530  ;;  %v742_v31 = vld [vmem:[#allocation3] sm:$0xff] }
  0xc0   : > { %v533_v30 = vpop.permute.xlu1 %532  ;;  %v743_v32 = vld [vmem:[#allocation3 + $0x18] sm:$0xff]  ;;  %541 = vst.msk [vmem:[#allocation3 + $0x30] sm:$0xff] %vm538_vm5, %v531_v29  ;;  %6756 = vmatprep.mubr.msk.bf16.mxu0 %vm793_vm12, %v742_v31 }
  0xc1   : > { %542 = vst.msk [vmem:[#allocation3 + $0x48] sm:$0xff] %vm538_vm5, %v533_v30  ;;  %6757 = vmatmul.mubr.msk.bf16.vlgmr.msra.gmra.mrb[0].mxu0 %vm793_vm12, %v743_v32  ;;  %v6979_v32 = vld [vmem:[%s9004_s3 + $0x30] sm:$0xff]  }
  0xc2   : > { %6765 = vmatpush3.bf16.msra.mxu0 %v6964_v47  ;;  %6362 = vmatpush3.bf16.msra.mxu1 %v6979_v32 }
  0xc3   : > { %v564_v33 = vpop.permute.xlu0 %563  ;;  %6766 = vmatprep.subr.bf16.mxu0 %v6965_v48 }
  0xc4   : > { %v566_v34 = vpop.permute.xlu1 %565  ;;  %574 = vst.msk [vmem:[#allocation3 + $0x30] sm:$0xff] %vm571_vm6, %v564_v33  ;;  %v6980_v33 = vld [vmem:[%s9004_s3 + $0x78] sm:$0xff]  }
  0xc5   : > { %575 = vst.msk [vmem:[#allocation3 + $0x48] sm:$0xff] %vm571_vm6, %v566_v34  ;;  %6363 = vmatprep.subr.bf16.mxu1 %v6980_v33 }
  0xc6   : > { %6767 = vmatpush3.bf16.msra.mxu0 %v6965_v48 }
  0xc7   : > { %v597_v35 = vpop.permute.xlu0 %596 }
  0xc8   : > { %v599_v36 = vpop.permute.xlu1 %598  ;;  %607 = vst.msk [vmem:[#allocation3 + $0x30] sm:$0xff] %vm604_vm7, %v597_v35  ;;  %v6981_v35 = vld [vmem:[%s9004_s3 + $0x38] sm:$0xff]  }
  0xc9   : > { %608 = vst.msk [vmem:[#allocation3 + $0x48] sm:$0xff] %vm604_vm7, %v599_v36  ;;  %6364 = vmatpush3.bf16.msra.mxu1 %v6981_v35 }
  0xcb   : > { %v630_v37 = vpop.permute.xlu0 %629 }
  0xcc   : > { %v632_v38 = vpop.permute.xlu1 %631  ;;  %640 = vst.msk [vmem:[#allocation3 + $0x30] sm:$0xff] %vm637_vm8, %v630_v37 }
  0xcd   : > { %641 = vst.msk [vmem:[#allocation3 + $0x48] sm:$0xff] %vm637_vm8, %v632_v38 }
  0xcf   : > { %v664_v39 = vpop.permute.xlu0 %663 }
  0xd0   : > { %v666_v40 = vpop.permute.xlu1 %665  ;;  %674 = vst.msk [vmem:[#allocation3 + $0x30] sm:$0xff] %vm671_vm9, %v664_v39 }
  0xd1   : > { %675 = vst.msk [vmem:[#allocation3 + $0x48] sm:$0xff] %vm671_vm9, %v666_v40 }
  0xd3   : > { %v697_v41 = vpop.permute.xlu0 %696 }
  0xd4   : > { %v699_v42 = vpop.permute.xlu1 %698  ;;  %707 = vst.msk [vmem:[#allocation3 + $0x30] sm:$0xff] %vm704_vm10, %v697_v41 }
  0xd5   : > { %708 = vst.msk [vmem:[#allocation3 + $0x48] sm:$0xff] %vm704_vm10, %v699_v42 }
  0xd7   : > { %v730_v43 = vpop.permute.xlu0 %729 }
  0xd8   : > { %v732_v44 = vpop.permute.xlu1 %731  ;;  %740 = vst.msk [vmem:[#allocation3 + $0x30] sm:$0xff] %vm737_vm11, %v730_v43 }
  0xd9   : > { %741 = vst.msk [vmem:[#allocation3 + $0x48] sm:$0xff] %vm737_vm11, %v732_v44 }
  0xdf   : > { %v744_v45 = vld [vmem:[#allocation3 + $0x30] sm:$0xff] }
  0xe0   : > { %v745_v46 = vld [vmem:[#allocation3 + $0x48] sm:$0xff]  ;;  %6760 = vmatprep.mubr.msk.bf16.mxu0 %vm793_vm12, %v744_v45 }
  0xe1   : > { %6761 = vmatmul.mubr.msk.bf16.gmra.mrb[4].mxu0 %vm793_vm12, %v745_v46 }
 0x194   : > { %v6758_v56 = vpop.f32.mrb[0].mxu0 }
 0x195   : > { %v7652_v57 = vadd.f32 %v6758_v56, %v7649_v55  ;;  %v844_v58 = vpop.f32.mrb[1].mxu0 }
 0x196   : > { %v7655_v59 = vadd.f32 %v7649_v55, %v844_v58  ;;  %v6759_v60 = vpop.f32.mrb[2].mxu0 }
 0x197   : > { %914 = vst.msk [vmem:[#allocation2 + $0x31] sm:$0xff] %vm399_vm0, %v7652_v57  ;;  %v7666_v63 = vadd.f32 %v6759_v60, %v7649_v55  ;;  %v847_v1 = vpop.f32.mrb[3].mxu0 }
 0x198   : > { %912 = vst.msk [vmem:[#allocation2 + $0x11] sm:$0xff] %vm399_vm0, %v7655_v59  ;;  %v7671_v2 = vadd.f32 %v7649_v55, %v847_v1 }
 0x199   : > { %915 = vst.msk [vmem:[#allocation2 + $0x41] sm:$0xff] %vm399_vm0, %v7666_v63 }
 0x19a   : > { %913 = vst.msk [vmem:[#allocation2 + $0x21] sm:$0xff] %vm399_vm0, %v7671_v2 }
 0x19e   : > { %v1053_v5 = vld [vmem:[#allocation2 + $0x32] sm:$0xff] }
 0x19f   : > { %v937_v6 = vld [vmem:[#allocation2 + $0x11] sm:$0xff] }
 0x1a0   : > { %v1004_v7 = vld [vmem:[#allocation2 + $0x30] sm:$0xff]  ;;  %v944_v11 = vpack.c.bf16 %v937_v6, %v7252_v10  ;;  %v7683_v12 = vld [vmem:[#allocation2 + $0x42] sm:$0xff] }
 0x1a1   : > { %v1002_v8 = vld [vmem:[#allocation2 + $0x10] sm:$0xff]  ;;  %v7685_v14 = vld [vmem:[#allocation2 + $0x41] sm:$0xff]  ;;  %v1060_v17 = vpack.c.bf16 %v7683_v12, %v1053_v5 }
 0x1a2   : > { %v1116_v9 = vld [vmem:[#allocation2 + $0x31] sm:$0xff]  ;;  %v928_v16 = vpack.c.bf16 %v1002_v8, %v7253_v15  ;;  %v1052_v18 = vld [vmem:[#allocation2 + $0x22] sm:$0xff]  ;;  %952 = vrot.lane.b32.xlu1 %v944_v11, %s9024_s0 }
 0x1a3   : > { %v970_v13 = vld [vmem:[#allocation2 + $0x12] sm:$0xff]  ;;  %v1083_v19 = vld [vmem:[#allocation2 + $0x20] sm:$0xff]  ;;  %v1044_v21 = vpack.c.bf16 %v7685_v14, %v1116_v9  ;;  %v1155_v23 = vpack.c.bf16 %v1053_v5, %v1052_v18  ;;  %1069 = vrot.lane.b32.xlu0 %v1060_v17, %s9024_s0 }
 0x1a4   : > { %v1115_v20 = vld [vmem:[#allocation2 + $0x21] sm:$0xff]  ;;  %v1091_v22 = vpack.c.bf16 %v1004_v7, %v1083_v19  ;;  %932 = vst.msk [vmem:[#allocation3] sm:$0xff] %vm399_vm0, %v928_v16  ;;  %v977_v29 = vpack.c.bf16 %v970_v13, %v7254_v28  ;;  %v1059_v30 = vpack.c.bf16 %v1052_v18, %v970_v13  ;;  %v1010_v37 = vpack.c.bf16 %v1083_v19, %v1002_v8  ;;  %v7256_v17 = vld [vmem:[#allocation2 + $0x90] sm:$0xff] }
 0x1a5   : > { %1048 = vst.msk [vmem:[#allocation3 + $0x20] sm:$0xff] %vm399_vm0, %v1044_v21  ;;  %v1043_v27 = vpack.c.bf16 %v1115_v20, %v937_v6  ;;  %1159 = vst.msk [vmem:[#allocation3 + $0x10] sm:$0xff] %vm399_vm0, %v1155_v23  ;;  %v1005_v31 = vld [vmem:[#allocation2 + $0x40] sm:$0xff]  ;;  %v1123_v38 = vpack.c.bf16 %v1116_v9, %v1115_v20  ;;  %v7257_v19 = vld [vmem:[#allocation2 + $0x91] sm:$0xff] }
 0x1a6   : > { %933 = vst.msk [vmem:[#allocation3 + $0x18] sm:$0xff] %vm399_vm0, %v1091_v22  ;;  %985 = vrot.lane.b32.xlu1 %v977_v29, %s9022_s12  ;;  %v1011_v34 = vpack.c.bf16 %v1005_v31, %v1004_v7 }
 0x1a7   : > { %1047 = vst.msk [vmem:[#allocation3 + $0x8] sm:$0xff] %vm399_vm0, %v1043_v27  ;;  %1067 = vrot.lane.b32.xlu0 %v1059_v30, %s9024_s0 }
 0x1aa   : > { %1020 = vrot.lane.b32.xlu1 %v1011_v34, %s9038_s24 }
 0x1ab   : > { %1099 = vrot.lane.b32.xlu0 %v1091_v22, %s9022_s12 }
 0x1ac   : > { %v1165_v36 = vld [vmem:[#allocation3 + $0x10] sm:$0xff] }
 0x1ad   : > { %6768 = vmatprep.mubr.msk.bf16.mxu0 %vm399_vm0, %v1165_v36 }
 0x1ae   : > { %1018 = vrot.lane.b32.xlu1 %v1010_v37, %s9038_s24 }
 0x1af   : > { %1131 = vrot.lane.b32.xlu0 %v1123_v38, %s9038_s24 }
 0x1b2   : > { %954 = vrot.lane.b32.xlu1 %v1123_v38, %s9024_s0 }
 0x1b4   : > { %v6762_v39 = vpop.f32.mrb[4].mxu0 }
 0x1b5   : > { %v7723_v40 = vadd.f32 %v6762_v39, %v7649_v55  ;;  %v860_v41 = vpop.f32.mrb[5].mxu0 }
 0x1b6   : > { %v7726_v42 = vadd.f32 %v7649_v55, %v860_v41  ;;  %v6763_v43 = vpop.f32.mrb[6].mxu0  ;;  %987 = vrot.lane.b32.xlu1 %v1155_v23, %s9022_s12 }
 0x1b7   : > { %918 = vst.msk [vmem:[#allocation2 + $0x71] sm:$0xff] %vm399_vm0, %v7723_v40  ;;  %v7732_v44 = vadd.f32 %v6763_v43, %v7649_v55  ;;  %v863_v45 = vpop.f32.mrb[7].mxu0 }
 0x1b8   : > { %916 = vst.msk [vmem:[#allocation2 + $0x51] sm:$0xff] %vm399_vm0, %v7726_v42  ;;  %v7737_v46 = vadd.f32 %v7649_v55, %v863_v45 }
 0x1b9   : > { %919 = vst.msk [vmem:[#allocation2 + $0x81] sm:$0xff] %vm399_vm0, %v7732_v44 }
 0x1ba   : > { %917 = vst.msk [vmem:[#allocation2 + $0x61] sm:$0xff] %vm399_vm0, %v7737_v46 }
 0x1be   : > { %v1057_v53 = vld [vmem:[#allocation2 + $0x72] sm:$0xff] }
 0x1bf   : > { %v1086_v47 = vld [vmem:[#allocation2 + $0x50] sm:$0xff] }
 0x1c0   : > { %v941_v48 = vld [vmem:[#allocation2 + $0x51] sm:$0xff]  ;;  %v1092_v50 = vpack.c.bf16 %v1086_v47, %v1005_v31  ;;  %v1058_v54 = vld [vmem:[#allocation2 + $0x82] sm:$0xff] }
 0x1c1   : > { %v974_v49 = vld [vmem:[#allocation2 + $0x52] sm:$0xff]  ;;  %v946_v51 = vpack.c.bf16 %v941_v48, %v7685_v14  ;;  %v1121_v56 = vld [vmem:[#allocation2 + $0x81] sm:$0xff]  ;;  %v1158_v62 = vpack.c.bf16 %v7255_v61, %v1058_v54  ;;  %v1062_v8 = vpack.c.bf16 %v1058_v54, %v1057_v53 }
 0x1c2   : > { %v979_v52 = vpack.c.bf16 %v974_v49, %v7683_v12  ;;  %v1007_v58 = vld [vmem:[#allocation2 + $0x60] sm:$0xff]  ;;  %1101 = vrot.lane.b32.xlu0 %v1092_v50, %s9022_s12  ;;  %v943_v3 = vld [vmem:[#allocation2 + $0x71] sm:$0xff]  ;;  %934 = vst.msk [vmem:[#allocation3 + $0x30] sm:$0xff] %vm399_vm0, %v1092_v50  ;;  %v1126_v20 = vpack.c.bf16 %v7257_v19, %v1121_v56 }
 0x1c3   : > { %v1151_v55 = vld [vmem:[#allocation2 + $0x62] sm:$0xff]  ;;  %956 = vrot.lane.b32.xlu1 %v946_v51, %s9024_s0  ;;  %v1088_v4 = vld [vmem:[#allocation2 + $0x70] sm:$0xff]  ;;  %1162 = vst.msk [vmem:[#allocation3 + $0x58] sm:$0xff] %vm399_vm0, %v1158_v62  ;;  %v1046_v6 = vpack.c.bf16 %v1121_v56, %v943_v3  ;;  %v1012_v10 = vpack.c.bf16 %v1007_v58, %v1086_v47 }
 0x1c4   : > { %v942_v60 = vld [vmem:[#allocation2 + $0x61] sm:$0xff]  ;;  %1160 = vst.msk [vmem:[#allocation3 + $0x28] sm:$0xff] %vm399_vm0, %v979_v52  ;;  %v1157_v1 = vpack.c.bf16 %v1057_v53, %v1151_v55  ;;  %v1093_v5 = vpack.c.bf16 %v1088_v4, %v1007_v58  ;;  %v1061_v12 = vpack.c.bf16 %v1151_v55, %v974_v49 }
 0x1c5   : > { %v1045_v7 = vpack.c.bf16 %v942_v60, %v941_v48  ;;  %1050 = vst.msk [vmem:[#allocation3 + $0x50] sm:$0xff] %vm399_vm0, %v1046_v6  ;;  %v947_v13 = vpack.c.bf16 %v943_v3, %v942_v60  ;;  %v1009_v15 = vld [vmem:[#allocation2 + $0x80] sm:$0xff]  ;;  %v6982_v6 = vld [vmem:[%s9004_s3 + $0x110] sm:$0xff]  }
 0x1c6   : > { %1161 = vst.msk [vmem:[#allocation3 + $0x40] sm:$0xff] %vm399_vm0, %v1157_v1  ;;  %935 = vst.msk [vmem:[#allocation3 + $0x48] sm:$0xff] %vm399_vm0, %v1093_v5  ;;  %1133 = vrot.lane.b32.xlu0 %v946_v51, %s9038_s24  ;;  %v1013_v16 = vpack.c.bf16 %v1009_v15, %v1088_v4  ;;  %v1094_v18 = vpack.c.bf16 %v7256_v17, %v1009_v15  ;;  %6776 = vmatprep.subr.bf16.mxu0 %v6982_v6 }
 0x1c7   : > { %989 = vrot.lane.b32.xlu1 %v979_v52, %s9022_s12  ;;  %1049 = vst.msk [vmem:[#allocation3 + $0x38] sm:$0xff] %vm399_vm0, %v1045_v7  ;;  %v6983_v7 = vld [vmem:[%s9004_s3 + $0x118] sm:$0xff]  }
 0x1ca   : > { %1073 = vrot.lane.b32.xlu0 %v1062_v8, %s9024_s0  ;;  %v1174_v14 = vld [vmem:[#allocation3 + $0x58] sm:$0xff] }
 0x1cb   : > { %v1168_v9 = vld [vmem:[#allocation3 + $0x28] sm:$0xff]  ;;  %1022 = vrot.lane.b32.xlu1 %v1012_v10, %s9038_s24 }
 0x1cc   : > { %6769 = vmatmul.mubr.msk.bf16.vlgmr.msra.gmra.mrb[8].mxu0 %vm399_vm0, %v1168_v9  ;;  %v7814_v9 = vld [vmem:[%s9005_s4] ss:$0 sm:$0xff] }
 0x1cd   : > { %v1171_v11 = vld [vmem:[#allocation3 + $0x40] sm:$0xff]  ;;  %6777 = vmatpush3.bf16.msra.mxu0 %v6982_v6  ;;  %v6994_v6 = vld [vmem:[%s9004_s3 + $0xf8] sm:$0xff]  }
 0x1ce   : > { %6772 = vmatprep.mubr.msk.bf16.mxu0 %vm399_vm0, %v1171_v11  ;;  %1071 = vrot.lane.b32.xlu0 %v1061_v12, %s9024_s0 }
 0x1cf   : > { %958 = vrot.lane.b32.xlu1 %v947_v13, %s9024_s0  ;;  %6778 = vmatprep.subr.bf16.mxu0 %v6983_v7 }
 0x1d1   : > { %6779 = vmatpush3.bf16.msra.mxu0 %v6983_v7  ;;  %v6995_v7 = vld [vmem:[%s9004_s3 + $0xb8] sm:$0xff]  }
 0x1d2   : > { %1103 = vrot.lane.b32.xlu0 %v1093_v5, %s9022_s12 }
 0x1d3   : > { %991 = vrot.lane.b32.xlu1 %v1157_v1, %s9022_s12 }
 0x1d4   : > { %6773 = vmatmul.mubr.msk.bf16.gmra.mrb[12].mxu0 %vm399_vm0, %v1174_v14 }
 0x1d6   : > { %1135 = vrot.lane.b32.xlu0 %v947_v13, %s9038_s24 }
 0x1d7   : > { %1024 = vrot.lane.b32.xlu1 %v1013_v16, %s9038_s24 }
 0x1da   : > { %1105 = vrot.lane.b32.xlu0 %v1094_v18, %s9022_s12  ;;  %s385_s12 = sand.u32 1, %s7312_s18  }
 0x1db   : > { %s8960_s21 = scalar_lea.sflag [#allocation7], %s385_s12 }
 0x1de   : > { %1137 = vrot.lane.b32.xlu0 %v1126_v20, %s9038_s24 }
 0x214   : > { %v953_v21 = vpop.permute.xlu1 %952 }
 0x215   : > { %965 = vst.msk [vmem:[#allocation3] sm:$0xff] %vm964_vm13, %v953_v21  ;;  %v1070_v22 = vpop.permute.xlu0 %1069  ;;  %v6984_v21 = vld [vmem:[%s9004_s3 + $0xd0] sm:$0xff]  }
 0x216   : > { %1080 = vst.msk [vmem:[#allocation3 + $0x20] sm:$0xff] %vm964_vm13, %v1070_v22  ;;  %v6985_v22 = vld [vmem:[%s9004_s3 + $0x90] sm:$0xff]   ;;  %6395 = vmatprep.subr.bf16.mxu1 %v6984_v21 }
 0x218   : > { %v986_v23 = vpop.permute.xlu1 %985 }
 0x219   : > { %998 = vst.msk [vmem:[#allocation3] sm:$0xff] %vm997_vm14, %v986_v23  ;;  %v1068_v24 = vpop.permute.xlu0 %1067  ;;  %v7826_v23 = vld [vmem:[#allocation2 + $0x1] sm:$0xff] }
 0x21a   : > { %1079 = vst.msk [vmem:[#allocation3 + $0x8] sm:$0xff] %vm964_vm13, %v1068_v24  ;;  %v7828_v24 = vld [vmem:[#allocation2] sm:$0xff] }
 0x21c   : > { %v1021_v25 = vpop.permute.xlu1 %1020 }
 0x21d   : > { %v1100_v26 = vpop.permute.xlu0 %1099 }
 0x21e   : > { %1111 = vst.msk [vmem:[#allocation3 + $0x8] sm:$0xff] %vm997_vm14, %v1100_v26  ;;  %v6987_v26 = vld [vmem:[%s9004_s3 + $0x98] sm:$0xff]  }
 0x220   : > { %v1019_v27 = vpop.permute.xlu1 %1018 }
 0x221   : > { %1031 = vst.msk [vmem:[#allocation3] sm:$0xff] %vm1030_vm15, %v1019_v27  ;;  %v1132_v28 = vpop.permute.xlu0 %1131  ;;  %v6988_v27 = vld [vmem:[%s9004_s3 + $0xe0] sm:$0xff]  }
 0x222   : > { %1143 = vst.msk [vmem:[#allocation3 + $0x8] sm:$0xff] %vm1030_vm15, %v1132_v28 }
 0x224   : > { %v955_v29 = vpop.permute.xlu1 %954 }
 0x225   : > { %966 = vst.msk [vmem:[#allocation3 + $0x18] sm:$0xff] %vm964_vm13, %v955_v29 }
 0x228   : > { %v988_v30 = vpop.permute.xlu1 %987  ;;  %v1163_v32 = vld [vmem:[#allocation3] sm:$0xff] }
 0x229   : > { %999 = vst.msk [vmem:[#allocation3 + $0x18] sm:$0xff] %vm997_vm14, %v988_v30  ;;  %v1164_v31 = vld [vmem:[#allocation3 + $0x8] sm:$0xff] }
 0x22a   : > { %1032 = vst.msk [vmem:[#allocation3 + $0x18] sm:$0xff] %vm1030_vm15, %v1021_v25  ;;  %1333 = vmatprep.mubr.bf16.mxu1 %v1164_v31  ;;  %v6986_v25 = vld [vmem:[%s9004_s3 + $0xd8] sm:$0xff]   ;;  %v7840_v31 = vld [vmem:[#allocation2 + $0x2] sm:$0xff] }
 0x22b   : > { %1334 = vmatmul.mubr.bf16.vlgmr.msra.gmra.mrb[0].mxu1 %v1163_v32 }
 0x22c   : > { %6396 = vmatpush3.bf16.msra.mxu1 %v6985_v22 }
 0x22d   : > { %6397 = vmatprep.subr.bf16.mxu1 %v6986_v25 }
 0x230   : > { %6398 = vmatpush3.bf16.msra.mxu1 %v6987_v26 }
 0x231   : > { %v1166_v45 = vld [vmem:[#allocation3 + $0x18] sm:$0xff]  ;;  %6399 = vmatprep.subr.bf16.mxu1 %v6988_v27 }
 0x234   : > { %v1102_v33 = vpop.permute.xlu0 %1101 }
 0x235   : > { %v957_v34 = vpop.permute.xlu1 %956  ;;  %1112 = vst.msk [vmem:[#allocation3 + $0x20] sm:$0xff] %vm997_vm14, %v1102_v33  ;;  %v6989_v33 = vld [vmem:[%s9004_s3 + $0xa0] sm:$0xff]  }
 0x236   : > { %967 = vst.msk [vmem:[#allocation3 + $0x30] sm:$0xff] %vm964_vm13, %v957_v34  ;;  %v6990_v34 = vld [vmem:[%s9004_s3 + $0xe8] sm:$0xff]   ;;  %6400 = vmatpush3.bf16.msra.mxu1 %v6989_v33 }
 0x237   : > { %6401 = vmatprep.subr.bf16.mxu1 %v6990_v34 }
 0x238   : > { %v1134_v35 = vpop.permute.xlu0 %1133 }
 0x239   : > { %v990_v36 = vpop.permute.xlu1 %989  ;;  %1144 = vst.msk [vmem:[#allocation3 + $0x20] sm:$0xff] %vm1030_vm15, %v1134_v35 }
 0x23a   : > { %1000 = vst.msk [vmem:[#allocation3 + $0x30] sm:$0xff] %vm997_vm14, %v990_v36 }
 0x23c   : > { %v1074_v37 = vpop.permute.xlu0 %1073 }
 0x23d   : > { %1082 = vst.msk [vmem:[#allocation3 + $0x50] sm:$0xff] %vm964_vm13, %v1074_v37  ;;  %v1023_v38 = vpop.permute.xlu1 %1022 }
 0x23e   : > { %1033 = vst.msk [vmem:[#allocation3 + $0x30] sm:$0xff] %vm1030_vm15, %v1023_v38 }
 0x240   : > { %v1072_v39 = vpop.permute.xlu0 %1071  ;;  %v1167_v41 = vld [vmem:[#allocation3 + $0x20] sm:$0xff] }
 0x241   : > { %1081 = vst.msk [vmem:[#allocation3 + $0x38] sm:$0xff] %vm964_vm13, %v1072_v39  ;;  %v959_v43 = vpop.permute.xlu1 %958  ;;  %1341 = vmatprep.mubr.bf16.mxu1 %v1167_v41 }
 0x242   : > { %968 = vst.msk [vmem:[#allocation3 + $0x48] sm:$0xff] %vm964_vm13, %v959_v43  ;;  %1342 = vmatmul.mubr.bf16.gmra.mrb[4].mxu1 %v1166_v45  ;;  %v6991_v43 = vld [vmem:[%s9004_s3 + $0xa8] sm:$0xff]  }
 0x243   : > { %6402 = vmatpush3.bf16.msra.mxu1 %v6991_v43 }
 0x244   : > { %v1104_v47 = vpop.permute.xlu0 %1103 }
 0x245   : > { %1113 = vst.msk [vmem:[#allocation3 + $0x38] sm:$0xff] %vm997_vm14, %v1104_v47  ;;  %v992_v48 = vpop.permute.xlu1 %991  ;;  %v1169_v54 = vld [vmem:[#allocation3 + $0x30] sm:$0xff] }
 0x246   : > { %1001 = vst.msk [vmem:[#allocation3 + $0x48] sm:$0xff] %vm997_vm14, %v992_v48  ;;  %v6992_v48 = vld [vmem:[%s9004_s3 + $0xf0] sm:$0xff]  }
 0x247   : > { %6403 = vmatprep.subr.bf16.mxu1 %v6992_v48 }
 0x248   : > { %v1136_v49 = vpop.permute.xlu0 %1135 }
 0x249   : > { %1145 = vst.msk [vmem:[#allocation3 + $0x38] sm:$0xff] %vm1030_vm15, %v1136_v49  ;;  %v1025_v50 = vpop.permute.xlu1 %1024 }
 0x24a   : > { %1034 = vst.msk [vmem:[#allocation3 + $0x48] sm:$0xff] %vm1030_vm15, %v1025_v50 }
 0x24c   : > { %v1106_v51 = vpop.permute.xlu0 %1105 }
 0x24d   : > { %1114 = vst.msk [vmem:[#allocation3 + $0x50] sm:$0xff] %vm997_vm14, %v1106_v51 }
 0x250   : > { %v1138_v52 = vpop.permute.xlu0 %1137  ;;  %v1170_v53 = vld [vmem:[#allocation3 + $0x38] sm:$0xff] }
 0x251   : > { %1146 = vst.msk [vmem:[#allocation3 + $0x50] sm:$0xff] %vm1030_vm15, %v1138_v52  ;;  %1349 = vmatprep.mubr.bf16.mxu1 %v1170_v53  ;;  %v1172_v58 = vld [vmem:[#allocation3 + $0x48] sm:$0xff] }
 0x252   : > { %1350 = vmatmul.mubr.bf16.gmra.mrb[8].mxu1 %v1169_v54  ;;  %v6993_v54 = vld [vmem:[%s9004_s3 + $0xb0] sm:$0xff]  }
 0x253   : > { %6404 = vmatpush3.bf16.msra.mxu1 %v6993_v54 }
 0x254   : > { %6405 = vmatprep.subr.bf16.mxu1 %v6994_v6 }
 0x257   : > { %6406 = vmatpush3.bf16.msra.mxu1 %v6995_v7 }
 0x258   : > { %v1173_v56 = vld [vmem:[#allocation3 + $0x50] sm:$0xff] }
 0x259   : > { %1357 = vmatprep.mubr.bf16.mxu1 %v1173_v56 }
 0x25a   : > { %1358 = vmatmul.mubr.bf16.gmra.mrb[12].mxu1 %v1172_v58 }
 0x29f   : > { %v7793_v55 = vpop.f32.mrb[8].mxu0 }
 0x2a0   : > { %v1400_v60 = vpop.f32.mrb[9].mxu0 }
 0x2a1   : > { %v7795_v61 = vpop.f32.mrb[10].mxu0 }
 0x2a2   : > { %v1403_v62 = vpop.f32.mrb[11].mxu0 }
 0x2a7   : > { %v7797_v1 = vpop.f32.mrb[12].mxu0 }
 0x2a8   : > { %v7799_v3 = vpop.f32.mrb[13].mxu0 }
 0x2a9   : > { %v7801_v4 = vpop.f32.mrb[14].mxu0 }
 0x2aa   : > { %v7803_v5 = vpop.f32.mrb[15].mxu0 }
 0x2fe   : > { %v6365_v8 = vpop.f32.mrb[0].mxu1 }
 0x2ff   : > { %v6366_v10 = vpop.f32.mrb[1].mxu1 }
 0x300   : > { %v6367_v11 = vadd.f32 %v6366_v10, %v6365_v8  ;;  %v6368_v12 = vpop.f32.mrb[2].mxu1 }
 0x301   : > { %v6369_v13 = vpop.f32.mrb[3].mxu1 }
 0x302   : > { %v1336_v14 = vadd.f32 %v6367_v11, %v7814_v9  ;;  %v6370_v15 = vadd.f32 %v6369_v13, %v6368_v12  ;;  %v6997_v12 = vld [vmem:[%s9004_s3 + $0xc0] sm:$0xff]  }
 0x304   : > { %v1401_v16 = vadd.f32 %v1400_v60, %v1336_v14  ;;  %v1339_v17 = vadd.f32 %v6370_v15, %v7814_v9  ;;  %v6999_v14 = vld [vmem:[%s9004_s3 + $0xc8] sm:$0xff]  }
 0x306   : > { %v1431_v18 = vmax.f32 %v1401_v16, 0.0  ;;  %v1404_v19 = vadd.f32 %v1403_v62, %v1339_v17 }
 0x308   : > { %1478 = vst.msk [vmem:[#allocation2 + $0x11] sm:$0xff] %vm399_vm0, %v1431_v18  ;;  %v1432_v20 = vmax.f32 %v1404_v19, 0.0 }
 0x30a   : > { %1479 = vst.msk [vmem:[#allocation2 + $0x21] sm:$0xff] %vm399_vm0, %v1432_v20 }
 0x30f   : > { %v1503_v28 = vld [vmem:[#allocation2 + $0x11] sm:$0xff] }
 0x310   : > { %v1566_v29 = vld [vmem:[#allocation2 + $0x10] sm:$0xff]  ;;  %v1510_v30 = vpack.c.bf16 %v1503_v28, %v7826_v23 }
 0x311   : > { %v1494_v32 = vpack.c.bf16 %v1566_v29, %v7828_v24  ;;  %v1614_v35 = vld [vmem:[#allocation2 + $0x12] sm:$0xff]  ;;  %v1615_v36 = vld [vmem:[#allocation2 + $0x22] sm:$0xff] }
 0x312   : > { %v1504_v37 = vld [vmem:[#allocation2 + $0x21] sm:$0xff]  ;;  %1518 = vrot.lane.b32.xlu1 %v1510_v30, %s9024_s0  ;;  %v1622_v38 = vpack.c.bf16 %v1615_v36, %v1614_v35  ;;  %v1542_v41 = vpack.c.bf16 %v1614_v35, %v7840_v31 }
 0x313   : > { %1498 = vst.msk [vmem:[#allocation3] sm:$0xff] %vm399_vm0, %v1494_v32  ;;  %v1606_v39 = vpack.c.bf16 %v1504_v37, %v1503_v28  ;;  %v1567_v47 = vld [vmem:[#allocation2 + $0x20] sm:$0xff] }
 0x314   : > { %1630 = vrot.lane.b32.xlu0 %v1622_v38, %s9024_s0  ;;  %v1574_v53 = vpack.c.bf16 %v1567_v47, %v1566_v29  ;;  %s9040_s0 = smov 32  }
 0x315   : > { %1610 = vst.msk [vmem:[#allocation3 + $0x8] sm:$0xff] %vm399_vm0, %v1606_v39  ;;  %v6371_v45 = vpop.f32.mrb[4].mxu1 }
 0x316   : > { %v6372_v49 = vpop.f32.mrb[5].mxu1  ;;  %1550 = vrot.lane.b32.xlu1 %v1542_v41, %s9039_s25 }
 0x317   : > { %v6373_v50 = vadd.f32 %v6372_v49, %v6371_v45  ;;  %v6374_v51 = vpop.f32.mrb[6].mxu1 }
 0x318   : > { %v6375_v52 = vpop.f32.mrb[7].mxu1 }
 0x319   : > { %v1344_v56 = vadd.f32 %v6373_v50, %v7814_v9  ;;  %v6376_v58 = vadd.f32 %v6375_v52, %v6374_v51 }
 0x31a   : > { %1582 = vrot.lane.b32.xlu1 %v1574_v53, %s9038_s24 }
 0x31b   : > { %v1409_v60 = vadd.f32 %v7793_v55, %v1344_v56  ;;  %v1347_v62 = vadd.f32 %v6376_v58, %v7814_v9  ;;  %v6996_v55 = vld [vmem:[%s9004_s3 + $0x100] sm:$0xff]  }
 0x31c   : > { %6407 = vmatprep.subr.bf16.mxu1 %v6996_v55 }
 0x31d   : > { %v1433_v8 = vmax.f32 %v1409_v60, 0.0  ;;  %v1412_v10 = vadd.f32 %v7795_v61, %v1347_v62  ;;  %6408 = vmatpush3.bf16.msra.mxu1 %v6997_v12  ;;  %v6998_v61 = vld [vmem:[%s9004_s3 + $0x108] sm:$0xff]   ;;  %v7918_v12 = vld [vmem:[#allocation2 + $0x92] sm:$0xff] }
 0x31e   : > { %6409 = vmatprep.subr.bf16.mxu1 %v6998_v61 }
 0x31f   : > { %1480 = vst.msk [vmem:[#allocation2 + $0x31] sm:$0xff] %vm399_vm0, %v1433_v8  ;;  %v1434_v11 = vmax.f32 %v1412_v10, 0.0 }
 0x321   : > { %1481 = vst.msk [vmem:[#allocation2 + $0x41] sm:$0xff] %vm399_vm0, %v1434_v11  ;;  %6410 = vmatpush3.bf16.msra.mxu1 %v6999_v14 }
 0x325   : > { %v6377_v13 = vpop.f32.mrb[8].mxu1 }
 0x326   : > { %v6378_v15 = vpop.f32.mrb[9].mxu1  ;;  %v1647_v16 = vld [vmem:[#allocation2 + $0x30] sm:$0xff] }
 0x327   : > { %v1505_v17 = vld [vmem:[#allocation2 + $0x31] sm:$0xff]  ;;  %v6379_v19 = vadd.f32 %v6378_v15, %v6377_v13  ;;  %v6380_v20 = vpop.f32.mrb[10].mxu1  ;;  %v1654_v21 = vpack.c.bf16 %v1647_v16, %v1567_v47 }
 0x328   : > { %v1537_v18 = vld [vmem:[#allocation2 + $0x32] sm:$0xff]  ;;  %v1511_v22 = vpack.c.bf16 %v1505_v17, %v1504_v37  ;;  %v6381_v26 = vpop.f32.mrb[11].mxu1  ;;  %v1506_v27 = vld [vmem:[#allocation2 + $0x41] sm:$0xff] }
 0x329   : > { %v1543_v25 = vpack.c.bf16 %v1537_v18, %v1615_v36  ;;  %v1352_v28 = vadd.f32 %v6379_v19, %v7814_v9  ;;  %v6382_v29 = vadd.f32 %v6381_v26, %v6380_v20  ;;  %1662 = vrot.lane.b32.xlu0 %v1654_v21, %s9039_s25  ;;  %1499 = vst.msk [vmem:[#allocation3 + $0x18] sm:$0xff] %vm399_vm0, %v1654_v21  ;;  %v1617_v34 = vld [vmem:[#allocation2 + $0x42] sm:$0xff] }
 0x32a   : > { %1520 = vrot.lane.b32.xlu1 %v1511_v22, %s9040_s0  ;;  %v1607_v30 = vpack.c.bf16 %v1506_v27, %v1505_v17  ;;  %v1569_v38 = vld [vmem:[#allocation2 + $0x40] sm:$0xff]  ;;  %v1623_v45 = vpack.c.bf16 %v1617_v34, %v1537_v18 }
 0x32b   : > { %1722 = vst.msk [vmem:[#allocation3 + $0x10] sm:$0xff] %vm399_vm0, %v1543_v25  ;;  %v1417_v32 = vadd.f32 %v7799_v3, %v1352_v28  ;;  %v1355_v33 = vadd.f32 %v6382_v29, %v7814_v9  ;;  %v1575_v49 = vpack.c.bf16 %v1569_v38, %v1647_v16 }
 0x32c   : > { %1611 = vst.msk [vmem:[#allocation3 + $0x20] sm:$0xff] %vm399_vm0, %v1607_v30  ;;  %v7934_v30 = vld [vmem:[#allocation2 + $0x90] sm:$0xff] }
 0x32d   : > { %v1435_v35 = vmax.f32 %v1417_v32, 0.0  ;;  %v1420_v36 = vadd.f32 %v7803_v5, %v1355_v33  ;;  %v6383_v37 = vpop.f32.mrb[12].mxu1  ;;  %1694 = vrot.lane.b32.xlu0 %v1511_v22, %s9038_s24  ;;  %v7939_v33 = vld [vmem:[#allocation2 + $0x91] sm:$0xff] }
 0x32e   : > { %1552 = vrot.lane.b32.xlu1 %v1543_v25, %s9039_s25  ;;  %v6384_v39 = vpop.f32.mrb[13].mxu1 }
 0x32f   : > { %1482 = vst.msk [vmem:[#allocation2 + $0x51] sm:$0xff] %vm399_vm0, %v1435_v35  ;;  %v1436_v41 = vmax.f32 %v1420_v36, 0.0  ;;  %v6385_v43 = vadd.f32 %v6384_v39, %v6383_v37  ;;  %v6386_v3 = vpop.f32.mrb[14].mxu1 }
 0x330   : > { %v6387_v47 = vpop.f32.mrb[15].mxu1 }
 0x331   : > { %1483 = vst.msk [vmem:[#allocation2 + $0x61] sm:$0xff] %vm399_vm0, %v1436_v41  ;;  %v1360_v5 = vadd.f32 %v6385_v43, %v7814_v9  ;;  %v6388_v50 = vadd.f32 %v6387_v47, %v6386_v3  ;;  %1632 = vrot.lane.b32.xlu0 %v1623_v45, %s9040_s0 }
 0x332   : > { %v1728_v48 = vld [vmem:[#allocation3 + $0x10] sm:$0xff]  ;;  %1584 = vrot.lane.b32.xlu1 %v1575_v49, %s9038_s24 }
 0x333   : > { %6780 = vmatprep.mubr.msk.bf16.mxu0 %vm399_vm0, %v1728_v48  ;;  %v1425_v51 = vadd.f32 %v7797_v1, %v1360_v5  ;;  %v1363_v52 = vadd.f32 %v6388_v50, %v7814_v9 }
 0x335   : > { %v1437_v53 = vmax.f32 %v1425_v51, 0.0  ;;  %v1428_v54 = vadd.f32 %v7801_v4, %v1363_v52 }
 0x336   : > { %v1649_v56 = vld [vmem:[#allocation2 + $0x50] sm:$0xff] }
 0x337   : > { %v1507_v58 = vld [vmem:[#allocation2 + $0x51] sm:$0xff]  ;;  %1484 = vst.msk [vmem:[#allocation2 + $0x71] sm:$0xff] %vm399_vm0, %v1437_v53  ;;  %v1438_v62 = vmax.f32 %v1428_v54, 0.0  ;;  %v1655_v6 = vpack.c.bf16 %v1649_v56, %v1569_v38 }
 0x338   : > { %v1539_v60 = vld [vmem:[#allocation2 + $0x52] sm:$0xff]  ;;  %v1512_v7 = vpack.c.bf16 %v1507_v58, %v1506_v27  ;;  %v1508_v10 = vld [vmem:[#allocation2 + $0x61] sm:$0xff] }
 0x339   : > { %v1544_v8 = vpack.c.bf16 %v1539_v60, %v1617_v34  ;;  %1485 = vst.msk [vmem:[#allocation2 + $0x81] sm:$0xff] %vm399_vm0, %v1438_v62  ;;  %1664 = vrot.lane.b32.xlu0 %v1655_v6, %s9039_s25  ;;  %1500 = vst.msk [vmem:[#allocation3 + $0x30] sm:$0xff] %vm399_vm0, %v1655_v6  ;;  %v1608_v1 = vpack.c.bf16 %v1508_v10, %v1507_v58  ;;  %v1619_v4 = vld [vmem:[#allocation2 + $0x62] sm:$0xff] }
 0x33a   : > { %1522 = vrot.lane.b32.xlu1 %v1512_v7, %s9040_s0  ;;  %v1571_v9 = vld [vmem:[#allocation2 + $0x60] sm:$0xff]  ;;  %v1624_v13 = vpack.c.bf16 %v1619_v4, %v1539_v60 }
 0x33b   : > { %1723 = vst.msk [vmem:[#allocation3 + $0x28] sm:$0xff] %vm399_vm0, %v1544_v8  ;;  %1612 = vst.msk [vmem:[#allocation3 + $0x38] sm:$0xff] %vm399_vm0, %v1608_v1  ;;  %v1576_v16 = vpack.c.bf16 %v1571_v9, %v1649_v56 }
 0x33d   : > { %1696 = vrot.lane.b32.xlu0 %v1512_v7, %s9038_s24 }
 0x33e   : > { %1554 = vrot.lane.b32.xlu1 %v1544_v8, %s9039_s25  ;;  %v1651_v11 = vld [vmem:[#allocation2 + $0x70] sm:$0xff] }
 0x33f   : > { %v1715_v55 = vld [vmem:[#allocation2 + $0x72] sm:$0xff]  ;;  %v1656_v61 = vpack.c.bf16 %v1651_v11, %v1571_v9 }
 0x340   : > { %v1720_v14 = vpack.c.bf16 %v1715_v55, %v1619_v4  ;;  %v1716_v17 = vld [vmem:[#allocation2 + $0x82] sm:$0xff]  ;;  %v1509_v18 = vld [vmem:[#allocation2 + $0x71] sm:$0xff] }
 0x341   : > { %1634 = vrot.lane.b32.xlu0 %v1624_v13, %s9040_s0  ;;  %v1721_v19 = vpack.c.bf16 %v7918_v12, %v1716_v17  ;;  %v1684_v20 = vld [vmem:[#allocation2 + $0x81] sm:$0xff]  ;;  %1501 = vst.msk [vmem:[#allocation3 + $0x48] sm:$0xff] %vm399_vm0, %v1656_v61  ;;  %v1513_v22 = vpack.c.bf16 %v1509_v18, %v1508_v10  ;;  %v1625_v28 = vpack.c.bf16 %v1716_v17, %v1715_v55 }
 0x342   : > { %v1731_v15 = vld [vmem:[#allocation3 + $0x28] sm:$0xff]  ;;  %1724 = vst.msk [vmem:[#allocation3 + $0x40] sm:$0xff] %vm399_vm0, %v1720_v14  ;;  %1586 = vrot.lane.b32.xlu1 %v1576_v16, %s9038_s24  ;;  %v1609_v21 = vpack.c.bf16 %v1684_v20, %v1509_v18  ;;  %v1573_v26 = vld [vmem:[#allocation2 + $0x80] sm:$0xff]  ;;  %v1689_v34 = vpack.c.bf16 %v7939_v33, %v1684_v20 }
 0x343   : > { %6781 = vmatmul.mubr.msk.bf16.vlgmr.msra.gmra.mrb[16].mxu0 %vm399_vm0, %v1731_v15  ;;  %1725 = vst.msk [vmem:[#allocation3 + $0x58] sm:$0xff] %vm399_vm0, %v1721_v19  ;;  %v1577_v29 = vpack.c.bf16 %v1573_v26, %v1651_v11  ;;  %v1657_v32 = vpack.c.bf16 %v7934_v30, %v1573_v26  ;;  %v7003_v26 = vld [vmem:[%s9004_s3 + $0x120] sm:$0xff]  }
 0x344   : > { %1613 = vst.msk [vmem:[#allocation3 + $0x50] sm:$0xff] %vm399_vm0, %v1609_v21  ;;  %v7000_v21 = vld [vmem:[%s9004_s3 + $0x1a0] sm:$0xff]  }
 0x345   : > { %1666 = vrot.lane.b32.xlu0 %v1656_v61, %s9039_s25  ;;  %6788 = vmatprep.subr.bf16.mxu1 %v7000_v21 }
 0x346   : > { %1524 = vrot.lane.b32.xlu1 %v1513_v22, %s9040_s0 }
 0x349   : > { %v1734_v25 = vld [vmem:[#allocation3 + $0x40] sm:$0xff]  ;;  %1698 = vrot.lane.b32.xlu0 %v1513_v22, %s9038_s24  ;;  %v7001_v22 = vld [vmem:[%s9004_s3 + $0x1a8] sm:$0xff]  }
 0x34a   : > { %6784 = vmatprep.mubr.msk.bf16.mxu0 %vm399_vm0, %v1734_v25  ;;  %1556 = vrot.lane.b32.xlu1 %v1720_v14, %s9039_s25  ;;  %v1737_v27 = vld [vmem:[#allocation3 + $0x58] sm:$0xff]  ;;  %v7002_v25 = vld [vmem:[%s9004_s3 + $0x160] sm:$0xff]  }
 0x34b   : > { %6785 = vmatmul.mubr.msk.bf16.gmra.mrb[20].mxu0 %vm399_vm0, %v1737_v27  ;;  %6441 = vmatprep.subr.bf16.mxu0 %v7002_v25  ;;  %v7014_v25 = vld [vmem:[%s9004_s3 + $0x190] sm:$0xff]  }
 0x34c   : > { %6442 = vmatpush3.bf16.msra.mxu0 %v7003_v26 }
 0x34d   : > { %1636 = vrot.lane.b32.xlu0 %v1625_v28, %s9040_s0  ;;  %v7995_v28 = vld [vmem:[%s9005_s4 + $0x1] ss:$0 sm:$0xff] }
 0x34e   : > { %1588 = vrot.lane.b32.xlu1 %v1577_v29, %s9038_s24 }
 0x351   : > { %1668 = vrot.lane.b32.xlu0 %v1657_v32, %s9039_s25 }
 0x355   : > { %1700 = vrot.lane.b32.xlu0 %v1689_v34, %s9038_s24 }
 0x384   : > { %v1519_v35 = vpop.permute.xlu1 %1518 }
 0x385   : > { %1530 = vst.msk [vmem:[#allocation3] sm:$0xff] %vm964_vm13, %v1519_v35 }
 0x386   : > { %v1631_v36 = vpop.permute.xlu0 %1630 }
 0x387   : > { %1642 = vst.msk [vmem:[#allocation3 + $0x8] sm:$0xff] %vm964_vm13, %v1631_v36 }
 0x388   : > { %v1551_v37 = vpop.permute.xlu1 %1550 }
 0x389   : > { %1562 = vst.msk [vmem:[#allocation3] sm:$0xff] %vm997_vm14, %v1551_v37 }
 0x38c   : > { %v1583_v38 = vpop.permute.xlu1 %1582 }
 0x38d   : > { %1594 = vst.msk [vmem:[#allocation3] sm:$0xff] %vm1030_vm15, %v1583_v38 }
 0x394   : > { %v1726_v49 = vld [vmem:[#allocation3] sm:$0xff] }
 0x39b   : > { %v1663_v39 = vpop.permute.xlu0 %1662 }
 0x39c   : > { %v1521_v41 = vpop.permute.xlu1 %1520  ;;  %1674 = vst.msk [vmem:[#allocation3 + $0x8] sm:$0xff] %vm997_vm14, %v1663_v39 }
 0x39d   : > { %1531 = vst.msk [vmem:[#allocation3 + $0x18] sm:$0xff] %vm964_vm13, %v1521_v41  ;;  %v7004_v41 = vld [vmem:[%s9004_s3 + $0x168] sm:$0xff]  }
 0x39e   : > { %6443 = vmatprep.subr.bf16.mxu0 %v7004_v41 }
 0x39f   : > { %v1695_v43 = vpop.permute.xlu0 %1694 }
 0x3a0   : > { %v1553_v3 = vpop.permute.xlu1 %1552  ;;  %1706 = vst.msk [vmem:[#allocation3 + $0x8] sm:$0xff] %vm1030_vm15, %v1695_v43 }
 0x3a1   : > { %1563 = vst.msk [vmem:[#allocation3 + $0x18] sm:$0xff] %vm997_vm14, %v1553_v3 }
 0x3a3   : > { %v1633_v45 = vpop.permute.xlu0 %1632 }
 0x3a4   : > { %1643 = vst.msk [vmem:[#allocation3 + $0x20] sm:$0xff] %vm964_vm13, %v1633_v45  ;;  %v1585_v47 = vpop.permute.xlu1 %1584  ;;  %v7005_v45 = vld [vmem:[%s9004_s3 + $0x128] sm:$0xff]  }
 0x3a5   : > { %1595 = vst.msk [vmem:[#allocation3 + $0x18] sm:$0xff] %vm1030_vm15, %v1585_v47  ;;  %6444 = vmatpush3.bf16.msra.mxu0 %v7005_v45 }
 0x3a7   : > { %v1727_v48 = vld [vmem:[#allocation3 + $0x8] sm:$0xff] }
 0x3a8   : > { %1896 = vmatprep.mubr.bf16.mxu1 %v1727_v48  ;;  %v7006_v48 = vld [vmem:[%s9004_s3 + $0x170] sm:$0xff]  }
 0x3a9   : > { %1897 = vmatmul.mubr.bf16.vlgmr.msra.gmra.mrb[16].mxu1 %v1726_v49  ;;  %6445 = vmatprep.subr.bf16.mxu0 %v7006_v48  ;;  %v7008_v49 = vld [vmem:[%s9004_s3 + $0x178] sm:$0xff]  }
 0x3aa   : > { %6789 = vmatpush3.bf16.msra.mxu1 %v7000_v21 }
 0x3ab   : > { %v1665_v5 = vpop.permute.xlu0 %1664  ;;  %6790 = vmatprep.subr.bf16.mxu1 %v7001_v22 }
 0x3ac   : > { %v1523_v50 = vpop.permute.xlu1 %1522  ;;  %1675 = vst.msk [vmem:[#allocation3 + $0x20] sm:$0xff] %vm997_vm14, %v1665_v5  ;;  %v1729_v62 = vld [vmem:[#allocation3 + $0x18] sm:$0xff] }
 0x3ad   : > { %1532 = vst.msk [vmem:[#allocation3 + $0x30] sm:$0xff] %vm964_vm13, %v1523_v50 }
 0x3ae   : > { %6791 = vmatpush3.bf16.msra.mxu1 %v7001_v22 }
 0x3af   : > { %v1697_v51 = vpop.permute.xlu0 %1696 }
 0x3b0   : > { %v1555_v52 = vpop.permute.xlu1 %1554  ;;  %1707 = vst.msk [vmem:[#allocation3 + $0x20] sm:$0xff] %vm1030_vm15, %v1697_v51 }
 0x3b1   : > { %1564 = vst.msk [vmem:[#allocation3 + $0x30] sm:$0xff] %vm997_vm14, %v1555_v52 }
 0x3b3   : > { %v1635_v53 = vpop.permute.xlu0 %1634 }
 0x3b4   : > { %1644 = vst.msk [vmem:[#allocation3 + $0x38] sm:$0xff] %vm964_vm13, %v1635_v53  ;;  %v1587_v54 = vpop.permute.xlu1 %1586  ;;  %v7010_v53 = vld [vmem:[%s9004_s3 + $0x180] sm:$0xff]  }
 0x3b5   : > { %1596 = vst.msk [vmem:[#allocation3 + $0x30] sm:$0xff] %vm1030_vm15, %v1587_v54 }
 0x3b7   : > { %v1667_v56 = vpop.permute.xlu0 %1666  ;;  %v1730_v58 = vld [vmem:[#allocation3 + $0x20] sm:$0xff] }
 0x3b8   : > { %1676 = vst.msk [vmem:[#allocation3 + $0x38] sm:$0xff] %vm997_vm14, %v1667_v56  ;;  %v1525_v60 = vpop.permute.xlu1 %1524  ;;  %1904 = vmatprep.mubr.bf16.mxu1 %v1730_v58 }
 0x3b9   : > { %1533 = vst.msk [vmem:[#allocation3 + $0x48] sm:$0xff] %vm964_vm13, %v1525_v60  ;;  %1905 = vmatmul.mubr.bf16.gmra.mrb[20].mxu1 %v1729_v62  ;;  %v7011_v62 = vld [vmem:[%s9004_s3 + $0x140] sm:$0xff]  }
 0x3bb   : > { %v1699_v6 = vpop.permute.xlu0 %1698 }
 0x3bc   : > { %1708 = vst.msk [vmem:[#allocation3 + $0x38] sm:$0xff] %vm1030_vm15, %v1699_v6  ;;  %v1557_v7 = vpop.permute.xlu1 %1556  ;;  %v1732_v9 = vld [vmem:[#allocation3 + $0x30] sm:$0xff] }
 0x3bd   : > { %1565 = vst.msk [vmem:[#allocation3 + $0x48] sm:$0xff] %vm997_vm14, %v1557_v7 }
 0x3bf   : > { %v1637_v8 = vpop.permute.xlu0 %1636 }
 0x3c0   : > { %1645 = vst.msk [vmem:[#allocation3 + $0x50] sm:$0xff] %vm964_vm13, %v1637_v8  ;;  %v1589_v10 = vpop.permute.xlu1 %1588 }
 0x3c1   : > { %1597 = vst.msk [vmem:[#allocation3 + $0x48] sm:$0xff] %vm1030_vm15, %v1589_v10 }
 0x3c3   : > { %v1669_v1 = vpop.permute.xlu0 %1668  ;;  %v1733_v4 = vld [vmem:[#allocation3 + $0x38] sm:$0xff] }
 0x3c4   : > { %1677 = vst.msk [vmem:[#allocation3 + $0x50] sm:$0xff] %vm997_vm14, %v1669_v1  ;;  %1912 = vmatprep.mubr.bf16.mxu1 %v1733_v4 }
 0x3c5   : > { %1913 = vmatmul.mubr.bf16.gmra.mrb[24].mxu1 %v1732_v9 }
 0x3c7   : > { %v1701_v11 = vpop.permute.xlu0 %1700 }
 0x3c8   : > { %1709 = vst.msk [vmem:[#allocation3 + $0x50] sm:$0xff] %vm1030_vm15, %v1701_v11  ;;  %v1735_v13 = vld [vmem:[#allocation3 + $0x48] sm:$0xff] }
 0x3cf   : > { %v1736_v55 = vld [vmem:[#allocation3 + $0x50] sm:$0xff] }
 0x3d0   : > { %1920 = vmatprep.mubr.bf16.mxu1 %v1736_v55 }
 0x3d1   : > { %1921 = vmatmul.mubr.bf16.gmra.mrb[28].mxu1 %v1735_v13 }
 0x416   : > { %v7968_v61 = vpop.f32.mrb[16].mxu0 }
 0x417   : > { %v1963_v14 = vpop.f32.mrb[17].mxu0 }
 0x418   : > { %v7970_v15 = vpop.f32.mrb[18].mxu0 }
 0x419   : > { %v1966_v16 = vpop.f32.mrb[19].mxu0 }
 0x41e   : > { %v7972_v17 = vpop.f32.mrb[20].mxu0 }
 0x41f   : > { %v7974_v18 = vpop.f32.mrb[21].mxu0 }
 0x420   : > { %v7976_v19 = vpop.f32.mrb[22].mxu0 }
 0x421   : > { %v7978_v20 = vpop.f32.mrb[23].mxu0 }
 0x47c   : > { %v6411_v27 = vpop.f32.mrb[16].mxu1 }
 0x47d   : > { %v6412_v29 = vpop.f32.mrb[17].mxu1 }
 0x47e   : > { %v6413_v32 = vadd.f32 %v6412_v29, %v6411_v27  ;;  %v6414_v34 = vpop.f32.mrb[18].mxu1 }
 0x47f   : > { %v6415_v35 = vpop.f32.mrb[19].mxu1 }
 0x480   : > { %v1899_v36 = vadd.f32 %v6413_v32, %v7995_v28  ;;  %v6416_v37 = vadd.f32 %v6415_v35, %v6414_v34  ;;  %v7016_v32 = vld [vmem:[%s9004_s3 + $0x198] sm:$0xff]  }
 0x481   : > { %v7017_v34 = vld [vmem:[%s9004_s3 + $0x158] sm:$0xff]  }
 0x482   : > { %v1964_v38 = vadd.f32 %v1963_v14, %v1899_v36  ;;  %v1902_v39 = vadd.f32 %v6416_v37, %v7995_v28  ;;  %v7012_v14 = vld [vmem:[%s9004_s3 + $0x188] sm:$0xff]  }
 0x484   : > { %v8003_v43 = vadd.f32 %v1964_v38, %v7655_v59  ;;  %v1967_v3 = vadd.f32 %v1966_v16, %v1902_v39  ;;  %v7007_v59 = vld [vmem:[%s9004_s3 + $0x130] sm:$0xff]   ;;  %v7013_v16 = vld [vmem:[%s9004_s3 + $0x148] sm:$0xff]  }
 0x485   : > { %6446 = vmatpush3.bf16.msra.mxu0 %v7007_v59 }
 0x486   : > { %2041 = vst.msk [vmem:[#allocation2 + $0x11] sm:$0xff] %vm399_vm0, %v8003_v43  ;;  %v8011_v47 = vadd.f32 %v1967_v3, %v7671_v2  ;;  %v7009_v2 = vld [vmem:[%s9004_s3 + $0x138] sm:$0xff]   ;;  %6447 = vmatprep.subr.bf16.mxu0 %v7008_v49 }
 0x488   : > { %2042 = vst.msk [vmem:[#allocation2 + $0x21] sm:$0xff] %vm399_vm0, %v8011_v47 }
 0x489   : > { %6448 = vmatpush3.bf16.msra.mxu0 %v7009_v2 }
 0x48a   : > { %6449 = vmatprep.subr.bf16.mxu0 %v7010_v53 }
 0x48c   : > { %v6417_v5 = vpop.f32.mrb[20].mxu1 }
 0x48d   : > { %v6418_v50 = vpop.f32.mrb[21].mxu1  ;;  %v2066_v51 = vld [vmem:[#allocation2 + $0x11] sm:$0xff]  ;;  %6450 = vmatpush3.bf16.msra.mxu0 %v7011_v62 }
 0x48e   : > { %v2129_v52 = vld [vmem:[#allocation2 + $0x10] sm:$0xff]  ;;  %v6419_v54 = vadd.f32 %v6418_v50, %v6417_v5  ;;  %v6420_v56 = vpop.f32.mrb[22].mxu1  ;;  %v2073_v58 = vpack.c.bf16 %v2066_v51, %v7826_v23  ;;  %6451 = vmatprep.subr.bf16.mxu0 %v7012_v14 }
 0x48f   : > { %v2057_v60 = vpack.c.bf16 %v2129_v52, %v7828_v24  ;;  %v6421_v6 = vpop.f32.mrb[23].mxu1  ;;  %v2177_v7 = vld [vmem:[#allocation2 + $0x12] sm:$0xff]  ;;  %v2178_v8 = vld [vmem:[#allocation2 + $0x22] sm:$0xff] }
 0x490   : > { %v2067_v10 = vld [vmem:[#allocation2 + $0x21] sm:$0xff]  ;;  %v1907_v1 = vadd.f32 %v6419_v54, %v7995_v28  ;;  %v6422_v4 = vadd.f32 %v6421_v6, %v6420_v56  ;;  %2081 = vrot.lane.b32.xlu1 %v2073_v58, %s9040_s0  ;;  %v2185_v9 = vpack.c.bf16 %v2178_v8, %v2177_v7  ;;  %v2105_v55 = vpack.c.bf16 %v2177_v7, %v7840_v31 }
 0x491   : > { %2061 = vst.msk [vmem:[#allocation3] sm:$0xff] %vm399_vm0, %v2057_v60  ;;  %v2169_v23 = vpack.c.bf16 %v2067_v10, %v2066_v51  ;;  %v2130_v13 = vld [vmem:[#allocation2 + $0x20] sm:$0xff]  ;;  %6452 = vmatpush3.bf16.msra.mxu0 %v7013_v16 }
 0x492   : > { %v1972_v24 = vadd.f32 %v7968_v61, %v1907_v1  ;;  %v1910_v11 = vadd.f32 %v6422_v4, %v7995_v28  ;;  %2193 = vrot.lane.b32.xlu0 %v2185_v9, %s9040_s0  ;;  %v2137_v22 = vpack.c.bf16 %v2130_v13, %v2129_v52  ;;  %6453 = vmatprep.subr.bf16.mxu0 %v7014_v25 }
 0x493   : > { %2173 = vst.msk [vmem:[#allocation3 + $0x8] sm:$0xff] %vm399_vm0, %v2169_v23 }
 0x494   : > { %v8050_v61 = vadd.f32 %v1972_v24, %v7652_v57  ;;  %v1975_v21 = vadd.f32 %v7970_v15, %v1910_v11  ;;  %2113 = vrot.lane.b32.xlu1 %v2105_v55, %s9039_s25  ;;  %v7015_v57 = vld [vmem:[%s9004_s3 + $0x150] sm:$0xff]  }
 0x495   : > { %6454 = vmatpush3.bf16.msra.mxu0 %v7015_v57 }
 0x496   : > { %2043 = vst.msk [vmem:[#allocation2 + $0x31] sm:$0xff] %vm399_vm0, %v8050_v61  ;;  %v8057_v31 = vadd.f32 %v1975_v21, %v7666_v63  ;;  %6455 = vmatprep.subr.bf16.mxu0 %v7016_v32 }
 0x498   : > { %2044 = vst.msk [vmem:[#allocation2 + $0x41] sm:$0xff] %vm399_vm0, %v8057_v31  ;;  %v6423_v15 = vpop.f32.mrb[24].mxu1  ;;  %2145 = vrot.lane.b32.xlu1 %v2137_v22, %s9038_s24 }
 0x499   : > { %v6424_v26 = vpop.f32.mrb[25].mxu1  ;;  %6456 = vmatpush3.bf16.msra.mxu0 %v7017_v34 }
 0x49a   : > { %v6425_v63 = vadd.f32 %v6424_v26, %v6423_v15  ;;  %v6426_v27 = vpop.f32.mrb[26].mxu1 }
 0x49b   : > { %v6427_v29 = vpop.f32.mrb[27].mxu1 }
 0x49c   : > { %v1915_v35 = vadd.f32 %v6425_v63, %v7995_v28  ;;  %v6428_v36 = vadd.f32 %v6427_v29, %v6426_v27 }
 0x49d   : > { %v2210_v37 = vld [vmem:[#allocation2 + $0x30] sm:$0xff] }
 0x49e   : > { %v2068_v38 = vld [vmem:[#allocation2 + $0x31] sm:$0xff]  ;;  %v1980_v41 = vadd.f32 %v7974_v18, %v1915_v35  ;;  %v1918_v3 = vadd.f32 %v6428_v36, %v7995_v28  ;;  %v2217_v45 = vpack.c.bf16 %v2210_v37, %v2130_v13 }
 0x49f   : > { %v2100_v39 = vld [vmem:[#allocation2 + $0x32] sm:$0xff]  ;;  %v2074_v48 = vpack.c.bf16 %v2068_v38, %v2067_v10  ;;  %v2069_v49 = vld [vmem:[#allocation2 + $0x41] sm:$0xff] }
 0x4a0   : > { %v2106_v59 = vpack.c.bf16 %v2100_v39, %v2178_v8  ;;  %v8078_v2 = vadd.f32 %v1980_v41, %v7726_v42  ;;  %v1983_v5 = vadd.f32 %v7978_v20, %v1918_v3  ;;  %2225 = vrot.lane.b32.xlu0 %v2217_v45, %s9039_s25  ;;  %2062 = vst.msk [vmem:[#allocation3 + $0x18] sm:$0xff] %vm399_vm0, %v2217_v45  ;;  %v2180_v51 = vld [vmem:[#allocation2 + $0x42] sm:$0xff] }
 0x4a1   : > { %2083 = vrot.lane.b32.xlu1 %v2074_v48, %s9040_s0  ;;  %v2170_v18 = vpack.c.bf16 %v2069_v49, %v2068_v38  ;;  %v2132_v42 = vld [vmem:[#allocation2 + $0x40] sm:$0xff]  ;;  %v2186_v56 = vpack.c.bf16 %v2180_v51, %v2100_v39 }
 0x4a2   : > { %2285 = vst.msk [vmem:[#allocation3 + $0x10] sm:$0xff] %vm399_vm0, %v2106_v59  ;;  %2045 = vst.msk [vmem:[#allocation2 + $0x51] sm:$0xff] %vm399_vm0, %v8078_v2  ;;  %v8088_v50 = vadd.f32 %v1983_v5, %v7737_v46  ;;  %v2138_v58 = vpack.c.bf16 %v2132_v42, %v2210_v37 }
 0x4a3   : > { %2174 = vst.msk [vmem:[#allocation3 + $0x20] sm:$0xff] %vm399_vm0, %v2170_v18 }
 0x4a4   : > { %2046 = vst.msk [vmem:[#allocation2 + $0x61] sm:$0xff] %vm399_vm0, %v8088_v50  ;;  %v6429_v20 = vpop.f32.mrb[28].mxu1  ;;  %2257 = vrot.lane.b32.xlu0 %v2074_v48, %s9038_s24 }
 0x4a5   : > { %2115 = vrot.lane.b32.xlu1 %v2106_v59, %s9039_s25  ;;  %v6430_v52 = vpop.f32.mrb[29].mxu1 }
 0x4a6   : > { %v6431_v53 = vadd.f32 %v6430_v52, %v6429_v20  ;;  %v6432_v54 = vpop.f32.mrb[30].mxu1 }
 0x4a7   : > { %v6433_v60 = vpop.f32.mrb[31].mxu1 }
 0x4a8   : > { %v1923_v46 = vadd.f32 %v6431_v53, %v7995_v28  ;;  %v6434_v62 = vadd.f32 %v6433_v60, %v6432_v54  ;;  %2195 = vrot.lane.b32.xlu0 %v2186_v56, %s9040_s0 }
 0x4a9   : > { %v2291_v6 = vld [vmem:[#allocation3 + $0x10] sm:$0xff]  ;;  %2147 = vrot.lane.b32.xlu1 %v2138_v58, %s9038_s24 }
 0x4aa   : > { %6792 = vmatprep.mubr.msk.bf16.mxu1 %vm399_vm0, %v2291_v6  ;;  %v2212_v7 = vld [vmem:[#allocation2 + $0x50] sm:$0xff]  ;;  %v1988_v1 = vadd.f32 %v7972_v17, %v1923_v46  ;;  %v1926_v4 = vadd.f32 %v6434_v62, %v7995_v28 }
 0x4ab   : > { %v2070_v8 = vld [vmem:[#allocation2 + $0x51] sm:$0xff]  ;;  %v2218_v9 = vpack.c.bf16 %v2212_v7, %v2132_v42  ;;  %v2071_v11 = vld [vmem:[#allocation2 + $0x61] sm:$0xff] }
 0x4ac   : > { %v2102_v10 = vld [vmem:[#allocation2 + $0x52] sm:$0xff]  ;;  %v2075_v23 = vpack.c.bf16 %v2070_v8, %v2069_v49  ;;  %v8102_v55 = vadd.f32 %v1988_v1, %v7723_v40  ;;  %v1991_v13 = vadd.f32 %v7976_v19, %v1926_v4  ;;  %v2171_v17 = vpack.c.bf16 %v2071_v11, %v2070_v8  ;;  %v2182_v14 = vld [vmem:[#allocation2 + $0x62] sm:$0xff] }
 0x4ad   : > { %v2107_v24 = vpack.c.bf16 %v2102_v10, %v2180_v51  ;;  %2227 = vrot.lane.b32.xlu0 %v2218_v9, %s9039_s25  ;;  %2063 = vst.msk [vmem:[#allocation3 + $0x30] sm:$0xff] %vm399_vm0, %v2218_v9  ;;  %v2134_v40 = vld [vmem:[#allocation2 + $0x60] sm:$0xff]  ;;  %v2187_v19 = vpack.c.bf16 %v2182_v14, %v2102_v10 }
 0x4ae   : > { %2085 = vrot.lane.b32.xlu1 %v2075_v23, %s9040_s0  ;;  %2047 = vst.msk [vmem:[#allocation2 + $0x71] sm:$0xff] %vm399_vm0, %v8102_v55  ;;  %v8112_v28 = vadd.f32 %v1991_v13, %v7732_v44  ;;  %2175 = vst.msk [vmem:[#allocation3 + $0x38] sm:$0xff] %vm399_vm0, %v2171_v17  ;;  %v2139_v16 = vpack.c.bf16 %v2134_v40, %v2212_v7 }
 0x4af   : > { %2286 = vst.msk [vmem:[#allocation3 + $0x28] sm:$0xff] %vm399_vm0, %v2107_v24 }
 0x4b0   : > { %2048 = vst.msk [vmem:[#allocation2 + $0x81] sm:$0xff] %vm399_vm0, %v8112_v28 }
 0x4b1   : > { %2259 = vrot.lane.b32.xlu0 %v2075_v23, %s9038_s24 }
 0x4b2   : > { %2117 = vrot.lane.b32.xlu1 %v2107_v24, %s9039_s25 }
 0x4b5   : > { %2197 = vrot.lane.b32.xlu0 %v2187_v19, %s9040_s0  ;;  %v2214_v44 = vld [vmem:[#allocation2 + $0x70] sm:$0xff] }
 0x4b6   : > { %v2294_v21 = vld [vmem:[#allocation3 + $0x28] sm:$0xff]  ;;  %2149 = vrot.lane.b32.xlu1 %v2139_v16, %s9038_s24  ;;  %v2072_v22 = vld [vmem:[#allocation2 + $0x71] sm:$0xff]  ;;  %v2219_v57 = vpack.c.bf16 %v2214_v44, %v2134_v40 }
 0x4b7   : > { %6793 = vmatmul.mubr.msk.bf16.vlgmr.msra.gmra.mrb[32].mxu1 %vm399_vm0, %v2294_v21  ;;  %v2104_v25 = vld [vmem:[#allocation2 + $0x72] sm:$0xff]  ;;  %v2076_v15 = vpack.c.bf16 %v2072_v22, %v2071_v11  ;;  %v2184_v63 = vld [vmem:[#allocation2 + $0x82] sm:$0xff] }
 0x4b8   : > { %v2108_v26 = vpack.c.bf16 %v2104_v25, %v2182_v14  ;;  %v2247_v27 = vld [vmem:[#allocation2 + $0x81] sm:$0xff]  ;;  %v2284_v29 = vpack.c.bf16 %v7918_v12, %v2184_v63  ;;  %2064 = vst.msk [vmem:[#allocation3 + $0x48] sm:$0xff] %vm399_vm0, %v2219_v57  ;;  %v2188_v35 = vpack.c.bf16 %v2184_v63, %v2104_v25  ;;  %v7018_v25 = vld [vmem:[%s9004_s3 + $0x230] sm:$0xff]   ;;  %v7022_v63 = vld [vmem:[%s9004_s3 + $0x1f8] sm:$0xff]  }
 0x4b9   : > { %2229 = vrot.lane.b32.xlu0 %v2219_v57, %s9039_s25  ;;  %v2172_v32 = vpack.c.bf16 %v2247_v27, %v2072_v22  ;;  %v2136_v34 = vld [vmem:[#allocation2 + $0x80] sm:$0xff]  ;;  %v2252_v39 = vpack.c.bf16 %v7939_v33, %v2247_v27  ;;  %6800 = vmatprep.subr.bf16.mxu1 %v7018_v25  ;;  %v7019_v57 = vld [vmem:[%s9004_s3 + $0x238] sm:$0xff]  }
 0x4ba   : > { %2087 = vrot.lane.b32.xlu1 %v2076_v15, %s9040_s0  ;;  %2287 = vst.msk [vmem:[#allocation3 + $0x40] sm:$0xff] %vm399_vm0, %v2108_v26  ;;  %2288 = vst.msk [vmem:[#allocation3 + $0x58] sm:$0xff] %vm399_vm0, %v2284_v29  ;;  %v2140_v37 = vpack.c.bf16 %v2136_v34, %v2214_v44  ;;  %v2220_v38 = vpack.c.bf16 %v7934_v30, %v2136_v34  ;;  %6801 = vmatpush3.bf16.msra.mxu1 %v7018_v25  ;;  %v7023_v27 = vld [vmem:[%s9004_s3 + $0x1b8] sm:$0xff]  }
 0x4bb   : > { %2176 = vst.msk [vmem:[#allocation3 + $0x50] sm:$0xff] %vm399_vm0, %v2172_v32  ;;  %6802 = vmatprep.subr.bf16.mxu1 %v7019_v57  ;;  %v8194_v32 = vld [vmem:[%s9005_s4 + $0x2] ss:$0 sm:$0xff] }
 0x4bd   : > { %2261 = vrot.lane.b32.xlu0 %v2076_v15, %s9038_s24  ;;  %v7020_v15 = vld [vmem:[%s9004_s3 + $0x1f0] sm:$0xff]  }
 0x4be   : > { %2119 = vrot.lane.b32.xlu1 %v2108_v26, %s9039_s25  ;;  %6803 = vmatpush3.bf16.msra.mxu1 %v7019_v57  ;;  %v7021_v26 = vld [vmem:[%s9004_s3 + $0x1b0] sm:$0xff]  }
 0x4bf   : > { %6487 = vmatprep.subr.bf16.mxu0 %v7020_v15  ;;  %v7032_v15 = vld [vmem:[%s9004_s3 + $0x220] sm:$0xff]  }
 0x4c1   : > { %v2297_v36 = vld [vmem:[#allocation3 + $0x40] sm:$0xff]  ;;  %2199 = vrot.lane.b32.xlu0 %v2188_v35, %s9040_s0  ;;  %v2300_v12 = vld [vmem:[#allocation3 + $0x58] sm:$0xff] }
 0x4c2   : > { %6796 = vmatprep.mubr.msk.bf16.mxu1 %vm399_vm0, %v2297_v36  ;;  %2151 = vrot.lane.b32.xlu1 %v2140_v37, %s9038_s24 }
 0x4c3   : > { %6797 = vmatmul.mubr.msk.bf16.gmra.mrb[36].mxu1 %vm399_vm0, %v2300_v12 }
 0x4c5   : > { %2231 = vrot.lane.b32.xlu0 %v2220_v38, %s9039_s25 }
 0x4c9   : > { %2263 = vrot.lane.b32.xlu0 %v2252_v39, %s9038_s24 }
 0x502   : > { %v2082_v41 = vpop.permute.xlu1 %2081 }
 0x503   : > { %2093 = vst.msk [vmem:[#allocation3] sm:$0xff] %vm964_vm13, %v2082_v41 }
 0x504   : > { %v2194_v3 = vpop.permute.xlu0 %2193 }
 0x505   : > { %2205 = vst.msk [vmem:[#allocation3 + $0x8] sm:$0xff] %vm964_vm13, %v2194_v3  ;;  %v7024_v3 = vld [vmem:[%s9004_s3 + $0x200] sm:$0xff]  }
 0x506   : > { %v2114_v45 = vpop.permute.xlu1 %2113 }
 0x507   : > { %2125 = vst.msk [vmem:[#allocation3] sm:$0xff] %vm997_vm14, %v2114_v45 }
 0x50a   : > { %v2146_v48 = vpop.permute.xlu1 %2145 }
 0x50b   : > { %2157 = vst.msk [vmem:[#allocation3] sm:$0xff] %vm1030_vm15, %v2146_v48 }
 0x512   : > { %v2226_v59 = vpop.permute.xlu0 %2225  ;;  %v2289_v52 = vld [vmem:[#allocation3] sm:$0xff] }
 0x513   : > { %v2084_v30 = vpop.permute.xlu1 %2083  ;;  %2237 = vst.msk [vmem:[#allocation3 + $0x8] sm:$0xff] %vm997_vm14, %v2226_v59  ;;  %v7025_v59 = vld [vmem:[%s9004_s3 + $0x1c0] sm:$0xff]  }
 0x514   : > { %2094 = vst.msk [vmem:[#allocation3 + $0x18] sm:$0xff] %vm964_vm13, %v2084_v30 }
 0x516   : > { %v2258_v33 = vpop.permute.xlu0 %2257 }
 0x517   : > { %v2116_v49 = vpop.permute.xlu1 %2115  ;;  %2269 = vst.msk [vmem:[#allocation3 + $0x8] sm:$0xff] %vm1030_vm15, %v2258_v33  ;;  %v7026_v33 = vld [vmem:[%s9004_s3 + $0x208] sm:$0xff]  }
 0x518   : > { %2126 = vst.msk [vmem:[#allocation3 + $0x18] sm:$0xff] %vm997_vm14, %v2116_v49  ;;  %v7027_v49 = vld [vmem:[%s9004_s3 + $0x1c8] sm:$0xff]  }
 0x51a   : > { %v2196_v5 = vpop.permute.xlu0 %2195 }
 0x51b   : > { %v2148_v18 = vpop.permute.xlu1 %2147  ;;  %2206 = vst.msk [vmem:[#allocation3 + $0x20] sm:$0xff] %vm964_vm13, %v2196_v5 }
 0x51c   : > { %2158 = vst.msk [vmem:[#allocation3 + $0x18] sm:$0xff] %vm1030_vm15, %v2148_v18 }
 0x51e   : > { %v2290_v20 = vld [vmem:[#allocation3 + $0x8] sm:$0xff] }
 0x51f   : > { %v2228_v51 = vpop.permute.xlu0 %2227  ;;  %2459 = vmatprep.mubr.bf16.mxu0 %v2290_v20 }
 0x520   : > { %v2086_v42 = vpop.permute.xlu1 %2085  ;;  %2238 = vst.msk [vmem:[#allocation3 + $0x20] sm:$0xff] %vm997_vm14, %v2228_v51  ;;  %2460 = vmatmul.mubr.bf16.vlgmr.msra.gmra.mrb[24].mxu0 %v2289_v52  ;;  %v2628_v52 = vld [vmem:[#allocation2 + $0x1] sm:$0xff] }
 0x521   : > { %2095 = vst.msk [vmem:[#allocation3 + $0x30] sm:$0xff] %vm964_vm13, %v2086_v42  ;;  %6488 = vmatpush3.bf16.msra.mxu0 %v7021_v26  ;;  %v7033_v26 = vld [vmem:[%s9004_s3 + $0x1e0] sm:$0xff]  }
 0x522   : > { %6489 = vmatprep.subr.bf16.mxu0 %v7022_v63 }
 0x523   : > { %v2260_v53 = vpop.permute.xlu0 %2259  ;;  %v2292_v6 = vld [vmem:[#allocation3 + $0x18] sm:$0xff] }
 0x524   : > { %v2118_v54 = vpop.permute.xlu1 %2117  ;;  %2270 = vst.msk [vmem:[#allocation3 + $0x20] sm:$0xff] %vm1030_vm15, %v2260_v53  ;;  %v7028_v53 = vld [vmem:[%s9004_s3 + $0x210] sm:$0xff]  }
 0x525   : > { %2127 = vst.msk [vmem:[#allocation3 + $0x30] sm:$0xff] %vm997_vm14, %v2118_v54  ;;  %6490 = vmatpush3.bf16.msra.mxu0 %v7023_v27  ;;  %v7029_v54 = vld [vmem:[%s9004_s3 + $0x1d0] sm:$0xff]  }
 0x526   : > { %6491 = vmatprep.subr.bf16.mxu0 %v7024_v3 }
 0x527   : > { %v2198_v56 = vpop.permute.xlu0 %2197 }
 0x528   : > { %v2150_v58 = vpop.permute.xlu1 %2149  ;;  %2207 = vst.msk [vmem:[#allocation3 + $0x38] sm:$0xff] %vm964_vm13, %v2198_v56 }
 0x529   : > { %2159 = vst.msk [vmem:[#allocation3 + $0x30] sm:$0xff] %vm1030_vm15, %v2150_v58  ;;  %6492 = vmatpush3.bf16.msra.mxu0 %v7025_v59 }
 0x52a   : > { %6493 = vmatprep.subr.bf16.mxu0 %v7026_v33 }
 0x52b   : > { %v2230_v60 = vpop.permute.xlu0 %2229  ;;  %v2293_v62 = vld [vmem:[#allocation3 + $0x20] sm:$0xff] }
 0x52c   : > { %v2088_v46 = vpop.permute.xlu1 %2087  ;;  %2239 = vst.msk [vmem:[#allocation3 + $0x38] sm:$0xff] %vm997_vm14, %v2230_v60  ;;  %2467 = vmatprep.mubr.bf16.mxu0 %v2293_v62  ;;  %v2612_v60 = vld [vmem:[#allocation2] sm:$0xff] }
 0x52d   : > { %2096 = vst.msk [vmem:[#allocation3 + $0x48] sm:$0xff] %vm964_vm13, %v2088_v46  ;;  %2468 = vmatmul.mubr.bf16.gmra.mrb[28].mxu0 %v2292_v6 }
 0x52e   : > { %6494 = vmatpush3.bf16.msra.mxu0 %v7027_v49 }
 0x52f   : > { %v2262_v7 = vpop.permute.xlu0 %2261  ;;  %6495 = vmatprep.subr.bf16.mxu0 %v7028_v53 }
 0x530   : > { %v2120_v8 = vpop.permute.xlu1 %2119  ;;  %2271 = vst.msk [vmem:[#allocation3 + $0x38] sm:$0xff] %vm1030_vm15, %v2262_v7  ;;  %v2295_v23 = vld [vmem:[#allocation3 + $0x30] sm:$0xff] }
 0x531   : > { %2128 = vst.msk [vmem:[#allocation3 + $0x48] sm:$0xff] %vm997_vm14, %v2120_v8 }
 0x532   : > { %6496 = vmatpush3.bf16.msra.mxu0 %v7029_v54 }
 0x533   : > { %v2200_v10 = vpop.permute.xlu0 %2199 }
 0x534   : > { %2208 = vst.msk [vmem:[#allocation3 + $0x50] sm:$0xff] %vm964_vm13, %v2200_v10  ;;  %v2152_v1 = vpop.permute.xlu1 %2151  ;;  %v2660_v10 = vld [vmem:[#allocation2 + $0x2] sm:$0xff] }
 0x535   : > { %2160 = vst.msk [vmem:[#allocation3 + $0x48] sm:$0xff] %vm1030_vm15, %v2152_v1 }
 0x537   : > { %v2232_v4 = vpop.permute.xlu0 %2231  ;;  %v2296_v9 = vld [vmem:[#allocation3 + $0x38] sm:$0xff] }
 0x538   : > { %2240 = vst.msk [vmem:[#allocation3 + $0x50] sm:$0xff] %vm997_vm14, %v2232_v4  ;;  %2475 = vmatprep.mubr.bf16.mxu0 %v2296_v9 }
 0x539   : > { %2476 = vmatmul.mubr.bf16.gmra.mrb[32].mxu0 %v2295_v23 }
 0x53b   : > { %v2264_v24 = vpop.permute.xlu0 %2263 }
 0x53c   : > { %2272 = vst.msk [vmem:[#allocation3 + $0x50] sm:$0xff] %vm1030_vm15, %v2264_v24  ;;  %v2298_v13 = vld [vmem:[#allocation3 + $0x48] sm:$0xff] }
 0x543   : > { %v2299_v11 = vld [vmem:[#allocation3 + $0x50] sm:$0xff] }
 0x544   : > { %2483 = vmatprep.mubr.bf16.mxu0 %v2299_v11 }
 0x545   : > { %2484 = vmatmul.mubr.bf16.gmra.mrb[36].mxu0 %v2298_v13 }
 0x58a   : > { %v6794_v17 = vpop.f32.mrb[32].mxu1 }
 0x58b   : > { %v2526_v14 = vpop.f32.mrb[33].mxu1 }
 0x58c   : > { %v8163_v40 = vpop.f32.mrb[34].mxu1 }
 0x58d   : > { %v2529_v19 = vpop.f32.mrb[35].mxu1 }
 0x596   : > { %v8165_v16 = vpop.f32.mrb[36].mxu1 }
 0x597   : > { %v8167_v21 = vpop.f32.mrb[37].mxu1 }
 0x598   : > { %v8169_v44 = vpop.f32.mrb[38].mxu1 }
 0x599   : > { %v8171_v22 = vpop.f32.mrb[39].mxu1 }
 0x5f3   : > { %v6457_v29 = vpop.f32.mrb[24].mxu0 }
 0x5f4   : > { %v6458_v34 = vpop.f32.mrb[25].mxu0 }
 0x5f5   : > { %v6459_v35 = vadd.f32 %v6458_v34, %v6457_v29  ;;  %v6460_v36 = vpop.f32.mrb[26].mxu0 }
 0x5f6   : > { %v6461_v37 = vpop.f32.mrb[27].mxu0 }
 0x5f7   : > { %v2462_v12 = vadd.f32 %v6459_v35, %v8194_v32  ;;  %v6462_v38 = vadd.f32 %v6461_v37, %v6460_v36  ;;  %v7034_v37 = vld [vmem:[%s9004_s3 + $0x228] sm:$0xff]  }
 0x5f9   : > { %v2527_v39 = vadd.f32 %v2526_v14, %v2462_v12  ;;  %v2465_v41 = vadd.f32 %v6462_v38, %v8194_v32  ;;  %v7030_v14 = vld [vmem:[%s9004_s3 + $0x218] sm:$0xff]   ;;  %v7035_v12 = vld [vmem:[%s9004_s3 + $0x1e8] sm:$0xff]  }
 0x5fa   : > { %6497 = vmatprep.subr.bf16.mxu0 %v7030_v14 }
 0x5fb   : > { %v2557_v45 = vmax.f32 %v2527_v39, 0.0  ;;  %v2530_v48 = vadd.f32 %v2529_v19, %v2465_v41 }
 0x5fd   : > { %2604 = vst.msk [vmem:[#allocation2 + $0x11] sm:$0xff] %vm399_vm0, %v2557_v45  ;;  %v2558_v30 = vmax.f32 %v2530_v48, 0.0 }
 0x5ff   : > { %2605 = vst.msk [vmem:[#allocation2 + $0x21] sm:$0xff] %vm399_vm0, %v2558_v30 }
 0x600   : > { %v6463_v5 = vpop.f32.mrb[28].mxu0 }
 0x601   : > { %v6464_v18 = vpop.f32.mrb[29].mxu0 }
 0x602   : > { %v6465_v51 = vadd.f32 %v6464_v18, %v6463_v5  ;;  %v6466_v42 = vpop.f32.mrb[30].mxu0 }
 0x603   : > { %v6467_v20 = vpop.f32.mrb[31].mxu0 }
 0x604   : > { %v2470_v56 = vadd.f32 %v6465_v51, %v8194_v32  ;;  %v6468_v58 = vadd.f32 %v6467_v20, %v6466_v42  ;;  %v2629_v46 = vld [vmem:[#allocation2 + $0x11] sm:$0xff] }
 0x605   : > { %v2692_v62 = vld [vmem:[#allocation2 + $0x10] sm:$0xff]  ;;  %v2636_v8 = vpack.c.bf16 %v2629_v46, %v2628_v52 }
 0x606   : > { %v2535_v6 = vadd.f32 %v6794_v17, %v2470_v56  ;;  %v2473_v7 = vadd.f32 %v6468_v58, %v8194_v32  ;;  %v2740_v1 = vld [vmem:[#allocation2 + $0x12] sm:$0xff]  ;;  %v2741_v4 = vld [vmem:[#allocation2 + $0x22] sm:$0xff]  ;;  %v2620_v23 = vpack.c.bf16 %v2692_v62, %v2612_v60 }
 0x607   : > { %v2630_v9 = vld [vmem:[#allocation2 + $0x21] sm:$0xff]  ;;  %2644 = vrot.lane.b32.xlu1 %v2636_v8, %s9040_s0  ;;  %v2748_v13 = vpack.c.bf16 %v2741_v4, %v2740_v1  ;;  %v7031_v17 = vld [vmem:[%s9004_s3 + $0x1d8] sm:$0xff]  }
 0x608   : > { %v2559_v24 = vmax.f32 %v2535_v6, 0.0  ;;  %v2538_v11 = vadd.f32 %v8163_v40, %v2473_v7  ;;  %2624 = vst.msk [vmem:[#allocation3] sm:$0xff] %vm399_vm0, %v2620_v23  ;;  %v2732_v19 = vpack.c.bf16 %v2630_v9, %v2629_v46  ;;  %v2668_v40 = vpack.c.bf16 %v2740_v1, %v2660_v10  ;;  %v2693_v57 = vld [vmem:[#allocation2 + $0x20] sm:$0xff]  ;;  %6498 = vmatpush3.bf16.msra.mxu0 %v7031_v17 }
 0x609   : > { %2756 = vrot.lane.b32.xlu0 %v2748_v13, %s9040_s0  ;;  %6499 = vmatprep.subr.bf16.mxu0 %v7032_v15  ;;  %v2700_v35 = vpack.c.bf16 %v2693_v57, %v2692_v62  ;;  %v2843_v15 = vld [vmem:[#allocation2 + $0x92] sm:$0xff] }
 0x60a   : > { %2606 = vst.msk [vmem:[#allocation2 + $0x31] sm:$0xff] %vm399_vm0, %v2559_v24  ;;  %v2560_v25 = vmax.f32 %v2538_v11, 0.0  ;;  %2736 = vst.msk [vmem:[#allocation3 + $0x8] sm:$0xff] %vm399_vm0, %v2732_v19 }
 0x60b   : > { %2676 = vrot.lane.b32.xlu1 %v2668_v40, %s9039_s25 }
 0x60c   : > { %2607 = vst.msk [vmem:[#allocation2 + $0x41] sm:$0xff] %vm399_vm0, %v2560_v25  ;;  %v6469_v63 = vpop.f32.mrb[32].mxu0  ;;  %6500 = vmatpush3.bf16.msra.mxu0 %v7033_v26 }
 0x60d   : > { %v6470_v27 = vpop.f32.mrb[33].mxu0  ;;  %6501 = vmatprep.subr.bf16.mxu0 %v7034_v37 }
 0x60e   : > { %v6471_v29 = vadd.f32 %v6470_v27, %v6469_v63  ;;  %v6472_v34 = vpop.f32.mrb[34].mxu0 }
 0x60f   : > { %v6473_v36 = vpop.f32.mrb[35].mxu0  ;;  %2708 = vrot.lane.b32.xlu1 %v2700_v35, %s9038_s24 }
 0x610   : > { %v2478_v38 = vadd.f32 %v6471_v29, %v8194_v32  ;;  %v6474_v39 = vadd.f32 %v6473_v36, %v6472_v34  ;;  %6502 = vmatpush3.bf16.msra.mxu0 %v7035_v12 }
 0x611   : > { %v2773_v41 = vld [vmem:[#allocation2 + $0x30] sm:$0xff] }
 0x612   : > { %v2631_v3 = vld [vmem:[#allocation2 + $0x31] sm:$0xff]  ;;  %v2543_v48 = vadd.f32 %v8167_v21, %v2478_v38  ;;  %v2481_v59 = vadd.f32 %v6474_v39, %v8194_v32  ;;  %v2780_v30 = vpack.c.bf16 %v2773_v41, %v2693_v57 }
 0x613   : > { %v2663_v45 = vld [vmem:[#allocation2 + $0x32] sm:$0xff]  ;;  %v2637_v33 = vpack.c.bf16 %v2631_v3, %v2630_v9  ;;  %v2632_v5 = vld [vmem:[#allocation2 + $0x41] sm:$0xff] }
 0x614   : > { %v2669_v49 = vpack.c.bf16 %v2663_v45, %v2741_v4  ;;  %v2561_v18 = vmax.f32 %v2543_v48, 0.0  ;;  %v2546_v51 = vadd.f32 %v8171_v22, %v2481_v59  ;;  %2788 = vrot.lane.b32.xlu0 %v2780_v30, %s9039_s25  ;;  %2625 = vst.msk [vmem:[#allocation3 + $0x18] sm:$0xff] %vm399_vm0, %v2780_v30  ;;  %v2733_v42 = vpack.c.bf16 %v2632_v5, %v2631_v3  ;;  %v2743_v20 = vld [vmem:[#allocation2 + $0x42] sm:$0xff]  ;;  %v2779_v48 = vld [vmem:[#allocation2 + $0x90] sm:$0xff] }
 0x615   : > { %2646 = vrot.lane.b32.xlu1 %v2637_v33, %s9040_s0  ;;  %v2695_v52 = vld [vmem:[#allocation2 + $0x40] sm:$0xff]  ;;  %v2749_v58 = vpack.c.bf16 %v2743_v20, %v2663_v45 }
 0x616   : > { %2848 = vst.msk [vmem:[#allocation3 + $0x10] sm:$0xff] %vm399_vm0, %v2669_v49  ;;  %2608 = vst.msk [vmem:[#allocation2 + $0x51] sm:$0xff] %vm399_vm0, %v2561_v18  ;;  %v2562_v21 = vmax.f32 %v2546_v51, 0.0  ;;  %v2701_v60 = vpack.c.bf16 %v2695_v52, %v2773_v41 }
 0x617   : > { %2737 = vst.msk [vmem:[#allocation3 + $0x20] sm:$0xff] %vm399_vm0, %v2733_v42 }
 0x618   : > { %2609 = vst.msk [vmem:[#allocation2 + $0x61] sm:$0xff] %vm399_vm0, %v2562_v21  ;;  %v6475_v53 = vpop.f32.mrb[36].mxu0  ;;  %2820 = vrot.lane.b32.xlu0 %v2637_v33, %s9038_s24  ;;  %v2811_v33 = vld [vmem:[#allocation2 + $0x91] sm:$0xff] }
 0x619   : > { %2678 = vrot.lane.b32.xlu1 %v2669_v49, %s9039_s25  ;;  %v6476_v22 = vpop.f32.mrb[37].mxu0 }
 0x61a   : > { %v6477_v54 = vadd.f32 %v6476_v22, %v6475_v53  ;;  %v6478_v56 = vpop.f32.mrb[38].mxu0 }
 0x61b   : > { %v6479_v46 = vpop.f32.mrb[39].mxu0 }
 0x61c   : > { %v2486_v62 = vadd.f32 %v6477_v54, %v8194_v32  ;;  %v6480_v6 = vadd.f32 %v6479_v46, %v6478_v56  ;;  %2758 = vrot.lane.b32.xlu0 %v2749_v58, %s9040_s0 }
 0x61d   : > { %v2854_v7 = vld [vmem:[#allocation3 + $0x10] sm:$0xff]  ;;  %2710 = vrot.lane.b32.xlu1 %v2701_v60, %s9038_s24 }
 0x61e   : > { %6804 = vmatprep.mubr.msk.bf16.mxu1 %vm399_vm0, %v2854_v7  ;;  %v2775_v8 = vld [vmem:[#allocation2 + $0x50] sm:$0xff]  ;;  %v2551_v4 = vadd.f32 %v8165_v16, %v2486_v62  ;;  %v2489_v9 = vadd.f32 %v6480_v6, %v8194_v32 }
 0x61f   : > { %v2633_v10 = vld [vmem:[#allocation2 + $0x51] sm:$0xff]  ;;  %v2781_v23 = vpack.c.bf16 %v2775_v8, %v2695_v52  ;;  %v2634_v13 = vld [vmem:[#allocation2 + $0x61] sm:$0xff] }
 0x620   : > { %v2665_v1 = vld [vmem:[#allocation2 + $0x52] sm:$0xff]  ;;  %v2638_v24 = vpack.c.bf16 %v2633_v10, %v2632_v5  ;;  %v2563_v14 = vmax.f32 %v2551_v4, 0.0  ;;  %v2554_v17 = vadd.f32 %v8169_v44, %v2489_v9  ;;  %v2734_v19 = vpack.c.bf16 %v2634_v13, %v2633_v10  ;;  %v2745_v32 = vld [vmem:[#allocation2 + $0x62] sm:$0xff] }
 0x621   : > { %v2670_v11 = vpack.c.bf16 %v2665_v1, %v2743_v20  ;;  %2790 = vrot.lane.b32.xlu0 %v2781_v23, %s9039_s25  ;;  %2626 = vst.msk [vmem:[#allocation3 + $0x30] sm:$0xff] %vm399_vm0, %v2781_v23  ;;  %v2697_v25 = vld [vmem:[#allocation2 + $0x60] sm:$0xff]  ;;  %v2750_v44 = vpack.c.bf16 %v2745_v32, %v2665_v1 }
 0x622   : > { %2648 = vrot.lane.b32.xlu1 %v2638_v24, %s9040_s0  ;;  %2610 = vst.msk [vmem:[#allocation2 + $0x71] sm:$0xff] %vm399_vm0, %v2563_v14  ;;  %v2564_v16 = vmax.f32 %v2554_v17, 0.0  ;;  %2738 = vst.msk [vmem:[#allocation3 + $0x38] sm:$0xff] %vm399_vm0, %v2734_v19  ;;  %v2702_v40 = vpack.c.bf16 %v2697_v25, %v2775_v8 }
 0x623   : > { %2849 = vst.msk [vmem:[#allocation3 + $0x28] sm:$0xff] %vm399_vm0, %v2670_v11 }
 0x624   : > { %2611 = vst.msk [vmem:[#allocation2 + $0x81] sm:$0xff] %vm399_vm0, %v2564_v16 }
 0x625   : > { %2822 = vrot.lane.b32.xlu0 %v2638_v24, %s9038_s24 }
 0x626   : > { %2680 = vrot.lane.b32.xlu1 %v2670_v11, %s9039_s25 }
 0x629   : > { %2760 = vrot.lane.b32.xlu0 %v2750_v44, %s9040_s0  ;;  %v2777_v26 = vld [vmem:[#allocation2 + $0x70] sm:$0xff] }
 0x62a   : > { %v2857_v57 = vld [vmem:[#allocation3 + $0x28] sm:$0xff]  ;;  %2712 = vrot.lane.b32.xlu1 %v2702_v40, %s9038_s24  ;;  %v2635_v63 = vld [vmem:[#allocation2 + $0x71] sm:$0xff]  ;;  %v2782_v29 = vpack.c.bf16 %v2777_v26, %v2697_v25 }
 0x62b   : > { %6805 = vmatmul.mubr.msk.bf16.vlgmr.msra.gmra.mrb[40].mxu1 %vm399_vm0, %v2857_v57  ;;  %v2667_v27 = vld [vmem:[#allocation2 + $0x72] sm:$0xff]  ;;  %v2639_v34 = vpack.c.bf16 %v2635_v63, %v2634_v13  ;;  %v2747_v36 = vld [vmem:[#allocation2 + $0x82] sm:$0xff] }
 0x62c   : > { %v2671_v35 = vpack.c.bf16 %v2667_v27, %v2745_v32  ;;  %v2810_v37 = vld [vmem:[#allocation2 + $0x81] sm:$0xff]  ;;  %v2847_v12 = vpack.c.bf16 %v2843_v15, %v2747_v36  ;;  %2627 = vst.msk [vmem:[#allocation3 + $0x48] sm:$0xff] %vm399_vm0, %v2782_v29  ;;  %v2751_v41 = vpack.c.bf16 %v2747_v36, %v2667_v27 }
 0x62d   : > { %2792 = vrot.lane.b32.xlu0 %v2782_v29, %s9039_s25  ;;  %v2735_v38 = vpack.c.bf16 %v2810_v37, %v2635_v63  ;;  %v2699_v39 = vld [vmem:[#allocation2 + $0x80] sm:$0xff]  ;;  %v2815_v49 = vpack.c.bf16 %v2811_v33, %v2810_v37 }
 0x62e   : > { %2650 = vrot.lane.b32.xlu1 %v2639_v34, %s9040_s0  ;;  %2850 = vst.msk [vmem:[#allocation3 + $0x40] sm:$0xff] %vm399_vm0, %v2671_v35  ;;  %2851 = vst.msk [vmem:[#allocation3 + $0x58] sm:$0xff] %vm399_vm0, %v2847_v12  ;;  %v2703_v45 = vpack.c.bf16 %v2699_v39, %v2777_v26  ;;  %v2783_v30 = vpack.c.bf16 %v2779_v48, %v2699_v39  ;;  %v5930_v36 = vld [vmem:[%s9005_s4 + $0x3] ss:$0 sm:$0xff] }
 0x62f   : > { %2739 = vst.msk [vmem:[#allocation3 + $0x50] sm:$0xff] %vm399_vm0, %v2735_v38 }
 0x631   : > { %2824 = vrot.lane.b32.xlu0 %v2639_v34, %s9038_s24  ;;  %v3136_v34 = vld [vmem:[%s9006_s5] sm:$0xff] }
 0x632   : > { %2682 = vrot.lane.b32.xlu1 %v2671_v35, %s9039_s25 }
 0x635   : > { %v2860_v3 = vld [vmem:[#allocation3 + $0x40] sm:$0xff]  ;;  %2762 = vrot.lane.b32.xlu0 %v2751_v41, %s9040_s0  ;;  %v2863_v59 = vld [vmem:[#allocation3 + $0x58] sm:$0xff] }
 0x636   : > { %6808 = vmatprep.mubr.msk.bf16.mxu1 %vm399_vm0, %v2860_v3  ;;  %2714 = vrot.lane.b32.xlu1 %v2703_v45, %s9038_s24 }
 0x637   : > { %6809 = vmatmul.mubr.msk.bf16.gmra.mrb[44].mxu1 %vm399_vm0, %v2863_v59 }
 0x638   : > { %6828 = vmatprep.mubr.msk.f32.mxu1 %vm3138_vm1, %v3136_v34  ;;  %v7050_v34 = vld [vmem:[%s9009_s8 + $0xc0] sm:$0xff]  }
 0x639   : > { %2794 = vrot.lane.b32.xlu0 %v2783_v30, %s9039_s25 }
 0x63d   : > { %2826 = vrot.lane.b32.xlu0 %v2815_v49, %s9038_s24  ;;  %s5733_s24 = sshll.u32 %s385_s12, 4 }
 0x679   : > { %v2645_v5 = vpop.permute.xlu1 %2644 }
 0x67a   : > { %2656 = vst.msk [vmem:[#allocation3] sm:$0xff] %vm964_vm13, %v2645_v5 }
 0x67b   : > { %v2757_v18 = vpop.permute.xlu0 %2756 }
 0x67c   : > { %2768 = vst.msk [vmem:[#allocation3 + $0x8] sm:$0xff] %vm964_vm13, %v2757_v18 }
 0x67d   : > { %v2677_v51 = vpop.permute.xlu1 %2676 }
 0x67e   : > { %2688 = vst.msk [vmem:[#allocation3] sm:$0xff] %vm997_vm14, %v2677_v51 }
 0x681   : > { %v2709_v42 = vpop.permute.xlu1 %2708 }
 0x682   : > { %2720 = vst.msk [vmem:[#allocation3] sm:$0xff] %vm1030_vm15, %v2709_v42 }
 0x686   : > { %v2789_v21 = vpop.permute.xlu0 %2788 }
 0x687   : > { %v2647_v20 = vpop.permute.xlu1 %2646  ;;  %2800 = vst.msk [vmem:[#allocation3 + $0x8] sm:$0xff] %vm997_vm14, %v2789_v21 }
 0x688   : > { %2657 = vst.msk [vmem:[#allocation3 + $0x18] sm:$0xff] %vm964_vm13, %v2647_v20 }
 0x689   : > { %v2852_v46 = vld [vmem:[#allocation3] sm:$0xff] }
 0x68a   : > { %v2821_v52 = vpop.permute.xlu0 %2820 }
 0x68b   : > { %v2679_v53 = vpop.permute.xlu1 %2678  ;;  %2832 = vst.msk [vmem:[#allocation3 + $0x8] sm:$0xff] %vm1030_vm15, %v2821_v52 }
 0x68c   : > { %2689 = vst.msk [vmem:[#allocation3 + $0x18] sm:$0xff] %vm997_vm14, %v2679_v53 }
 0x68e   : > { %v2759_v22 = vpop.permute.xlu0 %2758 }
 0x68f   : > { %v2711_v54 = vpop.permute.xlu1 %2710  ;;  %2769 = vst.msk [vmem:[#allocation3 + $0x20] sm:$0xff] %vm964_vm13, %v2759_v22 }
 0x690   : > { %2721 = vst.msk [vmem:[#allocation3 + $0x18] sm:$0xff] %vm1030_vm15, %v2711_v54 }
 0x692   : > { %v2853_v60 = vld [vmem:[#allocation3 + $0x8] sm:$0xff] }
 0x693   : > { %v2791_v56 = vpop.permute.xlu0 %2790  ;;  %3022 = vmatprep.mubr.bf16.mxu0 %v2853_v60 }
 0x694   : > { %v2649_v58 = vpop.permute.xlu1 %2648  ;;  %2801 = vst.msk [vmem:[#allocation3 + $0x20] sm:$0xff] %vm997_vm14, %v2791_v56  ;;  %3023 = vmatmul.mubr.bf16.vlgmr.msra.gmra.mrb[40].mxu0 %v2852_v46 }
 0x695   : > { %2658 = vst.msk [vmem:[#allocation3 + $0x30] sm:$0xff] %vm964_vm13, %v2649_v58 }
 0x697   : > { %v2823_v62 = vpop.permute.xlu0 %2822  ;;  %v2855_v9 = vld [vmem:[#allocation3 + $0x18] sm:$0xff] }
 0x698   : > { %v2681_v6 = vpop.permute.xlu1 %2680  ;;  %2833 = vst.msk [vmem:[#allocation3 + $0x20] sm:$0xff] %vm1030_vm15, %v2823_v62 }
 0x699   : > { %2690 = vst.msk [vmem:[#allocation3 + $0x30] sm:$0xff] %vm997_vm14, %v2681_v6 }
 0x69b   : > { %v2761_v7 = vpop.permute.xlu0 %2760 }
 0x69c   : > { %v2713_v8 = vpop.permute.xlu1 %2712  ;;  %2770 = vst.msk [vmem:[#allocation3 + $0x38] sm:$0xff] %vm964_vm13, %v2761_v7 }
 0x69d   : > { %2722 = vst.msk [vmem:[#allocation3 + $0x30] sm:$0xff] %vm1030_vm15, %v2713_v8 }
 0x69f   : > { %v2793_v10 = vpop.permute.xlu0 %2792  ;;  %v2856_v4 = vld [vmem:[#allocation3 + $0x20] sm:$0xff] }
 0x6a0   : > { %v2651_v1 = vpop.permute.xlu1 %2650  ;;  %2802 = vst.msk [vmem:[#allocation3 + $0x38] sm:$0xff] %vm997_vm14, %v2793_v10  ;;  %3030 = vmatprep.mubr.bf16.mxu0 %v2856_v4 }
 0x6a1   : > { %2659 = vst.msk [vmem:[#allocation3 + $0x48] sm:$0xff] %vm964_vm13, %v2651_v1  ;;  %3031 = vmatmul.mubr.bf16.gmra.mrb[44].mxu0 %v2855_v9 }
 0x6a3   : > { %v2825_v23 = vpop.permute.xlu0 %2824 }
 0x6a4   : > { %v2683_v24 = vpop.permute.xlu1 %2682  ;;  %2834 = vst.msk [vmem:[#allocation3 + $0x38] sm:$0xff] %vm1030_vm15, %v2825_v23  ;;  %v2858_v19 = vld [vmem:[#allocation3 + $0x30] sm:$0xff] }
 0x6a5   : > { %2691 = vst.msk [vmem:[#allocation3 + $0x48] sm:$0xff] %vm997_vm14, %v2683_v24 }
 0x6a7   : > { %v2763_v11 = vpop.permute.xlu0 %2762 }
 0x6a8   : > { %2771 = vst.msk [vmem:[#allocation3 + $0x50] sm:$0xff] %vm964_vm13, %v2763_v11  ;;  %v2715_v13 = vpop.permute.xlu1 %2714 }
 0x6a9   : > { %2723 = vst.msk [vmem:[#allocation3 + $0x48] sm:$0xff] %vm1030_vm15, %v2715_v13 }
 0x6ab   : > { %v2795_v14 = vpop.permute.xlu0 %2794  ;;  %v2859_v17 = vld [vmem:[#allocation3 + $0x38] sm:$0xff] }
 0x6ac   : > { %2803 = vst.msk [vmem:[#allocation3 + $0x50] sm:$0xff] %vm997_vm14, %v2795_v14  ;;  %3038 = vmatprep.mubr.bf16.mxu0 %v2859_v17 }
 0x6ad   : > { %3039 = vmatmul.mubr.bf16.gmra.mrb[48].mxu0 %v2858_v19 }
 0x6af   : > { %v2827_v16 = vpop.permute.xlu0 %2826 }
 0x6b0   : > { %2835 = vst.msk [vmem:[#allocation3 + $0x50] sm:$0xff] %vm1030_vm15, %v2827_v16  ;;  %v2861_v25 = vld [vmem:[#allocation3 + $0x48] sm:$0xff] }
 0x6b7   : > { %v2862_v32 = vld [vmem:[#allocation3 + $0x50] sm:$0xff] }
 0x6b8   : > { %3046 = vmatprep.mubr.bf16.mxu0 %v2862_v32 }
 0x6b9   : > { %3047 = vmatmul.mubr.bf16.gmra.mrb[52].mxu0 %v2861_v25 }
 0x6fe   : > { %v6806_v44 = vpop.f32.mrb[40].mxu1 }
 0x6ff   : > { %v3089_v40 = vpop.f32.mrb[41].mxu1 }
 0x700   : > { %v6807_v57 = vpop.f32.mrb[42].mxu1 }
 0x701   : > { %v3092_v15 = vpop.f32.mrb[43].mxu1 }
 0x70a   : > { %v8317_v26 = vpop.f32.mrb[44].mxu1 }
 0x70b   : > { %v3105_v63 = vpop.f32.mrb[45].mxu1 }
 0x70c   : > { %v8319_v27 = vpop.f32.mrb[46].mxu1 }
 0x70d   : > { %v3108_v29 = vpop.f32.mrb[47].mxu1 }
 0x767   : > { %v6503_v35 = vpop.f32.mrb[40].mxu0 }
 0x768   : > { %v6504_v37 = vpop.f32.mrb[41].mxu0 }
 0x769   : > { %v6505_v12 = vadd.f32 %v6504_v37, %v6503_v35  ;;  %v6506_v38 = vpop.f32.mrb[42].mxu0  ;;  %v7051_v35 = vld [vmem:[%s9009_s8 + $0x80] sm:$0xff]   ;;  %v7049_v37 = vld [vmem:[%s9009_s8 + $0x8] sm:$0xff]  }
 0x76a   : > { %v6507_v39 = vpop.f32.mrb[43].mxu0 }
 0x76b   : > { %v3025_v41 = vadd.f32 %v6505_v12, %v5930_v36  ;;  %v6508_v3 = vadd.f32 %v6507_v39, %v6506_v38  ;;  %v7052_v12 = vld [vmem:[%s9009_s8 + $0x50] sm:$0xff]   ;;  %v7055_v38 = vld [vmem:[%s9009_s8 + $0x88] sm:$0xff]  }
 0x76c   : > { %v7058_v39 = vld [vmem:[%s9009_s8 + $0xd0] sm:$0xff]  }
 0x76d   : > { %v3090_v45 = vadd.f32 %v3089_v40, %v3025_v41  ;;  %v3028_v48 = vadd.f32 %v6508_v3, %v5930_v36  ;;  %v3137_v40 = vld [vmem:[%s9006_s5 + $0x8] sm:$0xff]  ;;  %v7053_v41 = vld [vmem:[%s9009_s8 + $0x10] sm:$0xff]   ;;  %v7056_v3 = vld [vmem:[%s9009_s8 + $0x58] sm:$0xff]  }
 0x76f   : > { %v3093_v59 = vadd.f32 %v3092_v15, %v3028_v48  ;;  %v3120_v30 = vadd.f32 %v3090_v45, %v8003_v43  ;;  %v7059_v45 = vld [vmem:[%s9009_s8 + $0x90] sm:$0xff]   ;;  %v7062_v48 = vld [vmem:[%s9009_s8 + $0xd8] sm:$0xff]  }
 0x771   : > { %v3121_v33 = vadd.f32 %v3093_v59, %v8011_v47  ;;  %3128 = vst.msk [vmem:[%s8333_s13] sm:$0xff] %vm399_vm0, %v3120_v30  ;;  %v7057_v59 = vld [vmem:[%s9009_s8 + $0x18] sm:$0xff]  }
 0x773   : > { %3129 = vst.msk [vmem:[%s8333_s13 + $0x8] sm:$0xff] %vm399_vm0, %v3121_v33  ;;  %v6887_v5 = vpack.c.bf16 %v3121_v33, %v3120_v30  ;;  %v7060_v30 = vld [vmem:[%s9009_s8 + $0x60] sm:$0xff]   ;;  %v7063_v33 = vld [vmem:[%s9009_s8 + $0x98] sm:$0xff]  }
 0x774   : > { %v6509_v49 = vpop.f32.mrb[44].mxu0 }
 0x775   : > { %v6510_v18 = vpop.f32.mrb[45].mxu0  ;;  %6888 = vmatprep.subr.bf16.mxu1 %v6887_v5 }
 0x776   : > { %v6511_v51 = vadd.f32 %v6510_v18, %v6509_v49  ;;  %v6512_v42 = vpop.f32.mrb[46].mxu0  ;;  %6890 = vmatpush3.bf16.msra.mxu1 %v6887_v5  ;;  %v7066_v49 = vld [vmem:[%s9009_s8 + $0xe0] sm:$0xff]   ;;  %v7064_v18 = vld [vmem:[%s9009_s8 + $0x68] sm:$0xff]  }
 0x777   : > { %v6513_v21 = vpop.f32.mrb[47].mxu0  ;;  %v7061_v5 = vld [vmem:[%s9009_s8 + $0x20] sm:$0xff]  }
 0x778   : > { %v3033_v20 = vadd.f32 %v6511_v51, %v5930_v36  ;;  %v6514_v52 = vadd.f32 %v6513_v21, %v6512_v42  ;;  %v7065_v51 = vld [vmem:[%s9009_s8 + $0x28] sm:$0xff]   ;;  %v5955_v42 = vld [vmem:[%s9008_s7] ss:$0 sm:$0xff] }
 0x77a   : > { %v3098_v53 = vadd.f32 %v6806_v44, %v3033_v20  ;;  %v3036_v43 = vadd.f32 %v6514_v52, %v5930_v36 }
 0x77c   : > { %v3101_v22 = vadd.f32 %v6807_v57, %v3036_v43  ;;  %v3122_v47 = vadd.f32 %v3098_v53, %v8050_v61  ;;  %v7036_v57 = vld [vmem:[%s9007_s6] sm:$0xff]  }
 0x77e   : > { %v3123_v54 = vadd.f32 %v3101_v22, %v8057_v31  ;;  %3130 = vst.msk [vmem:[%s8333_s13 + $0x10] sm:$0xff] %vm399_vm0, %v3122_v47 }
 0x780   : > { %v6515_v56 = vpop.f32.mrb[48].mxu0  ;;  %3131 = vst.msk [vmem:[%s8333_s13 + $0x18] sm:$0xff] %vm399_vm0, %v3123_v54  ;;  %v6891_v58 = vpack.c.bf16 %v3123_v54, %v3122_v47  ;;  %v7069_v54 = vld [vmem:[%s9009_s8 + $0xa0] sm:$0xff]  }
 0x781   : > { %v6516_v60 = vpop.f32.mrb[49].mxu0 }
 0x782   : > { %v6517_v46 = vadd.f32 %v6516_v60, %v6515_v56  ;;  %v6518_v62 = vpop.f32.mrb[50].mxu0  ;;  %6892 = vmatprep.subr.bf16.mxu1 %v6891_v58  ;;  %v7073_v60 = vld [vmem:[%s9009_s8 + $0x30] sm:$0xff]  }
 0x783   : > { %v6519_v6 = vpop.f32.mrb[51].mxu0  ;;  %6894 = vmatpush3.bf16.msra.mxu1 %v6891_v58  ;;  %v7072_v58 = vld [vmem:[%s9009_s8 + $0x70] sm:$0xff]  }
 0x784   : > { %v3041_v7 = vadd.f32 %v6517_v46, %v5930_v36  ;;  %v6520_v8 = vadd.f32 %v6519_v6, %v6518_v62  ;;  %v7074_v46 = vld [vmem:[%s9009_s8 + $0xe8] sm:$0xff]  }
 0x785   : > { %v7077_v62 = vld [vmem:[%s9009_s8 + $0xa8] sm:$0xff]  }
 0x786   : > { %v3106_v10 = vadd.f32 %v3105_v63, %v3041_v7  ;;  %v3044_v61 = vadd.f32 %v6520_v8, %v5930_v36  ;;  %v7046_v63 = vld [vmem:[%s9009_s8 + $0x40] sm:$0xff]   ;;  %v3506_v6 = vld [vmem:[#allocation4 + $0x2a] sm:$0xf] }
 0x787   : > { %6546 = vmatprep.subr.bf16.mxu0 %v7046_v63 }
 0x788   : > { %v3109_v1 = vadd.f32 %v3108_v29, %v3044_v61  ;;  %v3124_v31 = vadd.f32 %v3106_v10, %v8078_v2  ;;  %v7048_v29 = vld [vmem:[%s9009_s8 + $0x48] sm:$0xff]  }
 0x78a   : > { %v3125_v4 = vadd.f32 %v3109_v1, %v8088_v50  ;;  %3132 = vst.msk [vmem:[%s8333_s13 + $0x20] sm:$0xff] %vm399_vm0, %v3124_v31 }
 0x78c   : > { %v6521_v9 = vpop.f32.mrb[52].mxu0  ;;  %3133 = vst.msk [vmem:[%s8333_s13 + $0x28] sm:$0xff] %vm399_vm0, %v3125_v4  ;;  %v6895_v23 = vpack.c.bf16 %v3125_v4, %v3124_v31 }
 0x78d   : > { %v6522_v24 = vpop.f32.mrb[53].mxu0 }
 0x78e   : > { %v6523_v11 = vadd.f32 %v6522_v24, %v6521_v9  ;;  %v6524_v13 = vpop.f32.mrb[54].mxu0  ;;  %6896 = vmatprep.subr.bf16.mxu1 %v6895_v23 }
 0x78f   : > { %v6525_v14 = vpop.f32.mrb[55].mxu0  ;;  %6898 = vmatpush3.bf16.msra.mxu1 %v6895_v23 }
 0x790   : > { %v3049_v17 = vadd.f32 %v6523_v11, %v5930_v36  ;;  %v6526_v19 = vadd.f32 %v6525_v14, %v6524_v13 }
 0x792   : > { %v3114_v2 = vadd.f32 %v8317_v26, %v3049_v17  ;;  %v3052_v16 = vadd.f32 %v6526_v19, %v5930_v36  ;;  %v7054_v36 = vld [vmem:[%s9009_s8 + $0xc8] sm:$0xff]  }
 0x794   : > { %v3117_v50 = vadd.f32 %v8319_v27, %v3052_v16  ;;  %v3126_v32 = vadd.f32 %v3114_v2, %v8102_v55  ;;  %v7037_v55 = vld [vmem:[%s9007_s6 + $0x8] sm:$0xff]   ;;  %v7047_v27 = vld [vmem:[%s9009_s8] sm:$0xff]  }
 0x795   : > { %6547 = vmatpush3.bf16.msra.mxu0 %v7047_v27 }
 0x796   : > { %v3127_v25 = vadd.f32 %v3117_v50, %v8112_v28  ;;  %3134 = vst.msk [vmem:[%s8333_s13 + $0x30] sm:$0xff] %vm399_vm0, %v3126_v32  ;;  %6548 = vmatprep.subr.bf16.mxu0 %v7048_v29  ;;  %v7080_v29 = vld [vmem:[%s9009_s8 + $0x78] sm:$0xff]  }
 0x798   : > { %3135 = vst.msk [vmem:[%s8333_s13 + $0x38] sm:$0xff] %vm399_vm0, %v3127_v25  ;;  %v6899_v44 = vpack.c.bf16 %v3127_v25, %v3126_v32  ;;  %s7334_s13 = smov [#allocation6]  }
 0x799   : > { %6549 = vmatpush3.bf16.msra.mxu0 %v7049_v37  ;;  %v7084_v37 = vld [vmem:[%s9009_s8 + $0xf8] sm:$0xff]   ;;  %s7262_s29 = sshll.u32 %s7334_s13, 4  ;;  %s7263_s29 = int_to_ptr.vmem [resolvable:$false] %s7262_s29 }
 0x79a   : > { %6900 = vmatprep.subr.bf16.mxu1 %v6899_v44  ;;  %6550 = vmatprep.subr.bf16.mxu0 %v7052_v12  ;;  %s7264_s2 = scalar_lea.vmem %s7263_s29, 512 }
 0x79b   : > { %6902 = vmatpush3.bf16.msra.mxu1 %v6899_v44 }
 0x79c   : > { %6831 = vmatprep.subr.bf16.mxu1 %v7322_v0 }
 0x79d   : > { %6551 = vmatpush3.bf16.msra.mxu0 %v7053_v41 }
 0x79e   : > { %6829 = vmatmul.mubr.msk.f32.vlgmr.msra.gmra.mrb[48].mxu1 %vm3138_vm1, %v3137_v40  ;;  %6552 = vmatprep.subr.bf16.mxu0 %v7056_v3 }
 0x79f   : > { %6832 = vmatpush3.bf16.msra.mxu1 %v7036_v57  ;;  %6835 = vmatprep.mubr.msk.bf16.mxu1 %vm7333_vm2, %v7322_v0 }
 0x7a0   : > { %6833 = vmatprep.subr.bf16.mxu1 %v7322_v0 }
 0x7a1   : > { %6553 = vmatpush3.bf16.msra.mxu0 %v7057_v59 }
 0x7a2   : > { %6554 = vmatprep.subr.bf16.mxu0 %v7060_v30 }
 0x7a3   : > { %6834 = vmatpush3.bf16.msra.mxu1 %v7037_v55 }
 0x7a4   : > { %6568 = vmatprep.subr.bf16.mxu1 %v7050_v34  ;;  %v7081_v34 = vld [vmem:[%s9009_s8 + $0x38] sm:$0xff]  }
 0x7a5   : > { %6555 = vmatpush3.bf16.msra.mxu0 %v7061_v5 }
 0x7a6   : > { %6556 = vmatprep.subr.bf16.mxu0 %v7064_v18  ;;  %v7088_v18 = vld [vmem:[%s9009_s8 + $0x110] sm:$0xff]  }
 0x7a9   : > { %6557 = vmatpush3.bf16.msra.mxu0 %v7065_v51  ;;  %v7089_v51 = vld [vmem:[%s9009_s8 + $0x118] sm:$0xff]  }
 0x7aa   : > { %6558 = vmatprep.subr.bf16.mxu0 %v7072_v58  ;;  %v7104_v58 = vld [vmem:[%s9009_s8 + $0x170] sm:$0xff]  }
 0x7ad   : > { %6559 = vmatpush3.bf16.msra.mxu0 %v7073_v60  ;;  %v7107_v60 = vld [vmem:[%s9009_s8 + $0x1a8] sm:$0xff]  }
 0x7ae   : > { %6560 = vmatprep.subr.bf16.mxu0 %v7080_v29 }
 0x7b1   : > { %6561 = vmatpush3.bf16.msra.mxu0 %v7081_v34 }
 0x7b2   : > { %6839 = vmatprep.subr.bf16.mxu0 %v7322_v0 }
 0x871   : > { %v6830_v28 = vpop.f32.mrb[48].mxu1 }
 0x872   : > { %v3211_v15 = vpop.f32.mrb[49].mxu1 }
 0x873   : > { %v3220_v26 = vpack.c.bf16 %v6830_v28, %v3211_v15 }
 0x875   : > { %6836 = vmatmul.mubr.msk.bf16.vlgmr.msra.gmra.mrb[52].mxu1 %vm399_vm0, %v3220_v26  ;;  %vm3368_vm0 = vcmask 519168  }
 0x876   : > { %6569 = vmatpush3.bf16.msra.mxu1 %v7051_v35  ;;  %v7082_v35 = vld [vmem:[%s9009_s8 + $0xf0] sm:$0xff]  }
 0x877   : > { %6570 = vmatprep.subr.bf16.mxu1 %v7054_v36  ;;  %v7083_v36 = vld [vmem:[%s9009_s8 + $0xb0] sm:$0xff]  }
 0x87a   : > { %6571 = vmatpush3.bf16.msra.mxu1 %v7055_v38  ;;  %v7086_v38 = vld [vmem:[%s9009_s8 + $0xb8] sm:$0xff]  }
 0x87b   : > { %6572 = vmatprep.subr.bf16.mxu1 %v7058_v39 }
 0x87e   : > { %6573 = vmatpush3.bf16.msra.mxu1 %v7059_v45 }
 0x87f   : > { %6574 = vmatprep.subr.bf16.mxu1 %v7062_v48  ;;  %v7085_v48 = vld [vmem:[%s9009_s8 + $0x100] sm:$0xff]  }
 0x882   : > { %6575 = vmatpush3.bf16.msra.mxu1 %v7063_v33  ;;  %v7087_v33 = vld [vmem:[%s9009_s8 + $0x108] sm:$0xff]  }
 0x883   : > { %6576 = vmatprep.subr.bf16.mxu1 %v7066_v49 }
 0x886   : > { %6577 = vmatpush3.bf16.msra.mxu1 %v7069_v54  ;;  %v7106_v54 = vld [vmem:[%s9009_s8 + $0x1e8] sm:$0xff]  }
 0x887   : > { %6578 = vmatprep.subr.bf16.mxu1 %v7074_v46  ;;  %v7110_v46 = vld [vmem:[%s9009_s8 + $0x1f0] sm:$0xff]  }
 0x88a   : > { %6579 = vmatpush3.bf16.msra.mxu1 %v7077_v62  ;;  %v7105_v62 = vld [vmem:[%s9009_s8 + $0x130] sm:$0xff]  }
 0x88b   : > { %6580 = vmatprep.subr.bf16.mxu1 %v7082_v35 }
 0x88e   : > { %6581 = vmatpush3.bf16.msra.mxu1 %v7083_v36 }
 0x88f   : > { %6582 = vmatprep.subr.bf16.mxu1 %v7084_v37 }
 0x892   : > { %6583 = vmatpush3.bf16.msra.mxu1 %v7086_v38  ;;  %v7121_v38 = vld [vmem:[%s9009_s8 + $0x1c0] sm:$0xff]  }
 0x948   : > { %v3281_v21 = vpop.f32.mrb[52].mxu1 }
 0x949   : > { %v8448_v20 = vadd.f32 %v5955_v42, %v3281_v21  ;;  %v6837_v52 = vpop.f32.mrb[53].mxu1  ;;  %v7098_v21 = vld [vmem:[%s9009_s8 + $0x160] sm:$0xff]  }
 0x94a   : > { %v3284_v53 = vpop.f32.mrb[54].mxu1  ;;  %v7099_v52 = vld [vmem:[%s9009_s8 + $0x120] sm:$0xff]   ;;  %6595 = vmatprep.subr.bf16.mxu1 %v7098_v21 }
 0x94b   : > { %v3363_v43 = vcombine.high %v8448_v20, %v8448_v20  ;;  %3369 = vst.msk [vmem:[#allocation4 + $0x9] sm:$0xf] %vm3368_vm0, %v8448_v20  ;;  %v8454_v22 = vadd.f32 %v5955_v42, %v3284_v53  ;;  %v6838_v47 = vpop.f32.mrb[55].mxu1  ;;  %v7100_v53 = vld [vmem:[%s9009_s8 + $0x168] sm:$0xff]  }
 0x94c   : > { %v7103_v47 = vld [vmem:[%s9009_s8 + $0x1a0] sm:$0xff]  }
 0x94d   : > { %3370 = vst.msk [vmem:[#allocation4 + $0x11] sm:$0xf] %vm3368_vm0, %v3363_v43  ;;  %v3364_v56 = vcombine.high %v8454_v22, %v8454_v22  ;;  %3371 = vst.msk [vmem:[#allocation4 + $0x19] sm:$0xf] %vm3368_vm0, %v8454_v22  ;;  %v7102_v43 = vld [vmem:[%s9009_s8 + $0x1e0] sm:$0xff]  }
 0x94f   : > { %3372 = vst.msk [vmem:[#allocation4 + $0x21] sm:$0xf] %vm3368_vm0, %v3364_v56  ;;  %v7101_v56 = vld [vmem:[%s9009_s8 + $0x128] sm:$0xff]  }
 0x952   : > { %v7038_v7 = vld [vmem:[#allocation4 + $0x1] ss:$8 sps:$4 sm:$0xff]  }
 0x953   : > { %v7067_v17 = vld [vmem:[#allocation4] ss:$8 sps:$4 sm:$0xff]  }
 0x954   : > { %v3503_v8 = vld [vmem:[#allocation4 + $0x12] sm:$0xf]  ;;  %v3504_v10 = vld [vmem:[#allocation4 + $0x1a] sm:$0xf]  ;;  %v7070_v40 = vld [vmem:[#allocation4 + $0x2] ss:$8 sps:$4 sm:$0xff]  }
 0x955   : > { %v7039_v61 = vld [vmem:[#allocation4 + $0x11] ss:$8 sps:$4 sm:$0xff]   ;;  %v3511_v31 = vcombine.low %v3503_v8, %v3504_v10 }
 0x956   : > { %v3505_v1 = vld [vmem:[#allocation4 + $0x22] sm:$0xf]  ;;  %v3399_v4 = vpack.c.bf16 %v7039_v61, %v7038_v7  ;;  %v7040_v9 = vld [vmem:[#allocation4 + $0x8] ss:$8 sps:$4 sm:$0xff]   ;;  %v7114_v8 = vld [vmem:[%s9009_s8 + $0x1f8] sm:$0xff]  }
 0x957   : > { %v7041_v23 = vld [vmem:[#allocation4 + $0x18] ss:$8 sps:$4 sm:$0xff]   ;;  %v3512_v24 = vcombine.low %v3505_v1, %v3506_v6  ;;  %v7042_v11 = vld [vmem:[#allocation4 + $0xa] ss:$8 sps:$4 sm:$0xff]  }
 0x958   : > { %3401 = vrot.lane.b32.xlu1 %v3399_v4, %s9039_s25  ;;  %v3432_v13 = vpack.c.bf16 %v7041_v23, %v7040_v9  ;;  %v7043_v14 = vld [vmem:[#allocation4 + $0x1a] ss:$8 sps:$4 sm:$0xff]   ;;  %v7075_v55 = vld [vmem:[#allocation4 + $0x9] ss:$8 sps:$4 sm:$0xff]  }
 0x959   : > { %v3515_v19 = vpack.c.bf16 %v3512_v24, %v3511_v31  ;;  %v7044_v2 = vld [vmem:[#allocation4 + $0x11] ss:$8 sps:$4 sm:$0xff]   ;;  %v7045_v16 = vld [vmem:[#allocation4 + $0x21] ss:$8 sps:$4 sm:$0xff]   ;;  %v3464_v50 = vpack.c.bf16 %v7043_v14, %v7042_v11 }
 0x95a   : > { %3434 = vrot.lane.b32.xlu0 %v3432_v13, %s9039_s25  ;;  %v7068_v32 = vld [vmem:[#allocation4 + $0x10] ss:$8 sps:$4 sm:$0xff]   ;;  %v3497_v25 = vpack.c.bf16 %v7045_v16, %v7044_v2  ;;  %v7079_v27 = vld [vmem:[#allocation4 + $0x20] ss:$8 sps:$4 sm:$0xff]  }
 0x95b   : > { %3516 = vst.msk [vmem:[#allocation5 + $0x20] sm:$0xff] %vm3138_vm1, %v3515_v19  ;;  %v3385_v44 = vpack.c.bf16 %v7068_v32, %v7067_v17  ;;  %v7071_v57 = vld [vmem:[#allocation4 + $0x12] ss:$8 sps:$4 sm:$0xff]   ;;  %v7112_v61 = vld [vmem:[%s9009_s8 + $0x180] sm:$0xff]   ;;  %v7116_v9 = vld [vmem:[%s9009_s8 + $0x188] sm:$0xff]  }
 0x95c   : > { %3466 = vrot.lane.b32.xlu1 %v3464_v50, %s9039_s25  ;;  %v3418_v28 = vpack.c.bf16 %v7071_v57, %v7070_v40  ;;  %v7076_v15 = vld [vmem:[#allocation4 + $0x19] ss:$8 sps:$4 sm:$0xff]   ;;  %v7111_v7 = vld [vmem:[%s9009_s8 + $0x1b0] sm:$0xff]   ;;  %v7117_v23 = vld [vmem:[%s9009_s8 + $0x148] sm:$0xff]  }
 0x95d   : > { %3386 = vst.msk [vmem:[#allocation5] sm:$0xff] %vm3138_vm1, %v3385_v44  ;;  %v7078_v26 = vld [vmem:[#allocation4 + $0x10] ss:$8 sps:$4 sm:$0xff]   ;;  %v3450_v63 = vpack.c.bf16 %v7076_v15, %v7075_v55  ;;  %v7118_v31 = vld [vmem:[%s9009_s8 + $0x200] sm:$0xff]  }
 0x95e   : > { %3499 = vrot.lane.b32.xlu0 %v3497_v25, %s9039_s25  ;;  %3419 = vst.msk [vmem:[#allocation5 + $0x8] sm:$0xff] %vm3138_vm1, %v3418_v28  ;;  %v3483_v12 = vpack.c.bf16 %v7079_v27, %v7078_v26  ;;  %v7108_v6 = vld [vmem:[%s9009_s8 + $0x178] sm:$0xff]   ;;  %v7113_v4 = vld [vmem:[%s9009_s8 + $0x140] sm:$0xff]  }
 0x95f   : > { %3451 = vst.msk [vmem:[#allocation5 + $0x10] sm:$0xff] %vm3138_vm1, %v3450_v63  ;;  %v7109_v10 = vld [vmem:[%s9009_s8 + $0x138] sm:$0xff]   ;;  %v5959_v17 = vld [vmem:[%s9010_s9] ss:$0 sm:$0xff] }
 0x960   : > { %3484 = vst.msk [vmem:[#allocation5 + $0x18] sm:$0xff] %vm3138_vm1, %v3483_v12  ;;  %v7115_v1 = vld [vmem:[%s9009_s8 + $0x1b8] sm:$0xff]  }
 0x962   : > { %v3521_v42 = vld [vmem:[#allocation5 + $0x20] sm:$0xff] }
 0x9ca   : > { %v3402_v39 = vpop.permute.xlu1 %3401 }
 0x9cb   : > { %3405 = vst.msk [vmem:[#allocation5] sm:$0xff] %vm3404_vm4, %v3402_v39 }
 0x9cc   : > { %v3435_v41 = vpop.permute.xlu0 %3434 }
 0x9cd   : > { %3437 = vst.msk [vmem:[#allocation5 + $0x8] sm:$0xff] %vm3404_vm4, %v3435_v41  ;;  %v7124_v41 = vld [vmem:[%s9009_s8 + $0x190] sm:$0xff]  }
 0x9ce   : > { %v3467_v3 = vpop.permute.xlu1 %3466 }
 0x9cf   : > { %3469 = vst.msk [vmem:[#allocation5 + $0x10] sm:$0xff] %vm3404_vm4, %v3467_v3  ;;  %v7125_v3 = vld [vmem:[%s9009_s8 + $0x150] sm:$0xff]  }
 0x9d0   : > { %v3500_v45 = vpop.permute.xlu0 %3499 }
 0x9d1   : > { %3502 = vst.msk [vmem:[#allocation5 + $0x18] sm:$0xff] %vm3404_vm4, %v3500_v45  ;;  %v7126_v45 = vld [vmem:[%s9009_s8 + $0x208] sm:$0xff]  }
 0x9d2   : > { %v3517_v30 = vld [vmem:[#allocation5] sm:$0xff] }
 0x9d4   : > { %v3518_v59 = vld [vmem:[#allocation5 + $0x8] sm:$0xff] }
 0x9d5   : > { %3779 = vmatprep.mubr.bf16.mxu0 %v3518_v59  ;;  %v7132_v59 = vld [vmem:[%s9009_s8 + $0x198] sm:$0xff]  }
 0x9d6   : > { %3780 = vmatmul.mubr.bf16.vlgmr.msra.gmra.mrb[56].mxu0 %v3517_v30  ;;  %v3519_v5 = vld [vmem:[#allocation5 + $0x10] sm:$0xff]  ;;  %v7133_v30 = vld [vmem:[%s9009_s8 + $0x158] sm:$0xff]  }
 0x9d7   : > { %6840 = vmatpush3.bf16.msra.mxu0 %v7085_v48  ;;  %6847 = vmatprep.mubr.msk.bf16.mxu0 %vm7333_vm2, %v7322_v0  ;;  %v7129_v48 = vld [vmem:[%s9009_s8 + $0x1c8] sm:$0xff]  }
 0x9d8   : > { %v3520_v49 = vld [vmem:[#allocation5 + $0x18] sm:$0xff]  ;;  %6841 = vmatprep.subr.bf16.mxu0 %v7322_v0 }
 0x9d9   : > { %3820 = vmatprep.mubr.bf16.mxu1 %v3520_v49 }
 0x9da   : > { %3821 = vmatmul.mubr.bf16.vlgmr.msra.gmra.mrb[56].mxu1 %v3519_v5 }
 0x9db   : > { %6842 = vmatpush3.bf16.msra.mxu0 %v7087_v33  ;;  %6596 = vmatpush3.bf16.msra.mxu1 %v7099_v52  ;;  %v7134_v33 = vld [vmem:[%s9009_s8 + $0x210] sm:$0xff]  }
 0x9dc   : > { %6843 = vmatprep.subr.bf16.mxu0 %v7322_v0  ;;  %6597 = vmatprep.subr.bf16.mxu1 %v7100_v53 }
 0x9df   : > { %6844 = vmatpush3.bf16.msra.mxu0 %v7088_v18  ;;  %6598 = vmatpush3.bf16.msra.mxu1 %v7101_v56 }
 0x9e0   : > { %6845 = vmatprep.subr.bf16.mxu0 %v7322_v0  ;;  %6599 = vmatprep.subr.bf16.mxu1 %v7104_v58 }
 0x9e3   : > { %6846 = vmatpush3.bf16.msra.mxu0 %v7089_v51  ;;  %6600 = vmatpush3.bf16.msra.mxu1 %v7105_v62 }
 0x9e4   : > { %6617 = vmatprep.subr.bf16.mxu0 %v7102_v43  ;;  %6601 = vmatprep.subr.bf16.mxu1 %v7108_v6 }
 0x9e6   : > { %6848 = vmatmul.mubr.msk.bf16.vlgmr.msra.gmra.mrb[60].mxu0 %vm3138_vm1, %v3521_v42 }
 0x9e7   : > { %6618 = vmatpush3.bf16.msra.mxu0 %v7103_v47  ;;  %6602 = vmatpush3.bf16.msra.mxu1 %v7109_v10 }
 0x9e8   : > { %6619 = vmatprep.subr.bf16.mxu0 %v7106_v54  ;;  %6603 = vmatprep.subr.bf16.mxu1 %v7112_v61 }
 0x9eb   : > { %6620 = vmatpush3.bf16.msra.mxu0 %v7107_v60  ;;  %6604 = vmatpush3.bf16.msra.mxu1 %v7113_v4  ;;  %v7135_v4 = vld [vmem:[%s9009_s8 + $0x1d0] sm:$0xff]  }
 0x9ec   : > { %6621 = vmatprep.subr.bf16.mxu0 %v7110_v46  ;;  %6605 = vmatprep.subr.bf16.mxu1 %v7116_v9  ;;  %v7136_v9 = vld [vmem:[%s9009_s8 + $0x218] sm:$0xff]  }
 0x9ef   : > { %6622 = vmatpush3.bf16.msra.mxu0 %v7111_v7  ;;  %6606 = vmatpush3.bf16.msra.mxu1 %v7117_v23 }
 0x9f0   : > { %6623 = vmatprep.subr.bf16.mxu0 %v7114_v8  ;;  %6607 = vmatprep.subr.bf16.mxu1 %v7124_v41  ;;  %v7162_v41 = vld [vmem:[%s9009_s8 + $0x298] sm:$0xff]  }
 0x9f3   : > { %6624 = vmatpush3.bf16.msra.mxu0 %v7115_v1  ;;  %6608 = vmatpush3.bf16.msra.mxu1 %v7125_v3  ;;  %v7165_v3 = vld [vmem:[%s9009_s8 + $0x2d0] sm:$0xff]  }
 0x9f4   : > { %6625 = vmatprep.subr.bf16.mxu0 %v7118_v31  ;;  %6609 = vmatprep.subr.bf16.mxu1 %v7132_v59  ;;  %v7166_v59 = vld [vmem:[%s9009_s8 + $0x2a0] sm:$0xff]  }
 0x9f7   : > { %6626 = vmatpush3.bf16.msra.mxu0 %v7121_v38  ;;  %6610 = vmatpush3.bf16.msra.mxu1 %v7133_v30  ;;  %v7164_v38 = vld [vmem:[%s9009_s8 + $0x310] sm:$0xff]   ;;  %v7169_v30 = vld [vmem:[%s9009_s8 + $0x2d8] sm:$0xff]  }
 0x9f8   : > { %6627 = vmatprep.subr.bf16.mxu0 %v7126_v45  ;;  %6851 = vmatprep.subr.bf16.mxu1 %v7322_v0  ;;  %v7168_v45 = vld [vmem:[%s9009_s8 + $0x318] sm:$0xff]  }
 0x9fb   : > { %6628 = vmatpush3.bf16.msra.mxu0 %v7129_v48  ;;  %v7163_v48 = vld [vmem:[%s9009_s8 + $0x258] sm:$0xff]  }
 0x9fc   : > { %6629 = vmatprep.subr.bf16.mxu0 %v7134_v33  ;;  %v7172_v33 = vld [vmem:[%s9009_s8 + $0x320] sm:$0xff]  }
 0x9ff   : > { %6630 = vmatpush3.bf16.msra.mxu0 %v7135_v4 }
 0xa00   : > { %6631 = vmatprep.subr.bf16.mxu0 %v7136_v9 }
 0xaa9   : > { %v6562_v24 = vpop.f32.mrb[56].mxu0 }
 0xaaa   : > { %v6563_v11 = vpop.f32.mrb[57].mxu0 }
 0xaab   : > { %v6564_v13 = vadd.f32 %v6563_v11, %v6562_v24  ;;  %v6565_v14 = vpop.f32.mrb[58].mxu0  ;;  %v7138_v24 = vld [vmem:[%s9009_s8 + $0x1d8] sm:$0xff]  }
 0xaac   : > { %v6566_v19 = vpop.f32.mrb[59].mxu0  ;;  %6632 = vmatpush3.bf16.msra.mxu0 %v7138_v24 }
 0xaad   : > { %v6567_v2 = vadd.f32 %v6566_v19, %v6565_v14  ;;  %v6584_v16 = vpop.f32.mrb[56].mxu1  ;;  %v3782_v32 = vadd.f32 %v6564_v13, %v5959_v17 }
 0xaae   : > { %v6585_v50 = vpop.f32.mrb[57].mxu1 }
 0xaaf   : > { %v6586_v25 = vadd.f32 %v6585_v50, %v6584_v16  ;;  %v6587_v44 = vpop.f32.mrb[58].mxu1  ;;  %v3785_v57 = vadd.f32 %v6567_v2, %v5959_v17  ;;  %v7137_v50 = vld [vmem:[%s9009_s8 + $0x220] sm:$0xff]  }
 0xab0   : > { %v6588_v40 = vpop.f32.mrb[59].mxu1 }
 0xab1   : > { %v6589_v55 = vadd.f32 %v6588_v40, %v6587_v44  ;;  %v3823_v28 = vadd.f32 %v6586_v25, %v3782_v32  ;;  %v7139_v44 = vld [vmem:[%s9009_s8 + $0x228] sm:$0xff]  }
 0xab3   : > { %v3826_v15 = vadd.f32 %v6589_v55, %v3785_v57  ;;  %v7140_v55 = vld [vmem:[%s9009_s8 + $0x230] sm:$0xff]  }
 0xab9   : > { %v3863_v26 = vpop.f32.mrb[60].mxu0 }
 0xaba   : > { %v3864_v63 = vadd.f32 %v3863_v26, %v3823_v28  ;;  %v6849_v27 = vpop.f32.mrb[61].mxu0  ;;  %v7141_v28 = vld [vmem:[%s9009_s8 + $0x238] sm:$0xff]   ;;  %v7152_v26 = vld [vmem:[%s9009_s8 + $0x280] sm:$0xff]  }
 0xabb   : > { %v3866_v29 = vpop.f32.mrb[62].mxu0  ;;  %v7154_v27 = vld [vmem:[%s9009_s8 + $0x288] sm:$0xff]   ;;  %6644 = vmatprep.subr.bf16.mxu0 %v7152_v26 }
 0xabc   : > { %v3870_v34 = vmax.f32 %v3864_v63, 0.0  ;;  %v3867_v35 = vadd.f32 %v3866_v29, %v3826_v15  ;;  %v6850_v36 = vpop.f32.mrb[63].mxu0  ;;  %v7153_v63 = vld [vmem:[%s9009_s8 + $0x240] sm:$0xff]  }
 0xabd   : > { %v7156_v29 = vld [vmem:[%s9009_s8 + $0x300] sm:$0xff]   ;;  %v7155_v36 = vld [vmem:[%s9009_s8 + $0x248] sm:$0xff]  }
 0xabe   : > { %v3949_v37 = vcombine.high %v3870_v34, %v3870_v34  ;;  %3953 = vst.msk [vmem:[#allocation4 + $0x9] sm:$0xf] %vm3368_vm0, %v3870_v34  ;;  %v3871_v12 = vmax.f32 %v3867_v35, 0.0  ;;  %v7157_v34 = vld [vmem:[%s9009_s8 + $0x2c0] sm:$0xff]   ;;  %v7160_v35 = vld [vmem:[%s9009_s8 + $0x308] sm:$0xff]  }
 0xac0   : > { %3954 = vst.msk [vmem:[#allocation4 + $0x11] sm:$0xf] %vm3368_vm0, %v3949_v37  ;;  %v3950_v39 = vcombine.high %v3871_v12, %v3871_v12  ;;  %3955 = vst.msk [vmem:[#allocation4 + $0x19] sm:$0xf] %vm3368_vm0, %v3871_v12  ;;  %v7158_v37 = vld [vmem:[%s9009_s8 + $0x290] sm:$0xff]   ;;  %v7161_v12 = vld [vmem:[%s9009_s8 + $0x2c8] sm:$0xff]  }
 0xac2   : > { %3956 = vst.msk [vmem:[#allocation4 + $0x21] sm:$0xf] %vm3368_vm0, %v3950_v39  ;;  %v7159_v39 = vld [vmem:[%s9009_s8 + $0x250] sm:$0xff]  }
 0xac5   : > { %v7090_v49 = vld [vmem:[#allocation4 + $0x1] ss:$8 sps:$4 sm:$0xff]  }
 0xac6   : > { %v7119_v43 = vld [vmem:[#allocation4] ss:$8 sps:$4 sm:$0xff]  }
 0xac7   : > { %v7091_v5 = vld [vmem:[#allocation4 + $0x11] ss:$8 sps:$4 sm:$0xff]   ;;  %v7122_v60 = vld [vmem:[#allocation4 + $0x2] ss:$8 sps:$4 sm:$0xff]  }
 0xac8   : > { %v7092_v18 = vld [vmem:[#allocation4 + $0x8] ss:$8 sps:$4 sm:$0xff]   ;;  %v3983_v51 = vpack.c.bf16 %v7091_v5, %v7090_v49  ;;  %v7167_v49 = vld [vmem:[%s9009_s8 + $0x260] sm:$0xff]  }
 0xac9   : > { %v7093_v42 = vld [vmem:[#allocation4 + $0x18] ss:$8 sps:$4 sm:$0xff]   ;;  %v7094_v21 = vld [vmem:[#allocation4 + $0xa] ss:$8 sps:$4 sm:$0xff]  }
 0xaca   : > { %3985 = vrot.lane.b32.xlu1 %v3983_v51, %s9039_s25  ;;  %v4015_v52 = vpack.c.bf16 %v7093_v42, %v7092_v18  ;;  %v7095_v53 = vld [vmem:[#allocation4 + $0x1a] ss:$8 sps:$4 sm:$0xff]   ;;  %v7127_v8 = vld [vmem:[#allocation4 + $0x9] ss:$8 sps:$4 sm:$0xff]  }
 0xacb   : > { %v7096_v47 = vld [vmem:[#allocation4 + $0x11] ss:$8 sps:$4 sm:$0xff]   ;;  %v7097_v54 = vld [vmem:[#allocation4 + $0x21] ss:$8 sps:$4 sm:$0xff]   ;;  %v4047_v56 = vpack.c.bf16 %v7095_v53, %v7094_v21 }
 0xacc   : > { %4017 = vrot.lane.b32.xlu0 %v4015_v52, %s9039_s25  ;;  %v7120_v58 = vld [vmem:[#allocation4 + $0x10] ss:$8 sps:$4 sm:$0xff]   ;;  %v4079_v46 = vpack.c.bf16 %v7097_v54, %v7096_v47  ;;  %v7131_v31 = vld [vmem:[#allocation4 + $0x20] ss:$8 sps:$4 sm:$0xff]  }
 0xacd   : > { %v3969_v62 = vpack.c.bf16 %v7120_v58, %v7119_v43  ;;  %v7123_v6 = vld [vmem:[#allocation4 + $0x12] ss:$8 sps:$4 sm:$0xff]   ;;  %v7143_v13 = vld [vmem:[#allocation4 + $0x22] ss:$8 sps:$4 sm:$0xff]   ;;  %v6070_v53 = vld [vmem:[%s9010_s9 + $0x1] ss:$0 sm:$0xff] }
 0xace   : > { %4049 = vrot.lane.b32.xlu1 %v4047_v56, %s9039_s25  ;;  %v4001_v7 = vpack.c.bf16 %v7123_v6, %v7122_v60  ;;  %v7128_v10 = vld [vmem:[#allocation4 + $0x19] ss:$8 sps:$4 sm:$0xff]   ;;  %v7170_v5 = vld [vmem:[%s9009_s8 + $0x2a8] sm:$0xff]  }
 0xacf   : > { %3970 = vst.msk [vmem:[#allocation5] sm:$0xff] %vm3138_vm1, %v3969_v62  ;;  %v7130_v61 = vld [vmem:[#allocation4 + $0x10] ss:$8 sps:$4 sm:$0xff]   ;;  %v4033_v1 = vpack.c.bf16 %v7128_v10, %v7127_v8  ;;  %v7171_v18 = vld [vmem:[%s9009_s8 + $0x268] sm:$0xff]  }
 0xad0   : > { %4081 = vrot.lane.b32.xlu0 %v4079_v46, %s9039_s25  ;;  %4002 = vst.msk [vmem:[#allocation5 + $0x8] sm:$0xff] %vm3138_vm1, %v4001_v7  ;;  %v4065_v23 = vpack.c.bf16 %v7131_v31, %v7130_v61  ;;  %v7142_v11 = vld [vmem:[#allocation4 + $0x12] ss:$8 sps:$4 sm:$0xff]  }
 0xad1   : > { %4034 = vst.msk [vmem:[#allocation5 + $0x10] sm:$0xff] %vm3138_vm1, %v4033_v1  ;;  %v4097_v14 = vpack.c.bf16 %v7143_v13, %v7142_v11 }
 0xad2   : > { %4066 = vst.msk [vmem:[#allocation5 + $0x18] sm:$0xff] %vm3138_vm1, %v4065_v23 }
 0xad3   : > { %4098 = vst.msk [vmem:[#allocation5 + $0x20] sm:$0xff] %vm3138_vm1, %v4097_v14  ;;  %v7175_v14 = vld [vmem:[%s9009_s8 + $0x2e0] sm:$0xff]  }
 0xada   : > { %v4103_v15 = vld [vmem:[#allocation5 + $0x20] sm:$0xff] }
 0xb3c   : > { %v3986_v17 = vpop.permute.xlu1 %3985 }
 0xb3d   : > { %3988 = vst.msk [vmem:[#allocation5] sm:$0xff] %vm3404_vm4, %v3986_v17  ;;  %v7178_v17 = vld [vmem:[%s9009_s8 + $0x2b0] sm:$0xff]  }
 0xb3e   : > { %v4018_v19 = vpop.permute.xlu0 %4017 }
 0xb3f   : > { %4020 = vst.msk [vmem:[#allocation5 + $0x8] sm:$0xff] %vm3404_vm4, %v4018_v19  ;;  %v7180_v19 = vld [vmem:[%s9009_s8 + $0x328] sm:$0xff]  }
 0xb40   : > { %v4050_v2 = vpop.permute.xlu1 %4049 }
 0xb41   : > { %4052 = vst.msk [vmem:[#allocation5 + $0x10] sm:$0xff] %vm3404_vm4, %v4050_v2  ;;  %v7183_v2 = vld [vmem:[%s9009_s8 + $0x2e8] sm:$0xff]  }
 0xb42   : > { %v4082_v16 = vpop.permute.xlu0 %4081 }
 0xb43   : > { %4084 = vst.msk [vmem:[#allocation5 + $0x18] sm:$0xff] %vm3404_vm4, %v4082_v16  ;;  %v7186_v16 = vld [vmem:[%s9009_s8 + $0x2b8] sm:$0xff]  }
 0xb44   : > { %v4099_v25 = vld [vmem:[#allocation5] sm:$0xff] }
 0xb46   : > { %v4100_v32 = vld [vmem:[#allocation5 + $0x8] sm:$0xff] }
 0xb47   : > { %4361 = vmatprep.mubr.bf16.mxu1 %v4100_v32  ;;  %v7188_v32 = vld [vmem:[%s9009_s8 + $0x330] sm:$0xff]  }
 0xb48   : > { %4362 = vmatmul.mubr.bf16.vlgmr.msra.gmra.mrb[60].mxu1 %v4099_v25  ;;  %v4101_v57 = vld [vmem:[#allocation5 + $0x10] sm:$0xff] }
 0xb49   : > { %6852 = vmatpush3.bf16.msra.mxu1 %v7137_v50  ;;  %6859 = vmatprep.mubr.msk.bf16.mxu1 %vm7333_vm2, %v7322_v0  ;;  %v7187_v50 = vld [vmem:[%s9009_s8 + $0x278] sm:$0xff]  }
 0xb4a   : > { %v4102_v40 = vld [vmem:[#allocation5 + $0x18] sm:$0xff]  ;;  %6853 = vmatprep.subr.bf16.mxu1 %v7322_v0 }
 0xb4b   : > { %4402 = vmatprep.mubr.bf16.mxu0 %v4102_v40 }
 0xb4c   : > { %4403 = vmatmul.mubr.bf16.vlgmr.msra.gmra.mrb[64].mxu0 %v4101_v57 }
 0xb4d   : > { %6854 = vmatpush3.bf16.msra.mxu1 %v7139_v44  ;;  %6645 = vmatpush3.bf16.msra.mxu0 %v7153_v63 }
 0xb4e   : > { %6855 = vmatprep.subr.bf16.mxu1 %v7322_v0  ;;  %6646 = vmatprep.subr.bf16.mxu0 %v7154_v27 }
 0xb51   : > { %6856 = vmatpush3.bf16.msra.mxu1 %v7140_v55  ;;  %6647 = vmatpush3.bf16.msra.mxu0 %v7155_v36 }
 0xb52   : > { %6857 = vmatprep.subr.bf16.mxu1 %v7322_v0  ;;  %6648 = vmatprep.subr.bf16.mxu0 %v7158_v37 }
 0xb55   : > { %6858 = vmatpush3.bf16.msra.mxu1 %v7141_v28  ;;  %6649 = vmatpush3.bf16.msra.mxu0 %v7159_v39 }
 0xb56   : > { %6666 = vmatprep.subr.bf16.mxu1 %v7156_v29  ;;  %6650 = vmatprep.subr.bf16.mxu0 %v7162_v41 }
 0xb58   : > { %6860 = vmatmul.mubr.msk.bf16.vlgmr.msra.gmra.mrb[64].mxu1 %vm3138_vm1, %v4103_v15 }
 0xb59   : > { %6667 = vmatpush3.bf16.msra.mxu1 %v7157_v34  ;;  %6651 = vmatpush3.bf16.msra.mxu0 %v7163_v48 }
 0xb5a   : > { %6668 = vmatprep.subr.bf16.mxu1 %v7160_v35  ;;  %6652 = vmatprep.subr.bf16.mxu0 %v7166_v59 }
 0xb5d   : > { %6669 = vmatpush3.bf16.msra.mxu1 %v7161_v12  ;;  %6653 = vmatpush3.bf16.msra.mxu0 %v7167_v49 }
 0xb5e   : > { %6670 = vmatprep.subr.bf16.mxu1 %v7164_v38  ;;  %6654 = vmatprep.subr.bf16.mxu0 %v7170_v5  ;;  %v7192_v5 = vld [vmem:[%s9009_s8 + $0x2f8] sm:$0xff]  }
 0xb61   : > { %6671 = vmatpush3.bf16.msra.mxu1 %v7165_v3  ;;  %6655 = vmatpush3.bf16.msra.mxu0 %v7171_v18 }
 0xb62   : > { %6672 = vmatprep.subr.bf16.mxu1 %v7168_v45  ;;  %6656 = vmatprep.subr.bf16.mxu0 %v7178_v17  ;;  %v7216_v17 = vld [vmem:[%s9009_s8 + $0x3b8] sm:$0xff]  }
 0xb65   : > { %6673 = vmatpush3.bf16.msra.mxu1 %v7169_v30  ;;  %v7189_v30 = vld [vmem:[%s9009_s8 + $0x2f0] sm:$0xff]  }
 0xb66   : > { %6674 = vmatprep.subr.bf16.mxu1 %v7172_v33  ;;  %v7190_v33 = vld [vmem:[%s9009_s8 + $0x338] sm:$0xff]  }
 0xb69   : > { %6675 = vmatpush3.bf16.msra.mxu1 %v7175_v14  ;;  %v7218_v14 = vld [vmem:[%s9009_s8 + $0x430] sm:$0xff]  }
 0xb6a   : > { %6676 = vmatprep.subr.bf16.mxu1 %v7180_v19  ;;  %v7222_v19 = vld [vmem:[%s9009_s8 + $0x438] sm:$0xff]  }
 0xb6d   : > { %6677 = vmatpush3.bf16.msra.mxu1 %v7183_v2  ;;  %v7217_v2 = vld [vmem:[%s9009_s8 + $0x378] sm:$0xff]  }
 0xb6e   : > { %6678 = vmatprep.subr.bf16.mxu1 %v7188_v32  ;;  %v7226_v32 = vld [vmem:[%s9009_s8 + $0x440] sm:$0xff]  }
 0xb71   : > { %6679 = vmatpush3.bf16.msra.mxu1 %v7189_v30 }
 0xb72   : > { %6680 = vmatprep.subr.bf16.mxu1 %v7190_v33 }
 0xb75   : > { %6681 = vmatpush3.bf16.msra.mxu1 %v7192_v5 }
 0xc1b   : > { %v6611_v51 = vpop.f32.mrb[60].mxu1 }
 0xc1c   : > { %v6612_v42 = vpop.f32.mrb[61].mxu1 }
 0xc1d   : > { %v6613_v21 = vadd.f32 %v6612_v42, %v6611_v51  ;;  %v6614_v52 = vpop.f32.mrb[62].mxu1 }
 0xc1e   : > { %v6615_v43 = vpop.f32.mrb[63].mxu1 }
 0xc1f   : > { %v6616_v47 = vadd.f32 %v6615_v43, %v6614_v52  ;;  %v6633_v54 = vpop.f32.mrb[64].mxu0  ;;  %v4364_v58 = vadd.f32 %v6613_v21, %v6070_v53 }
 0xc20   : > { %v6634_v56 = vpop.f32.mrb[65].mxu0 }
 0xc21   : > { %v6635_v60 = vadd.f32 %v6634_v56, %v6633_v54  ;;  %v6636_v46 = vpop.f32.mrb[66].mxu0  ;;  %v4367_v6 = vadd.f32 %v6616_v47, %v6070_v53  ;;  %v7191_v47 = vld [vmem:[%s9009_s8 + $0x340] sm:$0xff]  }
 0xc22   : > { %v6637_v62 = vpop.f32.mrb[67].mxu0 }
 0xc23   : > { %v6638_v7 = vadd.f32 %v6637_v62, %v6636_v46  ;;  %v4405_v8 = vadd.f32 %v6635_v60, %v4364_v58  ;;  %v7193_v58 = vld [vmem:[%s9009_s8 + $0x348] sm:$0xff]   ;;  %v7194_v62 = vld [vmem:[%s9009_s8 + $0x350] sm:$0xff]  }
 0xc25   : > { %v4408_v10 = vadd.f32 %v6638_v7, %v4367_v6  ;;  %v7195_v6 = vld [vmem:[%s9009_s8 + $0x358] sm:$0xff]  }
 0xc2b   : > { %v4445_v61 = vpop.f32.mrb[64].mxu1 }
 0xc2c   : > { %v4446_v1 = vadd.f32 %v4445_v61, %v4405_v8  ;;  %v6861_v31 = vpop.f32.mrb[65].mxu1  ;;  %v7206_v8 = vld [vmem:[%s9009_s8 + $0x3a0] sm:$0xff]   ;;  %v7208_v61 = vld [vmem:[%s9009_s8 + $0x3a8] sm:$0xff]  }
 0xc2d   : > { %v4448_v4 = vpop.f32.mrb[66].mxu1  ;;  %v7211_v31 = vld [vmem:[%s9009_s8 + $0x3e0] sm:$0xff]   ;;  %6693 = vmatprep.subr.bf16.mxu1 %v7206_v8 }
 0xc2e   : > { %v8729_v9 = vadd.f32 %v4446_v1, %v8448_v20  ;;  %v4449_v23 = vadd.f32 %v4448_v4, %v4408_v10  ;;  %v6862_v24 = vpop.f32.mrb[67].mxu1  ;;  %v7207_v10 = vld [vmem:[%s9009_s8 + $0x360] sm:$0xff]   ;;  %v7214_v4 = vld [vmem:[%s9009_s8 + $0x428] sm:$0xff]  }
 0xc2f   : > { %v7210_v1 = vld [vmem:[%s9009_s8 + $0x420] sm:$0xff]   ;;  %v7212_v24 = vld [vmem:[%s9009_s8 + $0x3b0] sm:$0xff]  }
 0xc30   : > { %v4531_v11 = vcombine.high %v8729_v9, %v8729_v9  ;;  %4535 = vst.msk [vmem:[#allocation4 + $0x9] sm:$0xf] %vm3368_vm0, %v8729_v9  ;;  %v8736_v13 = vadd.f32 %v4449_v23, %v8454_v22  ;;  %v7179_v22 = vld [vmem:[%s9009_s8 + $0x270] sm:$0xff]   ;;  %v7209_v23 = vld [vmem:[%s9009_s8 + $0x368] sm:$0xff]  }
 0xc31   : > { %6657 = vmatpush3.bf16.msra.mxu0 %v7179_v22  ;;  %v7219_v22 = vld [vmem:[%s9009_s8 + $0x3f0] sm:$0xff]  }
 0xc32   : > { %4536 = vst.msk [vmem:[#allocation4 + $0x11] sm:$0xf] %vm3368_vm0, %v4531_v11  ;;  %v4532_v20 = vcombine.high %v8736_v13, %v8736_v13  ;;  %4537 = vst.msk [vmem:[#allocation4 + $0x19] sm:$0xf] %vm3368_vm0, %v8736_v13  ;;  %6658 = vmatprep.subr.bf16.mxu0 %v7186_v16  ;;  %v7215_v11 = vld [vmem:[%s9009_s8 + $0x3e8] sm:$0xff]   ;;  %v7220_v16 = vld [vmem:[%s9009_s8 + $0x3c0] sm:$0xff]  }
 0xc34   : > { %4538 = vst.msk [vmem:[#allocation4 + $0x21] sm:$0xf] %vm3368_vm0, %v4532_v20  ;;  %v7213_v20 = vld [vmem:[%s9009_s8 + $0x370] sm:$0xff]  }
 0xc35   : > { %6659 = vmatpush3.bf16.msra.mxu0 %v7187_v50  ;;  %v7223_v50 = vld [vmem:[%s9009_s8 + $0x3f8] sm:$0xff]  }
 0xc36   : > { %6863 = vmatprep.subr.bf16.mxu0 %v7322_v0 }
 0xc37   : > { %v7144_v25 = vld [vmem:[#allocation4 + $0x1] ss:$8 sps:$4 sm:$0xff]  }
 0xc38   : > { %v7173_v63 = vld [vmem:[#allocation4] ss:$8 sps:$4 sm:$0xff]  }
 0xc39   : > { %v7145_v44 = vld [vmem:[#allocation4 + $0x11] ss:$8 sps:$4 sm:$0xff]   ;;  %v7176_v36 = vld [vmem:[#allocation4 + $0x2] ss:$8 sps:$4 sm:$0xff]  }
 0xc3a   : > { %v7146_v40 = vld [vmem:[#allocation4 + $0x8] ss:$8 sps:$4 sm:$0xff]   ;;  %v4565_v57 = vpack.c.bf16 %v7145_v44, %v7144_v25  ;;  %v7221_v25 = vld [vmem:[%s9009_s8 + $0x380] sm:$0xff]  }
 0xc3b   : > { %v7147_v55 = vld [vmem:[#allocation4 + $0x18] ss:$8 sps:$4 sm:$0xff]   ;;  %v7148_v28 = vld [vmem:[#allocation4 + $0xa] ss:$8 sps:$4 sm:$0xff]  }
 0xc3c   : > { %4567 = vrot.lane.b32.xlu1 %v4565_v57, %s9039_s25  ;;  %v4597_v15 = vpack.c.bf16 %v7147_v55, %v7146_v40  ;;  %v7149_v26 = vld [vmem:[#allocation4 + $0x1a] ss:$8 sps:$4 sm:$0xff]   ;;  %v7181_v41 = vld [vmem:[#allocation4 + $0x9] ss:$8 sps:$4 sm:$0xff]  }
 0xc3d   : > { %v7150_v27 = vld [vmem:[#allocation4 + $0x11] ss:$8 sps:$4 sm:$0xff]   ;;  %v7151_v29 = vld [vmem:[#allocation4 + $0x21] ss:$8 sps:$4 sm:$0xff]   ;;  %v4629_v34 = vpack.c.bf16 %v7149_v26, %v7148_v28 }
 0xc3e   : > { %4599 = vrot.lane.b32.xlu0 %v4597_v15, %s9039_s25  ;;  %v7174_v35 = vld [vmem:[#allocation4 + $0x10] ss:$8 sps:$4 sm:$0xff]   ;;  %v4661_v37 = vpack.c.bf16 %v7151_v29, %v7150_v27  ;;  %v7185_v59 = vld [vmem:[#allocation4 + $0x20] ss:$8 sps:$4 sm:$0xff]  }
 0xc3f   : > { %v4551_v12 = vpack.c.bf16 %v7174_v35, %v7173_v63  ;;  %v7177_v38 = vld [vmem:[#allocation4 + $0x12] ss:$8 sps:$4 sm:$0xff]   ;;  %v7197_v51 = vld [vmem:[#allocation4 + $0x22] ss:$8 sps:$4 sm:$0xff]  }
 0xc40   : > { %4631 = vrot.lane.b32.xlu1 %v4629_v34, %s9039_s25  ;;  %v4583_v39 = vpack.c.bf16 %v7177_v38, %v7176_v36  ;;  %v7182_v3 = vld [vmem:[#allocation4 + $0x19] ss:$8 sps:$4 sm:$0xff]   ;;  %v7224_v44 = vld [vmem:[%s9009_s8 + $0x3c8] sm:$0xff]  }
 0xc41   : > { %4552 = vst.msk [vmem:[#allocation5] sm:$0xff] %vm3138_vm1, %v4551_v12  ;;  %v7184_v45 = vld [vmem:[#allocation4 + $0x10] ss:$8 sps:$4 sm:$0xff]   ;;  %v4615_v48 = vpack.c.bf16 %v7182_v3, %v7181_v41  ;;  %v7225_v40 = vld [vmem:[%s9009_s8 + $0x388] sm:$0xff]   ;;  %v6181_v26 = vld [vmem:[%s9010_s9 + $0x2] ss:$0 sm:$0xff] }
 0xc42   : > { %4663 = vrot.lane.b32.xlu0 %v4661_v37, %s9039_s25  ;;  %4584 = vst.msk [vmem:[#allocation5 + $0x8] sm:$0xff] %vm3138_vm1, %v4583_v39  ;;  %v4647_v49 = vpack.c.bf16 %v7185_v59, %v7184_v45  ;;  %v7196_v18 = vld [vmem:[#allocation4 + $0x12] ss:$8 sps:$4 sm:$0xff]  }
 0xc43   : > { %4616 = vst.msk [vmem:[#allocation5 + $0x10] sm:$0xff] %vm3138_vm1, %v4615_v48  ;;  %v4679_v42 = vpack.c.bf16 %v7197_v51, %v7196_v18 }
 0xc44   : > { %4648 = vst.msk [vmem:[#allocation5 + $0x18] sm:$0xff] %vm3138_vm1, %v4647_v49 }
 0xc45   : > { %4680 = vst.msk [vmem:[#allocation5 + $0x20] sm:$0xff] %vm3138_vm1, %v4679_v42  ;;  %v7229_v42 = vld [vmem:[%s9009_s8 + $0x400] sm:$0xff]  }
 0xc4c   : > { %v4685_v7 = vld [vmem:[#allocation5 + $0x20] sm:$0xff] }
 0xcae   : > { %v4568_v21 = vpop.permute.xlu1 %4567 }
 0xcaf   : > { %4570 = vst.msk [vmem:[#allocation5] sm:$0xff] %vm3404_vm4, %v4568_v21 }
 0xcb0   : > { %v4600_v52 = vpop.permute.xlu0 %4599 }
 0xcb1   : > { %4602 = vst.msk [vmem:[#allocation5 + $0x8] sm:$0xff] %vm3404_vm4, %v4600_v52  ;;  %v7232_v52 = vld [vmem:[%s9009_s8 + $0x3d0] sm:$0xff]  }
 0xcb2   : > { %v4632_v53 = vpop.permute.xlu1 %4631 }
 0xcb3   : > { %4634 = vst.msk [vmem:[#allocation5 + $0x10] sm:$0xff] %vm3404_vm4, %v4632_v53  ;;  %v7233_v53 = vld [vmem:[%s9009_s8 + $0x390] sm:$0xff]  }
 0xcb4   : > { %v4664_v43 = vpop.permute.xlu0 %4663 }
 0xcb5   : > { %4666 = vst.msk [vmem:[#allocation5 + $0x18] sm:$0xff] %vm3404_vm4, %v4664_v43  ;;  %v7234_v43 = vld [vmem:[%s9009_s8 + $0x448] sm:$0xff]  }
 0xcb6   : > { %v4681_v56 = vld [vmem:[#allocation5] sm:$0xff] }
 0xcb8   : > { %v4682_v54 = vld [vmem:[#allocation5 + $0x8] sm:$0xff] }
 0xcb9   : > { %4943 = vmatprep.mubr.bf16.mxu0 %v4682_v54  ;;  %v7240_v54 = vld [vmem:[%s9009_s8 + $0x3d8] sm:$0xff]  }
 0xcba   : > { %4944 = vmatmul.mubr.bf16.vlgmr.msra.gmra.mrb[68].mxu0 %v4681_v56  ;;  %v4683_v46 = vld [vmem:[#allocation5 + $0x10] sm:$0xff]  ;;  %v7241_v56 = vld [vmem:[%s9009_s8 + $0x398] sm:$0xff]  }
 0xcbb   : > { %6864 = vmatpush3.bf16.msra.mxu0 %v7191_v47  ;;  %6871 = vmatprep.mubr.msk.bf16.mxu0 %vm7333_vm2, %v7322_v0  ;;  %v7237_v47 = vld [vmem:[%s9009_s8 + $0x408] sm:$0xff]  }
 0xcbc   : > { %v4684_v60 = vld [vmem:[#allocation5 + $0x18] sm:$0xff]  ;;  %6865 = vmatprep.subr.bf16.mxu0 %v7322_v0 }
 0xcbd   : > { %4984 = vmatprep.mubr.bf16.mxu1 %v4684_v60 }
 0xcbe   : > { %4985 = vmatmul.mubr.bf16.vlgmr.msra.gmra.mrb[68].mxu1 %v4683_v46 }
 0xcbf   : > { %6866 = vmatpush3.bf16.msra.mxu0 %v7193_v58  ;;  %6694 = vmatpush3.bf16.msra.mxu1 %v7207_v10  ;;  %v7242_v58 = vld [vmem:[%s9009_s8 + $0x450] sm:$0xff]  }
 0xcc0   : > { %6867 = vmatprep.subr.bf16.mxu0 %v7322_v0  ;;  %6695 = vmatprep.subr.bf16.mxu1 %v7208_v61 }
 0xcc3   : > { %6868 = vmatpush3.bf16.msra.mxu0 %v7194_v62  ;;  %6696 = vmatpush3.bf16.msra.mxu1 %v7209_v23 }
 0xcc4   : > { %6869 = vmatprep.subr.bf16.mxu0 %v7322_v0  ;;  %6697 = vmatprep.subr.bf16.mxu1 %v7212_v24 }
 0xcc7   : > { %6870 = vmatpush3.bf16.msra.mxu0 %v7195_v6  ;;  %6698 = vmatpush3.bf16.msra.mxu1 %v7213_v20 }
 0xcc8   : > { %6715 = vmatprep.subr.bf16.mxu0 %v7210_v1  ;;  %6699 = vmatprep.subr.bf16.mxu1 %v7216_v17 }
 0xcca   : > { %6872 = vmatmul.mubr.msk.bf16.vlgmr.msra.gmra.mrb[72].mxu0 %vm3138_vm1, %v4685_v7 }
 0xccb   : > { %6716 = vmatpush3.bf16.msra.mxu0 %v7211_v31  ;;  %6700 = vmatpush3.bf16.msra.mxu1 %v7217_v2 }
 0xccc   : > { %6717 = vmatprep.subr.bf16.mxu0 %v7214_v4  ;;  %6701 = vmatprep.subr.bf16.mxu1 %v7220_v16 }
 0xccf   : > { %6718 = vmatpush3.bf16.msra.mxu0 %v7215_v11  ;;  %6702 = vmatpush3.bf16.msra.mxu1 %v7221_v25  ;;  %v7243_v25 = vld [vmem:[%s9009_s8 + $0x410] sm:$0xff]  }
 0xcd0   : > { %6719 = vmatprep.subr.bf16.mxu0 %v7218_v14  ;;  %6703 = vmatprep.subr.bf16.mxu1 %v7224_v44  ;;  %v7244_v44 = vld [vmem:[%s9009_s8 + $0x458] sm:$0xff]  }
 0xcd3   : > { %6720 = vmatpush3.bf16.msra.mxu0 %v7219_v22  ;;  %6704 = vmatpush3.bf16.msra.mxu1 %v7225_v40 }
 0xcd4   : > { %6721 = vmatprep.subr.bf16.mxu0 %v7222_v19  ;;  %6705 = vmatprep.subr.bf16.mxu1 %v7232_v52 }
 0xcd7   : > { %6722 = vmatpush3.bf16.msra.mxu0 %v7223_v50  ;;  %6706 = vmatpush3.bf16.msra.mxu1 %v7233_v53 }
 0xcd8   : > { %6723 = vmatprep.subr.bf16.mxu0 %v7226_v32  ;;  %6707 = vmatprep.subr.bf16.mxu1 %v7240_v54 }
 0xcdb   : > { %6724 = vmatpush3.bf16.msra.mxu0 %v7229_v42  ;;  %6708 = vmatpush3.bf16.msra.mxu1 %v7241_v56 }
 0xcdc   : > { %6725 = vmatprep.subr.bf16.mxu0 %v7234_v43  ;;  %6875 = vmatprep.subr.bf16.mxu1 %v7322_v0 }
 0xcdf   : > { %6726 = vmatpush3.bf16.msra.mxu0 %v7237_v47 }
 0xce0   : > { %6727 = vmatprep.subr.bf16.mxu0 %v7242_v58 }
 0xce3   : > { %6728 = vmatpush3.bf16.msra.mxu0 %v7243_v25 }
 0xce4   : > { %6729 = vmatprep.subr.bf16.mxu0 %v7244_v44 }
 0xd8d   : > { %v6660_v57 = vpop.f32.mrb[68].mxu0 }
 0xd8e   : > { %v6661_v55 = vpop.f32.mrb[69].mxu0 }
 0xd8f   : > { %v6662_v28 = vadd.f32 %v6661_v55, %v6660_v57  ;;  %v6663_v15 = vpop.f32.mrb[70].mxu0  ;;  %v7246_v57 = vld [vmem:[%s9009_s8 + $0x418] sm:$0xff]  }
 0xd90   : > { %v6664_v63 = vpop.f32.mrb[71].mxu0  ;;  %6730 = vmatpush3.bf16.msra.mxu0 %v7246_v57 }
 0xd91   : > { %v6665_v27 = vadd.f32 %v6664_v63, %v6663_v15  ;;  %v6682_v29 = vpop.f32.mrb[68].mxu1  ;;  %v4946_v35 = vadd.f32 %v6662_v28, %v6181_v26 }
 0xd92   : > { %v6683_v34 = vpop.f32.mrb[69].mxu1 }
 0xd93   : > { %v6684_v36 = vadd.f32 %v6683_v34, %v6682_v29  ;;  %v6685_v37 = vpop.f32.mrb[70].mxu1  ;;  %v4949_v38 = vadd.f32 %v6665_v27, %v6181_v26  ;;  %v7245_v34 = vld [vmem:[%s9009_s8 + $0x460] sm:$0xff]  }
 0xd94   : > { %v6686_v12 = vpop.f32.mrb[71].mxu1 }
 0xd95   : > { %v6687_v39 = vadd.f32 %v6686_v12, %v6685_v37  ;;  %v4987_v41 = vadd.f32 %v6684_v36, %v4946_v35  ;;  %v7247_v37 = vld [vmem:[%s9009_s8 + $0x468] sm:$0xff]  }
 0xd97   : > { %v4990_v3 = vadd.f32 %v6687_v39, %v4949_v38  ;;  %v7248_v39 = vld [vmem:[%s9009_s8 + $0x470] sm:$0xff]  }
 0xd9d   : > { %v5027_v45 = vpop.f32.mrb[72].mxu0 }
 0xd9e   : > { %v5028_v48 = vadd.f32 %v5027_v45, %v4987_v41  ;;  %v6873_v59 = vpop.f32.mrb[73].mxu0  ;;  %v7249_v41 = vld [vmem:[%s9009_s8 + $0x478] sm:$0xff]  }
 0xd9f   : > { %v5030_v30 = vpop.f32.mrb[74].mxu0 }
 0xda0   : > { %v5034_v33 = vmax.f32 %v5028_v48, 0.0  ;;  %v5031_v49 = vadd.f32 %v5030_v30, %v4990_v3  ;;  %v6874_v5 = vpop.f32.mrb[75].mxu0 }
 0xda2   : > { %v5113_v18 = vcombine.high %v5034_v33, %v5034_v33  ;;  %5117 = vst.msk [vmem:[#allocation4 + $0x9] sm:$0xf] %vm3368_vm0, %v5034_v33  ;;  %v5035_v51 = vmax.f32 %v5031_v49, 0.0  ;;  %v6292_v33 = vld [vmem:[%s9010_s9 + $0x3] ss:$0 sm:$0xff] }
 0xda4   : > { %5118 = vst.msk [vmem:[#allocation4 + $0x11] sm:$0xf] %vm3368_vm0, %v5113_v18  ;;  %v5114_v21 = vcombine.high %v5035_v51, %v5035_v51  ;;  %5119 = vst.msk [vmem:[#allocation4 + $0x19] sm:$0xf] %vm3368_vm0, %v5035_v51 }
 0xda6   : > { %5120 = vst.msk [vmem:[#allocation4 + $0x21] sm:$0xf] %vm3368_vm0, %v5114_v21 }
 0xda9   : > { %v7198_v60 = vld [vmem:[#allocation4 + $0x1] ss:$8 sps:$4 sm:$0xff]  }
 0xdaa   : > { %v7227_v1 = vld [vmem:[#allocation4] ss:$8 sps:$4 sm:$0xff]  }
 0xdab   : > { %v7199_v46 = vld [vmem:[#allocation4 + $0x11] ss:$8 sps:$4 sm:$0xff]   ;;  %v7230_v11 = vld [vmem:[#allocation4 + $0x2] ss:$8 sps:$4 sm:$0xff]  }
 0xdac   : > { %v7200_v62 = vld [vmem:[#allocation4 + $0x8] ss:$8 sps:$4 sm:$0xff]   ;;  %v5147_v6 = vpack.c.bf16 %v7199_v46, %v7198_v60 }
 0xdad   : > { %v7201_v7 = vld [vmem:[#allocation4 + $0x18] ss:$8 sps:$4 sm:$0xff]   ;;  %v7202_v8 = vld [vmem:[#allocation4 + $0xa] ss:$8 sps:$4 sm:$0xff]  }
 0xdae   : > { %5149 = vrot.lane.b32.xlu1 %v5147_v6, %s9039_s25  ;;  %v5179_v10 = vpack.c.bf16 %v7201_v7, %v7200_v62  ;;  %v7203_v61 = vld [vmem:[#allocation4 + $0x1a] ss:$8 sps:$4 sm:$0xff]   ;;  %v7235_v19 = vld [vmem:[#allocation4 + $0x9] ss:$8 sps:$4 sm:$0xff]  }
 0xdaf   : > { %v7204_v31 = vld [vmem:[#allocation4 + $0x11] ss:$8 sps:$4 sm:$0xff]   ;;  %v7205_v4 = vld [vmem:[#allocation4 + $0x21] ss:$8 sps:$4 sm:$0xff]   ;;  %v5211_v23 = vpack.c.bf16 %v7203_v61, %v7202_v8 }
 0xdb0   : > { %5181 = vrot.lane.b32.xlu0 %v5179_v10, %s9039_s25  ;;  %v7228_v24 = vld [vmem:[#allocation4 + $0x10] ss:$8 sps:$4 sm:$0xff]   ;;  %v5243_v14 = vpack.c.bf16 %v7205_v4, %v7204_v31  ;;  %v7239_v32 = vld [vmem:[#allocation4 + $0x20] ss:$8 sps:$4 sm:$0xff]  }
 0xdb1   : > { %v5133_v20 = vpack.c.bf16 %v7228_v24, %v7227_v1  ;;  %v7231_v17 = vld [vmem:[#allocation4 + $0x12] ss:$8 sps:$4 sm:$0xff]   ;;  %v7251_v28 = vld [vmem:[#allocation4 + $0x22] ss:$8 sps:$4 sm:$0xff]  }
 0xdb2   : > { %5213 = vrot.lane.b32.xlu1 %v5211_v23, %s9039_s25  ;;  %v5165_v22 = vpack.c.bf16 %v7231_v17, %v7230_v11  ;;  %v7236_v2 = vld [vmem:[#allocation4 + $0x19] ss:$8 sps:$4 sm:$0xff]  }
 0xdb3   : > { %5134 = vst.msk [vmem:[#allocation5] sm:$0xff] %vm3138_vm1, %v5133_v20  ;;  %v7238_v16 = vld [vmem:[#allocation4 + $0x10] ss:$8 sps:$4 sm:$0xff]   ;;  %v5197_v50 = vpack.c.bf16 %v7236_v2, %v7235_v19 }
 0xdb4   : > { %5245 = vrot.lane.b32.xlu0 %v5243_v14, %s9039_s25  ;;  %5166 = vst.msk [vmem:[#allocation5 + $0x8] sm:$0xff] %vm3138_vm1, %v5165_v22  ;;  %v5229_v40 = vpack.c.bf16 %v7239_v32, %v7238_v16  ;;  %v7250_v55 = vld [vmem:[#allocation4 + $0x12] ss:$8 sps:$4 sm:$0xff]   ;;  %s387_s25 = scalar_lea.vmem [#allocation6], %s5733_s24 }
 0xdb5   : > { %5198 = vst.msk [vmem:[#allocation5 + $0x10] sm:$0xff] %vm3138_vm1, %v5197_v50  ;;  %v5261_v15 = vpack.c.bf16 %v7251_v28, %v7250_v55  ;;  %s5642_s0 = sshll.u32 %s387_s25, 4  ;;  %s8955_s0 = int_to_ptr.vmem [resolvable:$true] %s5642_s0 }
 0xdb6   : > { %5230 = vst.msk [vmem:[#allocation5 + $0x18] sm:$0xff] %vm3138_vm1, %v5229_v40  ;;  %s7258_s16 = scalar_lea.vmem %s8955_s0, 256  ;;  %p7265_p0 = scmp.lt.s32.totalorder %s8955_s0, %s7263_s29 }
 0xdb7   : > { %5262 = vst.msk [vmem:[#allocation5 + $0x20] sm:$0xff] %vm3138_vm1, %v5261_v15  ;;  %p7259_p11 = scmp.ne.s32.totalorder %s8955_s0, %s7258_s16  ;;  %p7266_p1 = scmp.lt.s32.totalorder %s7264_s2, %s7258_s16 }
 0xdb9   : > { %p7260_p12 = pnand %p7259_p11, %p7435_p5  ;;  %p7267_p2 = por %p7266_p1, %p7265_p0 }
 0xdbb   : > { %p7261_p13 = pneg %p7260_p12 }
 0xdbd   : > { %p7268_p3 = pnand %p7267_p2, %p7261_p13 }
 0xdbe   : > { %v5267_v3 = vld [vmem:[#allocation5 + $0x20] sm:$0xff] }
 0xe20   : > { %v5150_v26 = vpop.permute.xlu1 %5149 }
 0xe21   : > { %5152 = vst.msk [vmem:[#allocation5] sm:$0xff] %vm3404_vm4, %v5150_v26 }
 0xe22   : > { %v5182_v63 = vpop.permute.xlu0 %5181 }
 0xe23   : > { %5184 = vst.msk [vmem:[#allocation5 + $0x8] sm:$0xff] %vm3404_vm4, %v5182_v63 }
 0xe24   : > { %v5214_v27 = vpop.permute.xlu1 %5213 }
 0xe25   : > { %5216 = vst.msk [vmem:[#allocation5 + $0x10] sm:$0xff] %vm3404_vm4, %v5214_v27 }
 0xe26   : > { %v5246_v29 = vpop.permute.xlu0 %5245 }
 0xe27   : > { %5248 = vst.msk [vmem:[#allocation5 + $0x18] sm:$0xff] %vm3404_vm4, %v5246_v29 }
 0xe28   : > { %v5263_v36 = vld [vmem:[#allocation5] sm:$0xff] }
 0xe2a   : > { %v5264_v35 = vld [vmem:[#allocation5 + $0x8] sm:$0xff] }
 0xe2b   : > { %5525 = vmatprep.mubr.bf16.mxu1 %v5264_v35 }
 0xe2c   : > { %5526 = vmatmul.mubr.bf16.vlgmr.msra.gmra.mrb[72].mxu1 %v5263_v36  ;;  %v5265_v38 = vld [vmem:[#allocation5 + $0x10] sm:$0xff] }
 0xe2d   : > { %6876 = vmatpush3.bf16.msra.mxu1 %v7245_v34  ;;  %6883 = vmatprep.mubr.msk.bf16.mxu1 %vm7333_vm2, %v7322_v0 }
 0xe2e   : > { %v5266_v12 = vld [vmem:[#allocation5 + $0x18] sm:$0xff]  ;;  %6877 = vmatprep.subr.bf16.mxu1 %v7322_v0 }
 0xe2f   : > { %5566 = vmatprep.mubr.bf16.mxu0 %v5266_v12 }
 0xe30   : > { %5567 = vmatmul.mubr.bf16.vlgmr.msra.gmra.mrb[76].mxu0 %v5265_v38 }
 0xe31   : > { %6878 = vmatpush3.bf16.msra.mxu1 %v7247_v37 }
 0xe32   : > { %6879 = vmatprep.subr.bf16.mxu1 %v7322_v0 }
 0xe35   : > { %6880 = vmatpush3.bf16.msra.mxu1 %v7248_v39 }
 0xe36   : > { %6881 = vmatprep.subr.bf16.mxu1 %v7322_v0 }
 0xe39   : > { %6882 = vmatpush3.bf16.msra.mxu1 %v7249_v41 }
 0xe3c   : > { %6884 = vmatmul.mubr.msk.bf16.vlgmr.msra.gmra.mrb[76].mxu1 %vm3138_vm1, %v5267_v3 }
 0xeff   : > { %v6709_v45 = vpop.f32.mrb[72].mxu1 }
 0xf00   : > { %v6710_v48 = vpop.f32.mrb[73].mxu1 }
 0xf01   : > { %v6711_v59 = vadd.f32 %v6710_v48, %v6709_v45  ;;  %v6712_v30 = vpop.f32.mrb[74].mxu1 }
 0xf02   : > { %v6713_v49 = vpop.f32.mrb[75].mxu1 }
 0xf03   : > { %v6714_v5 = vadd.f32 %v6713_v49, %v6712_v30  ;;  %v6731_v18 = vpop.f32.mrb[76].mxu0  ;;  %v5528_v42 = vadd.f32 %v6711_v59, %v6292_v33 }
 0xf04   : > { %v6732_v51 = vpop.f32.mrb[77].mxu0 }
 0xf05   : > { %v6733_v0 = vadd.f32 %v6732_v51, %v6731_v18  ;;  %v6734_v21 = vpop.f32.mrb[78].mxu0  ;;  %v5531_v53 = vadd.f32 %v6714_v5, %v6292_v33 }
 0xf06   : > { %v6735_v52 = vpop.f32.mrb[79].mxu0 }
 0xf07   : > { %v6736_v43 = vadd.f32 %v6735_v52, %v6734_v21  ;;  %v5569_v47 = vadd.f32 %v6733_v0, %v5528_v42 }
 0xf09   : > { %v5572_v54 = vadd.f32 %v6736_v43, %v5531_v53 }
 0xf0f   : > { %v5609_v56 = vpop.f32.mrb[76].mxu1 }
 0xf10   : > { %v5610_v58 = vadd.f32 %v5609_v56, %v5569_v47  ;;  %v6885_v60 = vpop.f32.mrb[77].mxu1 }
 0xf11   : > { %v5612_v46 = vpop.f32.mrb[78].mxu1 }
 0xf12   : > { %v5616_v62 = vadd.f32 %v5610_v58, %v8729_v9  ;;  %v5613_v6 = vadd.f32 %v5612_v46, %v5572_v54  ;;  %v6886_v7 = vpop.f32.mrb[79].mxu1 }
 0xf14   : > { %5618 = vst.msk [vmem:[%s387_s25] sm:$0xff] %vm3138_vm1, %v5616_v62  ;;  %v5617_v8 = vadd.f32 %v5613_v6, %v8736_v13 }
 0xf16   : > { %5619 = vst.msk [vmem:[%s387_s25 + $0x8] sm:$0xff] %vm3138_vm1, %v5617_v8 }
 0xf17   : > { %7271 = shalt.err (!%p7268_p3)
}
 0xf18   : > { %s7272_s26 = scalar_lea.hbm %s8953_s30, 256  ;;  %s7276_s24 = scalar_lea.hbm %s9012_s11, 512 }
 0xf19   : > { %p7273_p4 = scmp.ne.s32.totalorder %s8953_s30, %s7272_s26  ;;  %p7277_p9 = scmp.lt.u32.totalorder %s8953_s30, %s9012_s11 }
 0xf1a   : > { %p7278_p10 = scmp.lt.u32.totalorder %s7276_s24, %s7272_s26  ;;  %p7280_p12 = scmp.lt.u32.totalorder %s7272_s26, %s8953_s30 }
 0xf1b   : > { %p7274_p7 = pnand %p7273_p4, %p7435_p5 }
 0xf1c   : > { %p7279_p11 = por %p7278_p10, %p7277_p9 }
 0xf1d   : > { %p7275_p8 = pneg %p7274_p7 }
 0xf1e   : > { %p7281_p13 = por %p7280_p12, %p7279_p11 }
 0xf20   : > { %p7282_p0 = pnand %p7281_p13, %p7275_p8 }
 0xf22   : > { %7285 = shalt.err (!%p7282_p0)
}
 0xf23   : > { %s7335_s14 = smov 128   ;;  %s7336_s22 = smov 8  }
 0xf24   : > { %6904 = dma.vmem_to_hbm [thread:$0]  (%p7435_p5), %s8955_s0, 256, %s8953_s30, %s8960_s21, %s7335_s14, %s7335_s14, %s7336_s22  }
 0xf25 PF: > { %p6910_p1 = scmp.ge.s32.totalorder %s7320_s20, 2  ;;  %s5665_s16 = sand.u32 1, %s7308_s17  }
 0xf26   : > { %s5666_s13 = scalar_lea.sflag [#allocation7], %s5665_s16 }
 0xf27   : > { %p6907_p2 = pnand %p6910_p1, %p7439_p6 }
 0xf29   : > { %7303 = dma.done.wait (!%p6907_p2), %s5666_s13, 256  }
 0xf2a   : > { %7305 = vsyncadd (!%p6907_p2), %s5666_s13, 4294967040  ;;  %s9042_s29 = sld [smem:[#allocation9_spill]]  ;;  %p22_p3 = scmp.ge.s32.totalorder %s7422_s23, 4  }
 0xf2b   : > { %s9043_s17 = smov %s7312_s18  ;;  %s9044_s18 = smov %s7316_s19 }
 0xf2c   : > { %s9046_s20 = smov %s7422_s23  ;;  %24 = sbr.rel (!%p22_p3) target bundleno = 7 (0x7), region = 123 }
 0xf30   : > { %s9045_s19 = smov %s9042_s29 }
 0xf33   :  { %5671 = vsyncpa [#allocation7], 1 }
 0xf34   :  { %5673 = vsyncpa [#allocation7 + $0x1], 1 }

</bundles_post_ra>
